<compile_context>
chip_gen: v7x
topology: tpu7x:2x2x1
jax: 0.10.0
libtpu: 0.0.40
codegen_flags: <defaults>
</compile_context>

<pallas_src>
import functools

import jax
import jax.numpy as jnp
from jax import lax
from jax.experimental import pallas as pl
from jax.experimental.pallas import tpu as pltpu


def _fused_mlp_kernel(*refs, num_layers, points_transposed, matmul_dtype,
                      negative_slope=0.2):
    """Fused per-batch MLP on one tile of points.

    refs = [x, w0, b0, w1, b1, ..., w_{L-1}, b_{L-1}, out]
      x          : (1, TN, 3) points tile          (points_transposed=False)
                   (1, 3, TN) pre-transposed tile  (points_transposed=True)
      layer 0    : w (1, H, 3)  [= (scale * W0)^T], b (1, H, 1)
      hidden l   : w (1, H, H)  [= (scale * Wl)^T], b (1, H, 1)
      last layer : w (1, H, 1)  [=  scale * W_L  ], b (1, 1, 1)
      out        : (1, 1, TN)   lane-dense output tile
    Activations live on-chip as (H, TN): N on the 128-lane axis everywhere.
    """
    assert len(refs) == 2 * num_layers + 2
    x_ref = refs[0]
    o_ref = refs[-1]

    def wb(layer):
        base = 1 + 2 * layer
        return refs[base][0], refs[base + 1][0]

    # ---- Layer 0: 3 -> H.  Scales are pre-folded into w by the wrapper.
    w, b = wb(0)                                        # (H, 3), (H, 1)
    if points_transposed:
        x = x_ref[0]                                    # (3, TN)
        # K=3 contraction as 3 broadcast FMAs on the VPU.
        h = (w[:, 0:1] * x[0:1, :]
             + w[:, 1:2] * x[1:2, :]
             + w[:, 2:3] * x[2:3, :]) + b               # (H, TN)
    else:
        x = x_ref[0]                                    # (TN, 3)
        # 'hd,nd->hn': contract the tiny D=3 axis directly; no transpose of x.
        h = lax.dot_general(w, x, (((1,), (1,)), ((), ())),
                            preferred_element_type=jnp.float32) + b
    # LeakyReLU(0.2) == max(h, 0.2*h)  (valid because 0 <= slope <= 1).
    h = jnp.maximum(h, negative_slope * h)

    # ---- Hidden layers: H -> H on the MXU; activations stay on-chip as (H, TN).
    for layer in range(1, num_layers - 1):
        w, b = wb(layer)                                # (H, H), (H, 1)
        h = jnp.dot(w.astype(matmul_dtype), h.astype(matmul_dtype),
                    preferred_element_type=jnp.float32) + b
        h = jnp.maximum(h, negative_slope * h)

    # ---- Last layer: H -> 1 as a lane-dense sublane reduction (no 1-column MXU
    #      matmul, no masked (TN, 1) partial stores).
    w, b = wb(num_layers - 1)                           # (H, 1), (1, 1)
    y = jnp.sum(w * h, axis=0, keepdims=True) + b       # (1, TN)
    o_ref[0] = y.astype(o_ref.dtype)


def _round_up(a, m):
    return ((a + m - 1) // m) * m


def _vmem_estimate(tn, hidden_dim, num_layers, matmul_itemsize, wrapper_transpose,
                   resident_buffers):
    """Rough VMEM working-set estimate (bytes), including (8, 128) tile padding."""
    H, L = hidden_dim, num_layers
    lanes = lambda c: _round_up(max(c, 1), 128)   # noqa: E731
    subl = lambda r: _round_up(max(r, 1), 8)      # noqa: E731
    act = 3 * subl(H) * lanes(tn) * 4             # live f32 activation slabs
    x_blk = subl(3) * lanes(tn) * 4 if wrapper_transpose else subl(tn) * lanes(3) * 4
    o_blk = subl(1) * lanes(tn) * 4
    io = 2 * (x_blk + o_blk)                      # double-buffered I/O tiles
    resident = (subl(H) * lanes(3) * 4 + subl(H) * lanes(1) * 4              # layer 0
                + (L - 2) * (subl(H) * lanes(H) * matmul_itemsize
                             + subl(H) * lanes(1) * 4)                       # hidden
                + subl(H) * lanes(1) * 4 + subl(1) * lanes(1) * 4)           # last
    return act + io + resident_buffers * resident


def _run_fused(points_padded, folded, hidden_dim, *, tn, wrapper_transpose,
               single_buffer, matmul_dtype, vmem_limit):
    """Build specs + pallas_call for one layout configuration and run it."""
    B, n_pad, _ = points_padded.shape
    H = hidden_dim
    L = len(folded)
    grid = (B, n_pad // tn)

    spec_kwargs = {"pipeline_mode": pl.Buffered(1)} if single_buffer else {}

    def resident_spec(shape):
        # Block index constant along the N axis -> stays resident across N tiles.
        return pl.BlockSpec(shape, lambda bi, ni: (bi, 0, 0), **spec_kwargs)

    if wrapper_transpose:
        # Fallback layout: one extra HBM pass over points, but the kernel sees a
        # lane-dense (3, TN) tile (previously-validated configuration).
        x_in = jnp.transpose(points_padded, (0, 2, 1))            # (B, 3, Npad)
        x_spec = pl.BlockSpec((1, 3, tn), lambda bi, ni: (bi, 0, ni))
    else:
        x_in = points_padded                                      # (B, Npad, 3)
        x_spec = pl.BlockSpec((1, tn, 3), lambda bi, ni: (bi, ni, 0))

    inputs = [x_in]
    in_specs = [x_spec]
    for w, b in folded:
        inputs += [w, b]
        in_specs += [resident_spec((1,) + tuple(w.shape[1:])),
                     resident_spec((1,) + tuple(b.shape[1:]))]

    out_specs = pl.BlockSpec((1, 1, tn), lambda bi, ni: (bi, 0, ni))

    flops = 2 * B * n_pad * (3 * H + (L - 2) * H * H + H)
    bytes_accessed = (sum(int(a.size) * a.dtype.itemsize for a in inputs)
                      + B * n_pad * points_padded.dtype.itemsize)
    cost = pl.CostEstimate(flops=int(flops), transcendentals=0,
                           bytes_accessed=int(bytes_accessed))

    kernel = functools.partial(_fused_mlp_kernel, num_layers=L,
                               points_transposed=wrapper_transpose,
                               matmul_dtype=matmul_dtype)

    return pl.pallas_call(
        kernel,
        out_shape=jax.ShapeDtypeStruct((B, 1, n_pad), points_padded.dtype),
        grid=grid,
        in_specs=in_specs,
        out_specs=out_specs,
        compiler_params=pltpu.CompilerParams(
            dimension_semantics=("parallel", "parallel"),
            vmem_limit_bytes=vmem_limit),
        cost_estimate=cost,
    )(*inputs)


# Successful (wrapper_transpose, single_buffer) configurations, tried first.
_MODE_CACHE = []


def implicit_function_forward(points, params, hidden_dim, matmul_dtype=None):
    """Mirrors ImplicitFunction.forward.

    points : (B, N, 3)
    params : list of (weights, scales, biases), one per layer:
        layer 0    : weights (B, 3*H), scales (B, H), biases (B, H)
        hidden     : weights (B, H*H), scales (B, H), biases (B, H)
        last layer : weights (B, H),   scales (B, 1), biases (B, 1)
    returns (B, N, 1)
    """
    H = hidden_dim
    B, N, d_in = points.shape
    assert d_in == 3, "ImplicitFunction expects xyz points"
    L = len(params)
    assert L >= 2

    if matmul_dtype is None:
        # bf16 HxH matmuls only once the MXU is a plausible bottleneck (v6e/v7x).
        matmul_dtype = jnp.bfloat16 if H >= 128 else jnp.float32
    matmul_itemsize = jnp.dtype(matmul_dtype).itemsize

    # ---- Fold scales into the (tiny, per-batch) weights ONCE, outside the kernel.
    # NOTE: changes FP rounding order vs. scaling after the matmul; negligible at
    # these magnitudes (checked against the reference below).
    w0, s0, b0 = params[0]
    folded = [(
        (jnp.transpose(w0.reshape(B, 3, H), (0, 2, 1))
         * s0[:, :, None]).astype(jnp.float32),                 # (B, H, 3) = (s*W0)^T
        b0.reshape(B, H, 1).astype(jnp.float32),
    )]
    for w, s, b in params[1:-1]:
        folded.append((
            (jnp.transpose(w.reshape(B, H, H), (0, 2, 1))
             * s[:, :, None]).astype(matmul_dtype),             # (B, H, H) = (s*W)^T
            b.reshape(B, H, 1).astype(jnp.float32),
        ))
    wL, sL, bL = params[-1]
    folded.append((
        (wL.reshape(B, H, 1) * sL[:, None, :]).astype(jnp.float32),   # (B, H, 1)
        bL.reshape(B, 1, 1).astype(jnp.float32),
    ))

    # ---- Choose the N tile: biggest lane tile (<= 1024) fitting the VMEM budget,
    # then pad N up to a tile multiple (padding is sliced off the output).
    budget = 24 << 20
    tn = 128
    for cand in (1024, 512, 256, 128):
        if _vmem_estimate(cand, H, L, matmul_itemsize, False, 2) <= budget:
            tn = cand
            break
    tn = min(tn, _round_up(N, 128))
    n_pad = _round_up(N, tn)
    points_p = points if n_pad == N else jnp.pad(
        points, ((0, 0), (0, n_pad - N), (0, 0)))

    vmem_limit = int(min(48 << 20, max(
        24 << 20, 2 * _vmem_estimate(tn, H, L, matmul_itemsize, False, 2))))

    attempts, seen = [], set()
    for mode in _MODE_CACHE + [(False, True), (False, False), (True, False)]:
        if mode not in seen:
            seen.add(mode)
            attempts.append(mode)

    last_err = None
    for wrapper_transpose, single_buffer in attempts:
        try:
            out = _run_fused(points_p, folded, H, tn=tn,
                             wrapper_transpose=wrapper_transpose,
                             single_buffer=single_buffer,
                             matmul_dtype=matmul_dtype,
                             vmem_limit=vmem_limit)
            out = jax.block_until_ready(out)
        except Exception as err:  # fall back to a more conservative configuration
            last_err = err
            continue
        if (wrapper_transpose, single_buffer) not in _MODE_CACHE:
            _MODE_CACHE.append((wrapper_transpose, single_buffer))
        # (B, 1, Npad) -> (B, Npad, 1) is a pure relabeling; then drop the padding.
        return out.reshape(B, n_pad, 1)[:, :N, :]
    raise last_err


def _reference_forward(points, params, hidden_dim):
    """Pure-JAX reference (mirrors the PyTorch module exactly)."""
    H = hidden_dim
    B = points.shape[0]

    def leaky(y):
        return jnp.where(y > 0, y, 0.2 * y)

    x = points
    w, s, b = params[0]
    x = leaky(jnp.einsum("bnd,bdh->bnh", x, w.reshape(B, 3, H))
              * s[:, None, :] + b[:, None, :])
    for w, s, b in params[1:-1]:
        x = leaky(jnp.einsum("bnd,bdh->bnh", x, w.reshape(B, H, H))
                  * s[:, None, :] + b[:, None, :])
    w, s, b = params[-1]
    x = (jnp.einsum("bnd,bdh->bnh", x, w.reshape(B, H, 1))
         * s[:, None, :] + b[:, None, :])
    return x


def _make_params(key, batch, hidden_dim, num_hidden):
    """Deterministic synthetic params (what a hypernetwork would produce)."""
    H = hidden_dim
    dims = [(3, H)] + [(H, H)] * num_hidden + [(H, 1)]
    keys = jax.random.split(key, 3 * len(dims))
    params = []
    for i, (d_in, d_out) in enumerate(dims):
        kw, ks, kb = keys[3 * i], keys[3 * i + 1], keys[3 * i + 2]
        params.append((
            0.1 * jax.random.normal(kw, (batch, d_in * d_out), dtype=jnp.float32),
            1.0 + 0.01 * jax.random.normal(ks, (batch, d_out), dtype=jnp.float32),
            0.1 * jax.random.normal(kb, (batch, d_out), dtype=jnp.float32),
        ))
    return params


if __name__ == "__main__":
    key = jax.random.PRNGKey(0)
    k_pts, k_pts2, k_par, k_par2 = jax.random.split(key, 4)

    # Case 1: N a multiple of 128 -> no padding (TN = 384, one tile per batch elem).
    B, N, H, NUM_HIDDEN = 2, 384, 32, 2
    points = jax.random.normal(k_pts, (B, N, 3), dtype=jnp.float32)
    params = _make_params(k_par, B, H, NUM_HIDDEN)
    out = implicit_function_forward(points, params, H)
    ref = _reference_forward(points, params, H)
    assert out.shape == (B, N, 1), out.shape
    assert jnp.allclose(out, ref, atol=1e-5, rtol=1e-5), "case 1 mismatch vs reference"

    # Case 2: ragged N (exercises pad-to-tile + output slice) and one hidden layer.
    B2, N2, H2 = 2, 200, 32
    points2 = jax.random.normal(k_pts2, (B2, N2, 3), dtype=jnp.float32)
    params2 = _make_params(k_par2, B2, H2, 1)
    out2 = implicit_function_forward(points2, params2, H2)
    ref2 = _reference_forward(points2, params2, H2)
    assert out2.shape == (B2, N2, 1), out2.shape
    assert jnp.allclose(out2, ref2, atol=1e-5, rtol=1e-5), "case 2 mismatch vs reference"

    print("KERNEL_OK")
</pallas_src>

<mosaic_0001>
module attributes {stable_mosaic.version = 11 : i64} {
  func.func @_fused_mlp_kernel(%arg0: i32, %arg1: i32, %arg2: memref<1x384x3xf32, #tpu.memory_space<vmem>>, %arg3: memref<1x32x3xf32, #tpu.memory_space<vmem>>, %arg4: memref<1x32x1xf32, #tpu.memory_space<vmem>>, %arg5: memref<1x32x32xf32, #tpu.memory_space<vmem>>, %arg6: memref<1x32x1xf32, #tpu.memory_space<vmem>>, %arg7: memref<1x32x32xf32, #tpu.memory_space<vmem>>, %arg8: memref<1x32x1xf32, #tpu.memory_space<vmem>>, %arg9: memref<1x32x1xf32, #tpu.memory_space<vmem>>, %arg10: memref<1x1x1xf32, #tpu.memory_space<vmem>>, %arg11: memref<1x1x384xf32, #tpu.memory_space<vmem>>) attributes {dimension_semantics = [#tpu.dimension_semantics<parallel>, #tpu.dimension_semantics<parallel>], iteration_bounds = array<i64: 2, 1>, scalar_prefetch = 0 : i64, scratch_operands = 0 : i64, tpu.core_type = #tpu.core_type<tc>, window_params = [{transform_indices = @transform_0, window_bounds = array<i64: 1, 384, 3>}, {pipeline_mode = #tpu.pipeline_mode<synchronous>, transform_indices = @transform_1, window_bounds = array<i64: 1, 32, 3>}, {pipeline_mode = #tpu.pipeline_mode<synchronous>, transform_indices = @transform_2, window_bounds = array<i64: 1, 32, 1>}, {pipeline_mode = #tpu.pipeline_mode<synchronous>, transform_indices = @transform_3, window_bounds = array<i64: 1, 32, 32>}, {pipeline_mode = #tpu.pipeline_mode<synchronous>, transform_indices = @transform_4, window_bounds = array<i64: 1, 32, 1>}, {pipeline_mode = #tpu.pipeline_mode<synchronous>, transform_indices = @transform_5, window_bounds = array<i64: 1, 32, 32>}, {pipeline_mode = #tpu.pipeline_mode<synchronous>, transform_indices = @transform_6, window_bounds = array<i64: 1, 32, 1>}, {pipeline_mode = #tpu.pipeline_mode<synchronous>, transform_indices = @transform_7, window_bounds = array<i64: 1, 32, 1>}, {pipeline_mode = #tpu.pipeline_mode<synchronous>, transform_indices = @transform_8, window_bounds = array<i64: 1, 1, 1>}, {transform_indices = @transform_9, window_bounds = array<i64: 1, 1, 384>}]} {
    %c0 = arith.constant 0 : index
    %c0_0 = arith.constant 0 : index
    %c0_1 = arith.constant 0 : index
    %0 = vector.load %arg3[%c0, %c0_0, %c0_1] : memref<1x32x3xf32, #tpu.memory_space<vmem>>, vector<1x32x3xf32>
    %1 = vector.shape_cast %0 : vector<1x32x3xf32> to vector<32x3xf32>
    %c0_2 = arith.constant 0 : index
    %c0_3 = arith.constant 0 : index
    %c0_4 = arith.constant 0 : index
    %2 = vector.load %arg4[%c0_2, %c0_3, %c0_4] : memref<1x32x1xf32, #tpu.memory_space<vmem>>, vector<1x32x1xf32>
    %3 = vector.shape_cast %2 : vector<1x32x1xf32> to vector<32x1xf32>
    %c0_5 = arith.constant 0 : index
    %c0_6 = arith.constant 0 : index
    %c0_7 = arith.constant 0 : index
    %4 = vector.load %arg2[%c0_5, %c0_6, %c0_7] : memref<1x384x3xf32, #tpu.memory_space<vmem>>, vector<1x384x3xf32>
    %5 = vector.shape_cast %4 : vector<1x384x3xf32> to vector<384x3xf32>
    %cst = arith.constant dense<0.000000e+00> : vector<32x384xf32>
    %6 = tpu.matmul %1, %5, %cst {dimension_numbers = #tpu.dot_dimension_numbers<[1], [1], [0], [0], [0, 0, 1, 0], [], []>} : vector<32x3xf32>, vector<384x3xf32>, vector<32x384xf32> -> vector<32x384xf32>
    %7 = vector.broadcast %3 : vector<32x1xf32> to vector<32x384xf32>
    %8 = arith.addf %6, %7 : vector<32x384xf32>
    %cst_8 = arith.constant 2.000000e-01 : f32
    %9 = vector.broadcast %cst_8 : f32 to vector<32x384xf32>
    %10 = arith.mulf %9, %8 : vector<32x384xf32>
    %11 = arith.maximumf %8, %10 : vector<32x384xf32>
    %c0_9 = arith.constant 0 : index
    %c0_10 = arith.constant 0 : index
    %c0_11 = arith.constant 0 : index
    %12 = vector.load %arg5[%c0_9, %c0_10, %c0_11] : memref<1x32x32xf32, #tpu.memory_space<vmem>>, vector<1x32x32xf32>
    %13 = vector.shape_cast %12 : vector<1x32x32xf32> to vector<32x32xf32>
    %c0_12 = arith.constant 0 : index
    %c0_13 = arith.constant 0 : index
    %c0_14 = arith.constant 0 : index
    %14 = vector.load %arg6[%c0_12, %c0_13, %c0_14] : memref<1x32x1xf32, #tpu.memory_space<vmem>>, vector<1x32x1xf32>
    %15 = vector.shape_cast %14 : vector<1x32x1xf32> to vector<32x1xf32>
    %cst_15 = arith.constant dense<0.000000e+00> : vector<32x384xf32>
    %16 = tpu.matmul %13, %11, %cst_15 {dimension_numbers = #tpu.dot_dimension_numbers<[1], [0], [0], [1], [0, 0, 1, 1], [], []>} : vector<32x32xf32>, vector<32x384xf32>, vector<32x384xf32> -> vector<32x384xf32>
    %17 = vector.broadcast %15 : vector<32x1xf32> to vector<32x384xf32>
    %18 = arith.addf %16, %17 : vector<32x384xf32>
    %cst_16 = arith.constant 2.000000e-01 : f32
    %19 = vector.broadcast %cst_16 : f32 to vector<32x384xf32>
    %20 = arith.mulf %19, %18 : vector<32x384xf32>
    %21 = arith.maximumf %18, %20 : vector<32x384xf32>
    %c0_17 = arith.constant 0 : index
    %c0_18 = arith.constant 0 : index
    %c0_19 = arith.constant 0 : index
    %22 = vector.load %arg7[%c0_17, %c0_18, %c0_19] : memref<1x32x32xf32, #tpu.memory_space<vmem>>, vector<1x32x32xf32>
    %23 = vector.shape_cast %22 : vector<1x32x32xf32> to vector<32x32xf32>
    %c0_20 = arith.constant 0 : index
    %c0_21 = arith.constant 0 : index
    %c0_22 = arith.constant 0 : index
    %24 = vector.load %arg8[%c0_20, %c0_21, %c0_22] : memref<1x32x1xf32, #tpu.memory_space<vmem>>, vector<1x32x1xf32>
    %25 = vector.shape_cast %24 : vector<1x32x1xf32> to vector<32x1xf32>
    %cst_23 = arith.constant dense<0.000000e+00> : vector<32x384xf32>
    %26 = tpu.matmul %23, %21, %cst_23 {dimension_numbers = #tpu.dot_dimension_numbers<[1], [0], [0], [1], [0, 0, 1, 1], [], []>} : vector<32x32xf32>, vector<32x384xf32>, vector<32x384xf32> -> vector<32x384xf32>
    %27 = vector.broadcast %25 : vector<32x1xf32> to vector<32x384xf32>
    %28 = arith.addf %26, %27 : vector<32x384xf32>
    %cst_24 = arith.constant 2.000000e-01 : f32
    %29 = vector.broadcast %cst_24 : f32 to vector<32x384xf32>
    %30 = arith.mulf %29, %28 : vector<32x384xf32>
    %31 = arith.maximumf %28, %30 : vector<32x384xf32>
    %c0_25 = arith.constant 0 : index
    %c0_26 = arith.constant 0 : index
    %c0_27 = arith.constant 0 : index
    %32 = vector.load %arg9[%c0_25, %c0_26, %c0_27] : memref<1x32x1xf32, #tpu.memory_space<vmem>>, vector<1x32x1xf32>
    %33 = vector.shape_cast %32 : vector<1x32x1xf32> to vector<32x1xf32>
    %c0_28 = arith.constant 0 : index
    %c0_29 = arith.constant 0 : index
    %c0_30 = arith.constant 0 : index
    %34 = vector.load %arg10[%c0_28, %c0_29, %c0_30] : memref<1x1x1xf32, #tpu.memory_space<vmem>>, vector<1x1x1xf32>
    %35 = vector.shape_cast %34 : vector<1x1x1xf32> to vector<1x1xf32>
    %36 = vector.broadcast %33 : vector<32x1xf32> to vector<32x384xf32>
    %37 = arith.mulf %36, %31 : vector<32x384xf32>
    %cst_31 = arith.constant dense<0.000000e+00> : vector<384xf32>
    %38 = vector.multi_reduction <add>, %37, %cst_31 [0] : vector<32x384xf32> to vector<384xf32>
    %39 = vector.shape_cast %38 : vector<384xf32> to vector<1x384xf32>
    %40 = vector.broadcast %35 : vector<1x1xf32> to vector<1x384xf32>
    %41 = arith.addf %39, %40 : vector<1x384xf32>
    %c0_32 = arith.constant 0 : index
    %c0_33 = arith.constant 0 : index
    %c0_34 = arith.constant 0 : index
    %42 = vector.load %arg11[%c0_32, %c0_33, %c0_34] : memref<1x1x384xf32, #tpu.memory_space<vmem>>, vector<1x1x384xf32>
    %43 = vector.shape_cast %42 : vector<1x1x384xf32> to vector<1x384xf32>
    %44 = vector.shape_cast %41 : vector<1x384xf32> to vector<1x1x384xf32>
    tpu.vector_store %arg11[%c0_32, %c0_33, %c0_34], %44 {strides = array<i32>} : memref<1x1x384xf32, #tpu.memory_space<vmem>>, vector<1x1x384xf32>,
    return
  }
  func.func @transform_0(%arg0: i32, %arg1: i32) -> (i32, i32, i32) {
    %c0_i32 = arith.constant 0 : i32
    %c0_i32_0 = arith.constant 0 : i32
    return %arg0, %arg1, %c0_i32 : i32, i32, i32
  }
  func.func @transform_1(%arg0: i32, %arg1: i32) -> (i32, i32, i32) {
    %c0_i32 = arith.constant 0 : i32
    %c0_i32_0 = arith.constant 0 : i32
    %c0_i32_1 = arith.constant 0 : i32
    return %arg0, %c0_i32, %c0_i32_0 : i32, i32, i32
  }
  func.func @transform_2(%arg0: i32, %arg1: i32) -> (i32, i32, i32) {
    %c0_i32 = arith.constant 0 : i32
    %c0_i32_0 = arith.constant 0 : i32
    %c0_i32_1 = arith.constant 0 : i32
    return %arg0, %c0_i32, %c0_i32_0 : i32, i32, i32
  }
  func.func @transform_3(%arg0: i32, %arg1: i32) -> (i32, i32, i32) {
    %c0_i32 = arith.constant 0 : i32
    %c0_i32_0 = arith.constant 0 : i32
    %c0_i32_1 = arith.constant 0 : i32
    return %arg0, %c0_i32, %c0_i32_0 : i32, i32, i32
  }
  func.func @transform_4(%arg0: i32, %arg1: i32) -> (i32, i32, i32) {
    %c0_i32 = arith.constant 0 : i32
    %c0_i32_0 = arith.constant 0 : i32
    %c0_i32_1 = arith.constant 0 : i32
    return %arg0, %c0_i32, %c0_i32_0 : i32, i32, i32
  }
  func.func @transform_5(%arg0: i32, %arg1: i32) -> (i32, i32, i32) {
    %c0_i32 = arith.constant 0 : i32
    %c0_i32_0 = arith.constant 0 : i32
    %c0_i32_1 = arith.constant 0 : i32
    return %arg0, %c0_i32, %c0_i32_0 : i32, i32, i32
  }
  func.func @transform_6(%arg0: i32, %arg1: i32) -> (i32, i32, i32) {
    %c0_i32 = arith.constant 0 : i32
    %c0_i32_0 = arith.constant 0 : i32
    %c0_i32_1 = arith.constant 0 : i32
    return %arg0, %c0_i32, %c0_i32_0 : i32, i32, i32
  }
  func.func @transform_7(%arg0: i32, %arg1: i32) -> (i32, i32, i32) {
    %c0_i32 = arith.constant 0 : i32
    %c0_i32_0 = arith.constant 0 : i32
    %c0_i32_1 = arith.constant 0 : i32
    return %arg0, %c0_i32, %c0_i32_0 : i32, i32, i32
  }
  func.func @transform_8(%arg0: i32, %arg1: i32) -> (i32, i32, i32) {
    %c0_i32 = arith.constant 0 : i32
    %c0_i32_0 = arith.constant 0 : i32
    %c0_i32_1 = arith.constant 0 : i32
    return %arg0, %c0_i32, %c0_i32_0 : i32, i32, i32
  }
  func.func @transform_9(%arg0: i32, %arg1: i32) -> (i32, i32, i32) {
    %c0_i32 = arith.constant 0 : i32
    %c0_i32_0 = arith.constant 0 : i32
    return %arg0, %c0_i32, %arg1 : i32, i32, i32
  }
}

module attributes {stable_mosaic.version = 11 : i64} {
  func.func @_fused_mlp_kernel(%arg0: i32, %arg1: i32, %arg2: memref<1x384x3xf32, #tpu.memory_space<vmem>>, %arg3: memref<1x32x3xf32, #tpu.memory_space<vmem>>, %arg4: memref<1x32x1xf32, #tpu.memory_space<vmem>>, %arg5: memref<1x32x32xf32, #tpu.memory_space<vmem>>, %arg6: memref<1x32x1xf32, #tpu.memory_space<vmem>>, %arg7: memref<1x32x32xf32, #tpu.memory_space<vmem>>, %arg8: memref<1x32x1xf32, #tpu.memory_space<vmem>>, %arg9: memref<1x32x1xf32, #tpu.memory_space<vmem>>, %arg10: memref<1x1x1xf32, #tpu.memory_space<vmem>>, %arg11: memref<1x1x384xf32, #tpu.memory_space<vmem>>) attributes {dimension_semantics = [#tpu.dimension_semantics<parallel>, #tpu.dimension_semantics<parallel>], iteration_bounds = array<i64: 2, 1>, scalar_prefetch = 0 : i64, scratch_operands = 0 : i64, tpu.core_type = #tpu.core_type<tc>, window_params = [{transform_indices = @transform_0, window_bounds = array<i64: 1, 384, 3>}, {transform_indices = @transform_1, window_bounds = array<i64: 1, 32, 3>}, {transform_indices = @transform_2, window_bounds = array<i64: 1, 32, 1>}, {transform_indices = @transform_3, window_bounds = array<i64: 1, 32, 32>}, {transform_indices = @transform_4, window_bounds = array<i64: 1, 32, 1>}, {transform_indices = @transform_5, window_bounds = array<i64: 1, 32, 32>}, {transform_indices = @transform_6, window_bounds = array<i64: 1, 32, 1>}, {transform_indices = @transform_7, window_bounds = array<i64: 1, 32, 1>}, {transform_indices = @transform_8, window_bounds = array<i64: 1, 1, 1>}, {transform_indices = @transform_9, window_bounds = array<i64: 1, 1, 384>}]} {
    %c0 = arith.constant 0 : index
    %c0_0 = arith.constant 0 : index
    %c0_1 = arith.constant 0 : index
    %0 = vector.load %arg3[%c0, %c0_0, %c0_1] : memref<1x32x3xf32, #tpu.memory_space<vmem>>, vector<1x32x3xf32>
    %1 = vector.shape_cast %0 : vector<1x32x3xf32> to vector<32x3xf32>
    %c0_2 = arith.constant 0 : index
    %c0_3 = arith.constant 0 : index
    %c0_4 = arith.constant 0 : index
    %2 = vector.load %arg4[%c0_2, %c0_3, %c0_4] : memref<1x32x1xf32, #tpu.memory_space<vmem>>, vector<1x32x1xf32>
    %3 = vector.shape_cast %2 : vector<1x32x1xf32> to vector<32x1xf32>
    %c0_5 = arith.constant 0 : index
    %c0_6 = arith.constant 0 : index
    %c0_7 = arith.constant 0 : index
    %4 = vector.load %arg2[%c0_5, %c0_6, %c0_7] : memref<1x384x3xf32, #tpu.memory_space<vmem>>, vector<1x384x3xf32>
    %5 = vector.shape_cast %4 : vector<1x384x3xf32> to vector<384x3xf32>
    %cst = arith.constant dense<0.000000e+00> : vector<32x384xf32>
    %6 = tpu.matmul %1, %5, %cst {dimension_numbers = #tpu.dot_dimension_numbers<[1], [1], [0], [0], [0, 0, 1, 0], [], []>} : vector<32x3xf32>, vector<384x3xf32>, vector<32x384xf32> -> vector<32x384xf32>
    %7 = vector.broadcast %3 : vector<32x1xf32> to vector<32x384xf32>
    %8 = arith.addf %6, %7 : vector<32x384xf32>
    %cst_8 = arith.constant 2.000000e-01 : f32
    %9 = vector.broadcast %cst_8 : f32 to vector<32x384xf32>
    %10 = arith.mulf %9, %8 : vector<32x384xf32>
    %11 = arith.maximumf %8, %10 : vector<32x384xf32>
    %c0_9 = arith.constant 0 : index
    %c0_10 = arith.constant 0 : index
    %c0_11 = arith.constant 0 : index
    %12 = vector.load %arg5[%c0_9, %c0_10, %c0_11] : memref<1x32x32xf32, #tpu.memory_space<vmem>>, vector<1x32x32xf32>
    %13 = vector.shape_cast %12 : vector<1x32x32xf32> to vector<32x32xf32>
    %c0_12 = arith.constant 0 : index
    %c0_13 = arith.constant 0 : index
    %c0_14 = arith.constant 0 : index
    %14 = vector.load %arg6[%c0_12, %c0_13, %c0_14] : memref<1x32x1xf32, #tpu.memory_space<vmem>>, vector<1x32x1xf32>
    %15 = vector.shape_cast %14 : vector<1x32x1xf32> to vector<32x1xf32>
    %cst_15 = arith.constant dense<0.000000e+00> : vector<32x384xf32>
    %16 = tpu.matmul %13, %11, %cst_15 {dimension_numbers = #tpu.dot_dimension_numbers<[1], [0], [0], [1], [0, 0, 1, 1], [], []>} : vector<32x32xf32>, vector<32x384xf32>, vector<32x384xf32> -> vector<32x384xf32>
    %17 = vector.broadcast %15 : vector<32x1xf32> to vector<32x384xf32>
    %18 = arith.addf %16, %17 : vector<32x384xf32>
    %cst_16 = arith.constant 2.000000e-01 : f32
    %19 = vector.broadcast %cst_16 : f32 to vector<32x384xf32>
    %20 = arith.mulf %19, %18 : vector<32x384xf32>
    %21 = arith.maximumf %18, %20 : vector<32x384xf32>
    %c0_17 = arith.constant 0 : index
    %c0_18 = arith.constant 0 : index
    %c0_19 = arith.constant 0 : index
    %22 = vector.load %arg7[%c0_17, %c0_18, %c0_19] : memref<1x32x32xf32, #tpu.memory_space<vmem>>, vector<1x32x32xf32>
    %23 = vector.shape_cast %22 : vector<1x32x32xf32> to vector<32x32xf32>
    %c0_20 = arith.constant 0 : index
    %c0_21 = arith.constant 0 : index
    %c0_22 = arith.constant 0 : index
    %24 = vector.load %arg8[%c0_20, %c0_21, %c0_22] : memref<1x32x1xf32, #tpu.memory_space<vmem>>, vector<1x32x1xf32>
    %25 = vector.shape_cast %24 : vector<1x32x1xf32> to vector<32x1xf32>
    %cst_23 = arith.constant dense<0.000000e+00> : vector<32x384xf32>
    %26 = tpu.matmul %23, %21, %cst_23 {dimension_numbers = #tpu.dot_dimension_numbers<[1], [0], [0], [1], [0, 0, 1, 1], [], []>} : vector<32x32xf32>, vector<32x384xf32>, vector<32x384xf32> -> vector<32x384xf32>
    %27 = vector.broadcast %25 : vector<32x1xf32> to vector<32x384xf32>
    %28 = arith.addf %26, %27 : vector<32x384xf32>
    %cst_24 = arith.constant 2.000000e-01 : f32
    %29 = vector.broadcast %cst_24 : f32 to vector<32x384xf32>
    %30 = arith.mulf %29, %28 : vector<32x384xf32>
    %31 = arith.maximumf %28, %30 : vector<32x384xf32>
    %c0_25 = arith.constant 0 : index
    %c0_26 = arith.constant 0 : index
    %c0_27 = arith.constant 0 : index
    %32 = vector.load %arg9[%c0_25, %c0_26, %c0_27] : memref<1x32x1xf32, #tpu.memory_space<vmem>>, vector<1x32x1xf32>
    %33 = vector.shape_cast %32 : vector<1x32x1xf32> to vector<32x1xf32>
    %c0_28 = arith.constant 0 : index
    %c0_29 = arith.constant 0 : index
    %c0_30 = arith.constant 0 : index
    %34 = vector.load %arg10[%c0_28, %c0_29, %c0_30] : memref<1x1x1xf32, #tpu.memory_space<vmem>>, vector<1x1x1xf32>
    %35 = vector.shape_cast %34 : vector<1x1x1xf32> to vector<1x1xf32>
    %36 = vector.broadcast %33 : vector<32x1xf32> to vector<32x384xf32>
    %37 = arith.mulf %36, %31 : vector<32x384xf32>
    %cst_31 = arith.constant dense<0.000000e+00> : vector<384xf32>
    %38 = vector.multi_reduction <add>, %37, %cst_31 [0] : vector<32x384xf32> to vector<384xf32>
    %39 = vector.shape_cast %38 : vector<384xf32> to vector<1x384xf32>
    %40 = vector.broadcast %35 : vector<1x1xf32> to vector<1x384xf32>
    %41 = arith.addf %39, %40 : vector<1x384xf32>
    %c0_32 = arith.constant 0 : index
    %c0_33 = arith.constant 0 : index
    %c0_34 = arith.constant 0 : index
    %42 = vector.load %arg11[%c0_32, %c0_33, %c0_34] : memref<1x1x384xf32, #tpu.memory_space<vmem>>, vector<1x1x384xf32>
    %43 = vector.shape_cast %42 : vector<1x1x384xf32> to vector<1x384xf32>
    %44 = vector.shape_cast %41 : vector<1x384xf32> to vector<1x1x384xf32>
    tpu.vector_store %arg11[%c0_32, %c0_33, %c0_34], %44 {strides = array<i32>} : memref<1x1x384xf32, #tpu.memory_space<vmem>>, vector<1x1x384xf32>,
    return
  }
  func.func @transform_0(%arg0: i32, %arg1: i32) -> (i32, i32, i32) {
    %c0_i32 = arith.constant 0 : i32
    %c0_i32_0 = arith.constant 0 : i32
    return %arg0, %arg1, %c0_i32 : i32, i32, i32
  }
  func.func @transform_1(%arg0: i32, %arg1: i32) -> (i32, i32, i32) {
    %c0_i32 = arith.constant 0 : i32
    %c0_i32_0 = arith.constant 0 : i32
    %c0_i32_1 = arith.constant 0 : i32
    return %arg0, %c0_i32, %c0_i32_0 : i32, i32, i32
  }
  func.func @transform_2(%arg0: i32, %arg1: i32) -> (i32, i32, i32) {
    %c0_i32 = arith.constant 0 : i32
    %c0_i32_0 = arith.constant 0 : i32
    %c0_i32_1 = arith.constant 0 : i32
    return %arg0, %c0_i32, %c0_i32_0 : i32, i32, i32
  }
  func.func @transform_3(%arg0: i32, %arg1: i32) -> (i32, i32, i32) {
    %c0_i32 = arith.constant 0 : i32
    %c0_i32_0 = arith.constant 0 : i32
    %c0_i32_1 = arith.constant 0 : i32
    return %arg0, %c0_i32, %c0_i32_0 : i32, i32, i32
  }
  func.func @transform_4(%arg0: i32, %arg1: i32) -> (i32, i32, i32) {
    %c0_i32 = arith.constant 0 : i32
    %c0_i32_0 = arith.constant 0 : i32
    %c0_i32_1 = arith.constant 0 : i32
    return %arg0, %c0_i32, %c0_i32_0 : i32, i32, i32
  }
  func.func @transform_5(%arg0: i32, %arg1: i32) -> (i32, i32, i32) {
    %c0_i32 = arith.constant 0 : i32
    %c0_i32_0 = arith.constant 0 : i32
    %c0_i32_1 = arith.constant 0 : i32
    return %arg0, %c0_i32, %c0_i32_0 : i32, i32, i32
  }
  func.func @transform_6(%arg0: i32, %arg1: i32) -> (i32, i32, i32) {
    %c0_i32 = arith.constant 0 : i32
    %c0_i32_0 = arith.constant 0 : i32
    %c0_i32_1 = arith.constant 0 : i32
    return %arg0, %c0_i32, %c0_i32_0 : i32, i32, i32
  }
  func.func @transform_7(%arg0: i32, %arg1: i32) -> (i32, i32, i32) {
    %c0_i32 = arith.constant 0 : i32
    %c0_i32_0 = arith.constant 0 : i32
    %c0_i32_1 = arith.constant 0 : i32
    return %arg0, %c0_i32, %c0_i32_0 : i32, i32, i32
  }
  func.func @transform_8(%arg0: i32, %arg1: i32) -> (i32, i32, i32) {
    %c0_i32 = arith.constant 0 : i32
    %c0_i32_0 = arith.constant 0 : i32
    %c0_i32_1 = arith.constant 0 : i32
    return %arg0, %c0_i32, %c0_i32_0 : i32, i32, i32
  }
  func.func @transform_9(%arg0: i32, %arg1: i32) -> (i32, i32, i32) {
    %c0_i32 = arith.constant 0 : i32
    %c0_i32_0 = arith.constant 0 : i32
    return %arg0, %c0_i32, %arg1 : i32, i32, i32
  }
}

module attributes {stable_mosaic.version = 11 : i64} {
  func.func @_fused_mlp_kernel(%arg0: i32, %arg1: i32, %arg2: memref<1x3x384xf32, #tpu.memory_space<vmem>>, %arg3: memref<1x32x3xf32, #tpu.memory_space<vmem>>, %arg4: memref<1x32x1xf32, #tpu.memory_space<vmem>>, %arg5: memref<1x32x32xf32, #tpu.memory_space<vmem>>, %arg6: memref<1x32x1xf32, #tpu.memory_space<vmem>>, %arg7: memref<1x32x32xf32, #tpu.memory_space<vmem>>, %arg8: memref<1x32x1xf32, #tpu.memory_space<vmem>>, %arg9: memref<1x32x1xf32, #tpu.memory_space<vmem>>, %arg10: memref<1x1x1xf32, #tpu.memory_space<vmem>>, %arg11: memref<1x1x384xf32, #tpu.memory_space<vmem>>) attributes {dimension_semantics = [#tpu.dimension_semantics<parallel>, #tpu.dimension_semantics<parallel>], iteration_bounds = array<i64: 2, 1>, scalar_prefetch = 0 : i64, scratch_operands = 0 : i64, tpu.core_type = #tpu.core_type<tc>, window_params = [{transform_indices = @transform_0, window_bounds = array<i64: 1, 3, 384>}, {transform_indices = @transform_1, window_bounds = array<i64: 1, 32, 3>}, {transform_indices = @transform_2, window_bounds = array<i64: 1, 32, 1>}, {transform_indices = @transform_3, window_bounds = array<i64: 1, 32, 32>}, {transform_indices = @transform_4, window_bounds = array<i64: 1, 32, 1>}, {transform_indices = @transform_5, window_bounds = array<i64: 1, 32, 32>}, {transform_indices = @transform_6, window_bounds = array<i64: 1, 32, 1>}, {transform_indices = @transform_7, window_bounds = array<i64: 1, 32, 1>}, {transform_indices = @transform_8, window_bounds = array<i64: 1, 1, 1>}, {transform_indices = @transform_9, window_bounds = array<i64: 1, 1, 384>}]} {
    %c0 = arith.constant 0 : index
    %c0_0 = arith.constant 0 : index
    %c0_1 = arith.constant 0 : index
    %0 = vector.load %arg3[%c0, %c0_0, %c0_1] : memref<1x32x3xf32, #tpu.memory_space<vmem>>, vector<1x32x3xf32>
    %1 = vector.shape_cast %0 : vector<1x32x3xf32> to vector<32x3xf32>
    %c0_2 = arith.constant 0 : index
    %c0_3 = arith.constant 0 : index
    %c0_4 = arith.constant 0 : index
    %2 = vector.load %arg4[%c0_2, %c0_3, %c0_4] : memref<1x32x1xf32, #tpu.memory_space<vmem>>, vector<1x32x1xf32>
    %3 = vector.shape_cast %2 : vector<1x32x1xf32> to vector<32x1xf32>
    %c0_5 = arith.constant 0 : index
    %c0_6 = arith.constant 0 : index
    %c0_7 = arith.constant 0 : index
    %4 = vector.load %arg2[%c0_5, %c0_6, %c0_7] : memref<1x3x384xf32, #tpu.memory_space<vmem>>, vector<1x3x384xf32>
    %5 = vector.shape_cast %4 : vector<1x3x384xf32> to vector<3x384xf32>
    %6 = vector.extract_strided_slice %1 {offsets = [0, 0], sizes = [32, 1], strides = [1, 1]} : vector<32x3xf32> to vector<32x1xf32>
    %7 = vector.extract_strided_slice %5 {offsets = [0, 0], sizes = [1, 384], strides = [1, 1]} : vector<3x384xf32> to vector<1x384xf32>
    %8 = vector.broadcast %6 : vector<32x1xf32> to vector<32x384xf32>
    %9 = vector.broadcast %7 : vector<1x384xf32> to vector<32x384xf32>
    %10 = arith.mulf %8, %9 : vector<32x384xf32>
    %11 = vector.extract_strided_slice %1 {offsets = [0, 1], sizes = [32, 1], strides = [1, 1]} : vector<32x3xf32> to vector<32x1xf32>
    %12 = vector.extract_strided_slice %5 {offsets = [1, 0], sizes = [1, 384], strides = [1, 1]} : vector<3x384xf32> to vector<1x384xf32>
    %13 = vector.broadcast %11 : vector<32x1xf32> to vector<32x384xf32>
    %14 = vector.broadcast %12 : vector<1x384xf32> to vector<32x384xf32>
    %15 = arith.mulf %13, %14 : vector<32x384xf32>
    %16 = arith.addf %10, %15 : vector<32x384xf32>
    %17 = vector.extract_strided_slice %1 {offsets = [0, 2], sizes = [32, 1], strides = [1, 1]} : vector<32x3xf32> to vector<32x1xf32>
    %18 = vector.extract_strided_slice %5 {offsets = [2, 0], sizes = [1, 384], strides = [1, 1]} : vector<3x384xf32> to vector<1x384xf32>
    %19 = vector.broadcast %17 : vector<32x1xf32> to vector<32x384xf32>
    %20 = vector.broadcast %18 : vector<1x384xf32> to vector<32x384xf32>
    %21 = arith.mulf %19, %20 : vector<32x384xf32>
    %22 = arith.addf %16, %21 : vector<32x384xf32>
    %23 = vector.broadcast %3 : vector<32x1xf32> to vector<32x384xf32>
    %24 = arith.addf %22, %23 : vector<32x384xf32>
    %cst = arith.constant 2.000000e-01 : f32
    %25 = vector.broadcast %cst : f32 to vector<32x384xf32>
    %26 = arith.mulf %25, %24 : vector<32x384xf32>
    %27 = arith.maximumf %24, %26 : vector<32x384xf32>
    %c0_8 = arith.constant 0 : index
    %c0_9 = arith.constant 0 : index
    %c0_10 = arith.constant 0 : index
    %28 = vector.load %arg5[%c0_8, %c0_9, %c0_10] : memref<1x32x32xf32, #tpu.memory_space<vmem>>, vector<1x32x32xf32>
    %29 = vector.shape_cast %28 : vector<1x32x32xf32> to vector<32x32xf32>
    %c0_11 = arith.constant 0 : index
    %c0_12 = arith.constant 0 : index
    %c0_13 = arith.constant 0 : index
    %30 = vector.load %arg6[%c0_11, %c0_12, %c0_13] : memref<1x32x1xf32, #tpu.memory_space<vmem>>, vector<1x32x1xf32>
    %31 = vector.shape_cast %30 : vector<1x32x1xf32> to vector<32x1xf32>
    %cst_14 = arith.constant dense<0.000000e+00> : vector<32x384xf32>
    %32 = tpu.matmul %29, %27, %cst_14 {dimension_numbers = #tpu.dot_dimension_numbers<[1], [0], [0], [1], [0, 0, 1, 1], [], []>} : vector<32x32xf32>, vector<32x384xf32>, vector<32x384xf32> -> vector<32x384xf32>
    %33 = vector.broadcast %31 : vector<32x1xf32> to vector<32x384xf32>
    %34 = arith.addf %32, %33 : vector<32x384xf32>
    %cst_15 = arith.constant 2.000000e-01 : f32
    %35 = vector.broadcast %cst_15 : f32 to vector<32x384xf32>
    %36 = arith.mulf %35, %34 : vector<32x384xf32>
    %37 = arith.maximumf %34, %36 : vector<32x384xf32>
    %c0_16 = arith.constant 0 : index
    %c0_17 = arith.constant 0 : index
    %c0_18 = arith.constant 0 : index
    %38 = vector.load %arg7[%c0_16, %c0_17, %c0_18] : memref<1x32x32xf32, #tpu.memory_space<vmem>>, vector<1x32x32xf32>
    %39 = vector.shape_cast %38 : vector<1x32x32xf32> to vector<32x32xf32>
    %c0_19 = arith.constant 0 : index
    %c0_20 = arith.constant 0 : index
    %c0_21 = arith.constant 0 : index
    %40 = vector.load %arg8[%c0_19, %c0_20, %c0_21] : memref<1x32x1xf32, #tpu.memory_space<vmem>>, vector<1x32x1xf32>
    %41 = vector.shape_cast %40 : vector<1x32x1xf32> to vector<32x1xf32>
    %cst_22 = arith.constant dense<0.000000e+00> : vector<32x384xf32>
    %42 = tpu.matmul %39, %37, %cst_22 {dimension_numbers = #tpu.dot_dimension_numbers<[1], [0], [0], [1], [0, 0, 1, 1], [], []>} : vector<32x32xf32>, vector<32x384xf32>, vector<32x384xf32> -> vector<32x384xf32>
    %43 = vector.broadcast %41 : vector<32x1xf32> to vector<32x384xf32>
    %44 = arith.addf %42, %43 : vector<32x384xf32>
    %cst_23 = arith.constant 2.000000e-01 : f32
    %45 = vector.broadcast %cst_23 : f32 to vector<32x384xf32>
    %46 = arith.mulf %45, %44 : vector<32x384xf32>
    %47 = arith.maximumf %44, %46 : vector<32x384xf32>
    %c0_24 = arith.constant 0 : index
    %c0_25 = arith.constant 0 : index
    %c0_26 = arith.constant 0 : index
    %48 = vector.load %arg9[%c0_24, %c0_25, %c0_26] : memref<1x32x1xf32, #tpu.memory_space<vmem>>, vector<1x32x1xf32>
    %49 = vector.shape_cast %48 : vector<1x32x1xf32> to vector<32x1xf32>
    %c0_27 = arith.constant 0 : index
    %c0_28 = arith.constant 0 : index
    %c0_29 = arith.constant 0 : index
    %50 = vector.load %arg10[%c0_27, %c0_28, %c0_29] : memref<1x1x1xf32, #tpu.memory_space<vmem>>, vector<1x1x1xf32>
    %51 = vector.shape_cast %50 : vector<1x1x1xf32> to vector<1x1xf32>
    %52 = vector.broadcast %49 : vector<32x1xf32> to vector<32x384xf32>
    %53 = arith.mulf %52, %47 : vector<32x384xf32>
    %cst_30 = arith.constant dense<0.000000e+00> : vector<384xf32>
    %54 = vector.multi_reduction <add>, %53, %cst_30 [0] : vector<32x384xf32> to vector<384xf32>
    %55 = vector.shape_cast %54 : vector<384xf32> to vector<1x384xf32>
    %56 = vector.broadcast %51 : vector<1x1xf32> to vector<1x384xf32>
    %57 = arith.addf %55, %56 : vector<1x384xf32>
    %c0_31 = arith.constant 0 : index
    %c0_32 = arith.constant 0 : index
    %c0_33 = arith.constant 0 : index
    %58 = vector.load %arg11[%c0_31, %c0_32, %c0_33] : memref<1x1x384xf32, #tpu.memory_space<vmem>>, vector<1x1x384xf32>
    %59 = vector.shape_cast %58 : vector<1x1x384xf32> to vector<1x384xf32>
    %60 = vector.shape_cast %57 : vector<1x384xf32> to vector<1x1x384xf32>
    tpu.vector_store %arg11[%c0_31, %c0_32, %c0_33], %60 {strides = array<i32>} : memref<1x1x384xf32, #tpu.memory_space<vmem>>, vector<1x1x384xf32>,
    return
  }
  func.func @transform_0(%arg0: i32, %arg1: i32) -> (i32, i32, i32) {
    %c0_i32 = arith.constant 0 : i32
    %c0_i32_0 = arith.constant 0 : i32
    return %arg0, %c0_i32, %arg1 : i32, i32, i32
  }
  func.func @transform_1(%arg0: i32, %arg1: i32) -> (i32, i32, i32) {
    %c0_i32 = arith.constant 0 : i32
    %c0_i32_0 = arith.constant 0 : i32
    %c0_i32_1 = arith.constant 0 : i32
    return %arg0, %c0_i32, %c0_i32_0 : i32, i32, i32
  }
  func.func @transform_2(%arg0: i32, %arg1: i32) -> (i32, i32, i32) {
    %c0_i32 = arith.constant 0 : i32
    %c0_i32_0 = arith.constant 0 : i32
    %c0_i32_1 = arith.constant 0 : i32
    return %arg0, %c0_i32, %c0_i32_0 : i32, i32, i32
  }
  func.func @transform_3(%arg0: i32, %arg1: i32) -> (i32, i32, i32) {
    %c0_i32 = arith.constant 0 : i32
    %c0_i32_0 = arith.constant 0 : i32
    %c0_i32_1 = arith.constant 0 : i32
    return %arg0, %c0_i32, %c0_i32_0 : i32, i32, i32
  }
  func.func @transform_4(%arg0: i32, %arg1: i32) -> (i32, i32, i32) {
    %c0_i32 = arith.constant 0 : i32
    %c0_i32_0 = arith.constant 0 : i32
    %c0_i32_1 = arith.constant 0 : i32
    return %arg0, %c0_i32, %c0_i32_0 : i32, i32, i32
  }
  func.func @transform_5(%arg0: i32, %arg1: i32) -> (i32, i32, i32) {
    %c0_i32 = arith.constant 0 : i32
    %c0_i32_0 = arith.constant 0 : i32
    %c0_i32_1 = arith.constant 0 : i32
    return %arg0, %c0_i32, %c0_i32_0 : i32, i32, i32
  }
  func.func @transform_6(%arg0: i32, %arg1: i32) -> (i32, i32, i32) {
    %c0_i32 = arith.constant 0 : i32
    %c0_i32_0 = arith.constant 0 : i32
    %c0_i32_1 = arith.constant 0 : i32
    return %arg0, %c0_i32, %c0_i32_0 : i32, i32, i32
  }
  func.func @transform_7(%arg0: i32, %arg1: i32) -> (i32, i32, i32) {
    %c0_i32 = arith.constant 0 : i32
    %c0_i32_0 = arith.constant 0 : i32
    %c0_i32_1 = arith.constant 0 : i32
    return %arg0, %c0_i32, %c0_i32_0 : i32, i32, i32
  }
  func.func @transform_8(%arg0: i32, %arg1: i32) -> (i32, i32, i32) {
    %c0_i32 = arith.constant 0 : i32
    %c0_i32_0 = arith.constant 0 : i32
    %c0_i32_1 = arith.constant 0 : i32
    return %arg0, %c0_i32, %c0_i32_0 : i32, i32, i32
  }
  func.func @transform_9(%arg0: i32, %arg1: i32) -> (i32, i32, i32) {
    %c0_i32 = arith.constant 0 : i32
    %c0_i32_0 = arith.constant 0 : i32
    return %arg0, %c0_i32, %arg1 : i32, i32, i32
  }
}

</mosaic_0001>

<bundles_post_ra>
// kernel: tpu_custom_call.1
= control target key start
LH: loop header
LB: loop body
LE: loop exit
PB: predicated region body
PF: predicated region fallthrough
CT: control target
= control target key end

     0   :  { %14 = vsyncpa [#allocation3], 0  ;;  %s2648_s0 = inlined_call_operand.vmem [shape: f32[2,384,3], index: 0, kind: input, shape index: {}]   ;;  %s2649_s1 = inlined_call_operand.vmem [shape: f32[2,32,3], index: 1, kind: input, shape index: {}]   ;;  %s2650_s2 = inlined_call_operand.vmem [shape: f32[2,32,1], index: 2, kind: input, shape index: {}]   ;;  %s2651_s3 = inlined_call_operand.vmem [shape: f32[2,32,32], index: 3, kind: input, shape index: {}]   ;;  %s2652_s4 = inlined_call_operand.vmem [shape: f32[2,32,1], index: 4, kind: input, shape index: {}]   ;;  %s2653_s5 = inlined_call_operand.vmem [shape: f32[2,32,32], index: 5, kind: input, shape index: {}]   ;;  %s2654_s6 = inlined_call_operand.vmem [shape: f32[2,32,1], index: 6, kind: input, shape index: {}]   ;;  %s2655_s7 = inlined_call_operand.vmem [shape: f32[2,32,1], index: 7, kind: input, shape index: {}]   ;;  %s2656_s8 = inlined_call_operand.vmem [shape: f32[2,1,1], index: 8, kind: input, shape index: {}]   ;;  %s2657_s9 = inlined_call_operand.hbm [shape: f32[2,1,384], index: 9, kind: output, shape index: {}]  }
   0x1   :  { %16 = vsyncpa [#allocation3 + $0x1], 0  ;;  %s2311_s30 = smov 0   ;;  %s2313_s10 = smov 0  }
   0x2   :  { %s2315_s11 = smov 0   ;;  %s2317_s12 = smov 0  }
   0x3   :  { %s2319_s13 = smov 0   ;;  %s2321_s14 = smov 0  }
   0x4 LB: > { %s1742_s15 = sadd.s32 4294967295, %s2255_s14   ;;  %s1743_s16 = sadd.s32 4294967294, %s2255_s14   ;;  %s2255_s14 = sphi %s2321_s14, %s22_s14   ;;  %s2251_s13 = sphi %s2319_s13, %s2666_s13   ;;  %s2247_s12 = sphi %s2317_s12, %s2665_s12   ;;  %s2243_s11 = sphi %s2315_s11, %s2664_s11   ;;  %s2239_s10 = sphi %s2313_s10, %s2663_s10   ;;  %s2235_s30 = sphi %s2311_s30, %s2662_s30  }
   0x5   : > { %s34_s17 = sadd.s32 1, %s2251_s13  ;;  %s279_s18 = sadd.s32 1, %s2243_s11 }
   0x6   : > { %p36_p0 = scmp.ge.s32.totalorder %s34_s17, 2  ;;  %p289_p1 = scmp.ne.s32.totalorder %s2243_s11, %s2239_s10 }
   0x7   : > { %p290_p2 = scmp.eq.s32.totalorder %s1742_s15, 1  ;;  %p295_p3 = scmp.ne.s32.totalorder %s2239_s10, %s2235_s30 }
   0x8   : > { %s2668_s17 = smov (%p36_p0, %s34_s17), 0  ;;  %p296_p5 = scmp.eq.s32.totalorder %s1743_s16, 1 }
   0x9   : > { %p2351_p4 = por %p290_p2, %p289_p1  ;;  %s274_s20 = ssub.s32 %s2251_s13, %s2668_s17 }
   0xa   : > { %p1746_p6 = scmp.ge.s32.totalorder %s2255_s14, 1  ;;  %p277_p7 = scmp.eq.s32.totalorder %s274_s20, 0 }
   0xb   : > { %p2358_p8 = por %p296_p5, %p295_p3  ;;  %p389_p9 = scmp.lt.s32.totalorder %s2255_s14, 3 }
   0xc   : > { %s2364_s22 = scalar_select %p277_p7, %s2243_s11, %s279_s18  }
   0xd   : > { %p390_p10 = pnand %p1746_p6, %p389_p9 }
   0xe   : > { %p468_p11 = scmp.lt.s32.totalorder (!%p390_p10), %s2247_s12, 1  ;;  %v2257_v0 = vmov (!%p390_p10), 0   ;;  %vm592_vm0 = vcmask (!%p390_p10), 23552   ;;  %vm975_vm2 = vcmask (!%p390_p10), 261120  }
   0xf   : > { %393 = sbr.rel (%p390_p10) target bundleno = 840 (0x348), region = 56  ;;  %2175 = vset.pattern.permute.xlu0 (!%p390_p10), %v2257_v0  ;;  %2176 = vset.pattern.permute.xlu1 (!%p390_p10), %v2257_v0  ;;  %vm2387_vm1 = vmpackc.low (!%p390_p10), %vm592_vm0, %vm592_vm0 }
  0x16   : > { %s2368_s23 = scalar_select %p468_p11, %s2247_s12, 1 }
  0x18   : > { %s2115_s24 = smul.u32 384, %s2368_s23  ;;  %s2372_s25 = sshll.u32 %s2368_s23, 5 }
  0x19   : > { %s2378_s28 = scalar_lea.vmem %s2649_s1, %s2372_s25  ;;  %s496_s29 = scalar_lea.vmem %s2652_s4, %s2372_s25 }
  0x1a   : > { %s2383_s16 = scalar_lea.vmem %s2648_s0, %s2115_s24  ;;  %v2392_v2 = vld [vmem:[%s2378_s28] sm:$0xff]  ;;  %s486_s24 = scalar_lea.vmem %s2650_s2, %s2372_s25  ;;  %v952_v48 = vld [vmem:[%s496_s29 + $0x8] sm:$0xff]  ;;  %v953_v51 = vld [vmem:[%s496_s29 + $0x10] sm:$0xff] }
  0x1b   : > { %v540_v3 = vld [vmem:[%s2383_s16 + $0x80] sm:$0xff]  ;;  %v541_v4 = vld [vmem:[%s2383_s16 + $0x88] sm:$0xff]  ;;  %1876 = vmatprep.mubr.msk.f32.mxu0 %vm592_vm0, %v2392_v2  ;;  %1952 = vmatprep.mubr.msk.f32.mxu1 %vm592_vm0, %v2392_v2  ;;  %v542_v12 = vld [vmem:[%s2383_s16 + $0x90] sm:$0xff]  ;;  %s506_s20 = scalar_lea.vmem %s2654_s6, %s2372_s25  ;;  %s511_s27 = scalar_lea.vmem %s2655_s7, %s2372_s25 }
  0x1c   : > { %v556_v5 = vld [vmem:[%s2383_s16 + $0x100] sm:$0xff]  ;;  %v1986_v6 = vpack.c.bf16 %v541_v4, %v540_v3  ;;  %v557_v7 = vld [vmem:[%s2383_s16 + $0x108] sm:$0xff]  ;;  %v543_v13 = vld [vmem:[%s2383_s16 + $0x98] sm:$0xff]  ;;  %s514_s18 = scalar_lea.vmem %s2656_s8, %s2368_s23  ;;  %s2575_s26 = scalar_lea.vmem %s2653_s5, %s2372_s25 }
  0x1d   : > { %v524_v8 = vld [vmem:[%s2383_s16] sm:$0xff]  ;;  %v525_v9 = vld [vmem:[%s2383_s16 + $0x8] sm:$0xff]  ;;  %v2034_v10 = vpack.c.bf16 %v557_v7, %v556_v5  ;;  %v558_v14 = vld [vmem:[%s2383_s16 + $0x110] sm:$0xff]  ;;  %v1992_v15 = vpack.c.bf16 %v543_v13, %v542_v12 }
  0x1e   : > { %v1989_v11 = vpack.c.bf16 %v525_v9, %v524_v8  ;;  %1988 = vmatprep.subr.msk.bf16.mxu0 %vm2387_vm1, %v1986_v6  ;;  %v559_v16 = vld [vmem:[%s2383_s16 + $0x118] sm:$0xff]  ;;  %v526_v18 = vld [vmem:[%s2383_s16 + $0x10] sm:$0xff]  ;;  %v544_v20 = vld [vmem:[%s2383_s16 + $0xa0] sm:$0xff] }
  0x1f   : > { %2036 = vmatprep.subr.msk.bf16.mxu1 %vm2387_vm1, %v2034_v10  ;;  %v2040_v17 = vpack.c.bf16 %v559_v16, %v558_v14  ;;  %v527_v19 = vld [vmem:[%s2383_s16 + $0x18] sm:$0xff]  ;;  %v545_v21 = vld [vmem:[%s2383_s16 + $0xa8] sm:$0xff]  ;;  %v560_v22 = vld [vmem:[%s2383_s16 + $0x120] sm:$0xff] }
  0x20   : > { %1991 = vmatpush3.bf16.xpose.msk.msra.mxu0 %vm2387_vm1, %v1989_v11  ;;  %2039 = vmatpush3.bf16.xpose.msk.msra.mxu1 %vm2387_vm1, %v2034_v10  ;;  %v561_v23 = vld [vmem:[%s2383_s16 + $0x128] sm:$0xff]  ;;  %v1995_v24 = vpack.c.bf16 %v527_v19, %v526_v18  ;;  %v1998_v25 = vpack.c.bf16 %v545_v21, %v544_v20  ;;  %v528_v27 = vld [vmem:[%s2383_s16 + $0x20] sm:$0xff]  ;;  %v546_v29 = vld [vmem:[%s2383_s16 + $0xb0] sm:$0xff] }
  0x21   : > { %1994 = vmatprep.subr.msk.bf16.mxu0 %vm2387_vm1, %v1992_v15  ;;  %2042 = vmatprep.subr.msk.bf16.mxu1 %vm2387_vm1, %v2040_v17  ;;  %v2046_v26 = vpack.c.bf16 %v561_v23, %v560_v22  ;;  %v529_v28 = vld [vmem:[%s2383_s16 + $0x28] sm:$0xff]  ;;  %v547_v30 = vld [vmem:[%s2383_s16 + $0xb8] sm:$0xff]  ;;  %v562_v31 = vld [vmem:[%s2383_s16 + $0x130] sm:$0xff] }
  0x22   : > { %v563_v32 = vld [vmem:[%s2383_s16 + $0x138] sm:$0xff]  ;;  %v2001_v33 = vpack.c.bf16 %v529_v28, %v528_v27  ;;  %v520_v34 = vld [vmem:[%s486_s24] sm:$0xff]  ;;  %v2004_v35 = vpack.c.bf16 %v547_v30, %v546_v29  ;;  %v522_v36 = vld [vmem:[%s486_s24 + $0x10] sm:$0xff] }
  0x23   : > { %574 = vperm.xlu0 %2175, %v520_v34   ;;  %v2052_v37 = vpack.c.bf16 %v563_v32, %v562_v31  ;;  %584 = vperm.xlu1 %2176, %v522_v36   ;;  %v521_v38 = vld [vmem:[%s486_s24 + $0x8] sm:$0xff]  ;;  %v523_v39 = vld [vmem:[%s486_s24 + $0x18] sm:$0xff]  ;;  %v530_v40 = vld [vmem:[%s2383_s16 + $0x30] sm:$0xff] }
  0x24   : > { %v531_v41 = vld [vmem:[%s2383_s16 + $0x38] sm:$0xff]  ;;  %v548_v42 = vld [vmem:[%s2383_s16 + $0xc0] sm:$0xff]  ;;  %v549_v43 = vld [vmem:[%s2383_s16 + $0xc8] sm:$0xff] }
  0x25   : > { %v564_v44 = vld [vmem:[%s2383_s16 + $0x140] sm:$0xff]  ;;  %v565_v45 = vld [vmem:[%s2383_s16 + $0x148] sm:$0xff]  ;;  %v2007_v47 = vpack.c.bf16 %v531_v41, %v530_v40  ;;  %v2010_v49 = vpack.c.bf16 %v549_v43, %v548_v42  ;;  %v954_v52 = vld [vmem:[%s496_s29 + $0x18] sm:$0xff] }
  0x26   : > { %v951_v46 = vld [vmem:[%s496_s29] sm:$0xff]  ;;  %v2058_v50 = vpack.c.bf16 %v565_v45, %v564_v44  ;;  %v533_v54 = vld [vmem:[%s2383_s16 + $0x48] sm:$0xff]  ;;  %v550_v55 = vld [vmem:[%s2383_s16 + $0xd0] sm:$0xff]  ;;  %s2116_s29 = smul.u32 48, %s2247_s12  ;;  %s2260_s12 = smov [#allocation2]  }
  0x27   : > { %579 = vperm.xlu0 %2175, %v521_v38   ;;  %589 = vperm.xlu1 %2176, %v523_v39   ;;  %v532_v53 = vld [vmem:[%s2383_s16 + $0x40] sm:$0xff]  ;;  %v551_v56 = vld [vmem:[%s2383_s16 + $0xd8] sm:$0xff]  ;;  %v566_v57 = vld [vmem:[%s2383_s16 + $0x150] sm:$0xff] }
  0x28   : > { %1997 = vmatpush3.bf16.xpose.msk.msra.mxu0 %vm2387_vm1, %v1995_v24  ;;  %2045 = vmatpush3.bf16.xpose.msk.msra.mxu1 %vm2387_vm1, %v2040_v17  ;;  %v567_v58 = vld [vmem:[%s2383_s16 + $0x158] sm:$0xff]  ;;  %v1190_v59 = vld [vmem:[%s506_s20] sm:$0xff]  ;;  %v2013_v60 = vpack.c.bf16 %v533_v54, %v532_v53  ;;  %v1191_v61 = vld [vmem:[%s506_s20 + $0x8] sm:$0xff]  ;;  %v2016_v62 = vpack.c.bf16 %v551_v56, %v550_v55 }
  0x29   : > { %2000 = vmatprep.subr.msk.bf16.mxu0 %vm2387_vm1, %v1998_v25  ;;  %2048 = vmatprep.subr.msk.bf16.mxu1 %vm2387_vm1, %v2046_v26  ;;  %v2064_v63 = vpack.c.bf16 %v567_v58, %v566_v57  ;;  %v1192_v0 = vld [vmem:[%s506_s20 + $0x10] sm:$0xff]  ;;  %v1193_v3 = vld [vmem:[%s506_s20 + $0x18] sm:$0xff]  ;;  %v552_v6 = vld [vmem:[%s2383_s16 + $0xe0] sm:$0xff]  ;;  %s2548_s20 = scalar_lea.vmem %s2651_s3, %s2372_s25  ;;  %s464_s25 = sand.u32 1, %s2239_s10  }
  0x2a   : > { %v534_v4 = vld [vmem:[%s2383_s16 + $0x50] sm:$0xff]  ;;  %v535_v5 = vld [vmem:[%s2383_s16 + $0x58] sm:$0xff]  ;;  %v553_v7 = vld [vmem:[%s2383_s16 + $0xe8] sm:$0xff] }
  0x2b   : > { %957 = vperm.xlu0 %2175, %v951_v46   ;;  %962 = vperm.xlu1 %2176, %v952_v48   ;;  %v568_v8 = vld [vmem:[%s2383_s16 + $0x160] sm:$0xff]  ;;  %v569_v9 = vld [vmem:[%s2383_s16 + $0x168] sm:$0xff]  ;;  %v2019_v11 = vpack.c.bf16 %v535_v5, %v534_v4  ;;  %v2022_v13 = vpack.c.bf16 %v553_v7, %v552_v6  ;;  %v1426_v15 = vld [vmem:[%s511_s27 + $0x10] sm:$0xff] }
  0x2c   : > { %v1424_v10 = vld [vmem:[%s511_s27] sm:$0xff]  ;;  %v1425_v12 = vld [vmem:[%s511_s27 + $0x8] sm:$0xff]  ;;  %v2070_v14 = vpack.c.bf16 %v569_v9, %v568_v8  ;;  %v1427_v16 = vld [vmem:[%s511_s27 + $0x18] sm:$0xff]  ;;  %s2114_s27 = smul.u32 3, %s464_s25 }
  0x2d   : > { %v536_v17 = vld [vmem:[%s2383_s16 + $0x60] sm:$0xff]  ;;  %v537_v18 = vld [vmem:[%s2383_s16 + $0x68] sm:$0xff]  ;;  %v554_v19 = vld [vmem:[%s2383_s16 + $0xf0] sm:$0xff] }
  0x2e   : > { %v555_v20 = vld [vmem:[%s2383_s16 + $0xf8] sm:$0xff]  ;;  %v570_v21 = vld [vmem:[%s2383_s16 + $0x170] sm:$0xff]  ;;  %v1428_v23 = vld [vmem:[%s514_s18] sm:$0x1]  ;;  %v2025_v24 = vpack.c.bf16 %v537_v18, %v536_v17  ;;  %s466_s15 = scalar_lea.vmem [#allocation2], %s2114_s27 }
  0x2f   : > { %967 = vperm.xlu0 %2175, %v953_v51   ;;  %972 = vperm.xlu1 %2176, %v954_v52   ;;  %v571_v22 = vld [vmem:[%s2383_s16 + $0x178] sm:$0xff]  ;;  %v2028_v25 = vpack.c.bf16 %v555_v20, %v554_v19  ;;  %v538_v27 = vld [vmem:[%s2383_s16 + $0x70] sm:$0xff]  ;;  %v517_v30 = vld [vmem:[%s2378_s28 + $0x8] sm:$0xff]  ;;  %s1549_s18 = sshll.u32 %s466_s15, 4  ;;  %s2603_s18 = int_to_ptr.vmem [resolvable:$true] %s1549_s18 }
  0x30   : > { %2003 = vmatpush3.bf16.xpose.msk.msra.mxu0 %vm2387_vm1, %v2001_v33  ;;  %2051 = vmatpush3.bf16.xpose.msk.msra.mxu1 %vm2387_vm1, %v2046_v26  ;;  %v2076_v26 = vpack.c.bf16 %v571_v22, %v570_v21  ;;  %v539_v28 = vld [vmem:[%s2383_s16 + $0x78] sm:$0xff]  ;;  %v518_v31 = vld [vmem:[%s2378_s28 + $0x10] sm:$0xff]  ;;  %v2551_v1 = vld [vmem:[%s2548_s20] sm:$0xff]  ;;  %s2177_s24 = scalar_lea.vmem %s2603_s18, 48 }
  0x31   : > { %2006 = vmatprep.subr.msk.bf16.mxu0 %vm2387_vm1, %v2004_v35  ;;  %2054 = vmatprep.subr.msk.bf16.mxu1 %vm2387_vm1, %v2052_v37  ;;  %v2031_v29 = vpack.c.bf16 %v539_v28, %v538_v27  ;;  %v519_v32 = vld [vmem:[%s2378_s28 + $0x18] sm:$0xff]  ;;  %s1533_s28 = scalar_lea.sflag [#allocation3], %s464_s25  ;;  %p2178_p12 = scmp.ne.s32.totalorder %s2603_s18, %s2177_s24 }
  0x33   : > { %1196 = vperm.xlu0 %2175, %v1190_v59   ;;  %1201 = vperm.xlu1 %2176, %v1191_v61   ;;  %p2179_p13 = pnand %p2178_p12, %p2351_p4 }
  0x35   : > { %p2180_p0 = pneg %p2179_p13 }
  0x37   : > { %1206 = vperm.xlu0 %2175, %v1192_v0   ;;  %1211 = vperm.xlu1 %2176, %v1193_v3  }
  0x38   : > { %2009 = vmatpush3.bf16.xpose.msk.msra.mxu0 %vm2387_vm1, %v2007_v47  ;;  %2057 = vmatpush3.bf16.xpose.msk.msra.mxu1 %vm2387_vm1, %v2052_v37 }
  0x39   : > { %2012 = vmatprep.subr.msk.bf16.mxu0 %vm2387_vm1, %v2010_v49  ;;  %2060 = vmatprep.subr.msk.bf16.mxu1 %vm2387_vm1, %v2058_v50 }
  0x3b   : > { %1431 = vperm.xlu0 %2175, %v1424_v10   ;;  %1436 = vperm.xlu1 %2176, %v1425_v12  }
  0x3f   : > { %1441 = vperm.xlu0 %2175, %v1426_v15   ;;  %1446 = vperm.xlu1 %2176, %v1427_v16  }
  0x40   : > { %2015 = vmatpush3.bf16.xpose.msk.msra.mxu0 %vm2387_vm1, %v2013_v60  ;;  %2063 = vmatpush3.bf16.xpose.msk.msra.mxu1 %vm2387_vm1, %v2058_v50 }
  0x41   : > { %2018 = vmatprep.subr.msk.bf16.mxu0 %vm2387_vm1, %v2016_v62  ;;  %2066 = vmatprep.subr.msk.bf16.mxu1 %vm2387_vm1, %v2064_v63 }
  0x43   : > { %1490 = vperm.xlu0 %2175, %v1428_v23   ;;  %v948_v23 = vld [vmem:[%s2548_s20 + $0x8] sm:$0xff] }
  0x48   : > { %2021 = vmatpush3.bf16.xpose.msk.msra.mxu0 %vm2387_vm1, %v2019_v11  ;;  %2069 = vmatpush3.bf16.xpose.msk.msra.mxu1 %vm2387_vm1, %v2064_v63 }
  0x49   : > { %2024 = vmatprep.subr.msk.bf16.mxu0 %vm2387_vm1, %v2022_v13  ;;  %2072 = vmatprep.subr.msk.bf16.mxu1 %vm2387_vm1, %v2070_v14 }
  0x50   : > { %2027 = vmatpush3.bf16.xpose.msk.msra.mxu0 %vm2387_vm1, %v2025_v24  ;;  %2075 = vmatpush3.bf16.xpose.msk.msra.mxu1 %vm2387_vm1, %v2070_v14 }
  0x51   : > { %2030 = vmatprep.subr.msk.bf16.mxu0 %vm2387_vm1, %v2028_v25  ;;  %2078 = vmatprep.subr.msk.bf16.mxu1 %vm2387_vm1, %v2076_v26 }
  0x58   : > { %2033 = vmatpush3.bf16.xpose.msk.msra.mxu0 %vm2387_vm1, %v2031_v29  ;;  %2081 = vmatpush3.bf16.xpose.msk.msra.mxu1 %vm2387_vm1, %v2076_v26  ;;  %v949_v26 = vld [vmem:[%s2548_s20 + $0x10] sm:$0xff] }
  0x5f   : > { %1877 = vmatmul.mubr.msk.f32.vlgmr.msra.gmra.mrb[0].mxu0 %vm592_vm0, %v2392_v2  ;;  %1953 = vmatmul.mubr.msk.f32.vlgmr.msra.gmra.mrb[0].mxu1 %vm592_vm0, %v517_v30  ;;  %v2258_v2 = vmov 0.0  }
  0x60   : > { %1878 = vmatprep.mubr.msk.f32.mxu0 %vm592_vm0, %v517_v30  ;;  %1955 = vmatprep.mubr.msk.f32.mxu1 %vm592_vm0, %v518_v31 }
  0x63   : > { %1879 = vmatmul.mubr.msk.f32.gmra.mrb[2].mxu0 %vm592_vm0, %v517_v30  ;;  %1956 = vmatmul.mubr.msk.f32.gmra.mrb[2].mxu1 %vm592_vm0, %v519_v32 }
  0x64   : > { %1880 = vmatprep.mubr.msk.f32.mxu0 %vm592_vm0, %v518_v31  ;;  %1052 = vmatprep.mubr.f32.mxu1 %v2258_v2 }
  0x67   : > { %1881 = vmatmul.mubr.msk.f32.gmra.mrb[4].mxu0 %vm592_vm0, %v518_v31  ;;  %v950_v31 = vld [vmem:[%s2548_s20 + $0x18] sm:$0xff]  ;;  %s2601_s20 = scalar_lea.hbm %s2657_s9, %s2116_s29 }
  0x68   : > { %1882 = vmatprep.mubr.msk.f32.mxu0 %vm592_vm0, %v519_v32 }
  0x6b   : > { %1883 = vmatmul.mubr.msk.f32.gmra.mrb[6].mxu0 %vm592_vm0, %v519_v32  ;;  %v2578_v32 = vld [vmem:[%s2575_s26] sm:$0xff] }
  0x6c   : > { %1966 = vmatprep.mubr.msk.f32.mxu0 %vm975_vm2, %v2551_v1 }
  0xa2   : > { %v575_v33 = vpop.permute.xlu0 %574  ;;  %v585_v34 = vpop.permute.xlu1 %584 }
  0xa6   : > { %v580_v35 = vpop.permute.xlu0 %579  ;;  %v590_v44 = vpop.permute.xlu1 %589 }
 0x132   : > { %v815_v36 = vpop.f32.mrb[0].mxu0  ;;  %v1954_v38 = vpop.f32.mrb[0].mxu1 }
 0x133   : > { %v816_v37 = vadd.f32 %v815_v36, %v575_v33  ;;  %v817_v39 = vpop.f32.mrb[1].mxu0  ;;  %v910_v40 = vadd.f32 %v1954_v38, %v580_v35  ;;  %v904_v42 = vpop.f32.mrb[1].mxu1 }
 0x134   : > { %v818_v41 = vadd.f32 %v817_v39, %v575_v33  ;;  %v905_v43 = vadd.f32 %v904_v42, %v575_v33  ;;  %v958_v33 = vpop.permute.xlu0 %957 }
 0x135   : > { %v923_v45 = vmul.f32 0.2, %v816_v37  ;;  %v928_v46 = vmul.f32 0.2, %v910_v40 }
 0x136   : > { %v821_v47 = vpop.f32.mrb[2].mxu0  ;;  %v925_v48 = vmul.f32 0.2, %v905_v43  ;;  %v1957_v50 = vpop.f32.mrb[2].mxu1  ;;  %v924_v53 = vmul.f32 0.2, %v818_v41 }
 0x137   : > { %v822_v49 = vadd.f32 %v821_v47, %v580_v35  ;;  %v823_v51 = vpop.f32.mrb[3].mxu0  ;;  %v940_v52 = vmax.f32 %v910_v40, %v928_v46  ;;  %v920_v54 = vadd.f32 %v1957_v50, %v590_v44  ;;  %v914_v56 = vpop.f32.mrb[3].mxu1  ;;  %v935_v60 = vmax.f32 %v816_v37, %v923_v45 }
 0x138   : > { %v824_v55 = vadd.f32 %v823_v51, %v580_v35  ;;  %v937_v57 = vmax.f32 %v905_v43, %v925_v48  ;;  %v915_v59 = vadd.f32 %v914_v56, %v585_v34  ;;  %v936_v7 = vmax.f32 %v818_v41, %v924_v53  ;;  %v968_v42 = vpop.permute.xlu0 %967 }
 0x139   : > { %v926_v58 = vmul.f32 0.2, %v822_v49  ;;  %v934_v61 = vmul.f32 0.2, %v920_v54 }
 0x13a   : > { %v927_v62 = vmul.f32 0.2, %v824_v55  ;;  %v827_v63 = vpop.f32.mrb[4].mxu0  ;;  %v931_v3 = vmul.f32 0.2, %v915_v59  ;;  %v2090_v6 = vpack.c.bf16 %v940_v52, %v937_v57 }
 0x13b   : > { %v938_v0 = vmax.f32 %v822_v49, %v926_v58  ;;  %v828_v4 = vadd.f32 %v827_v63, %v585_v34  ;;  %v829_v5 = vpop.f32.mrb[5].mxu0  ;;  %v946_v8 = vmax.f32 %v920_v54, %v934_v61 }
 0x13c   : > { %v939_v9 = vmax.f32 %v824_v55, %v927_v62  ;;  %v830_v10 = vadd.f32 %v829_v5, %v585_v34  ;;  %v943_v12 = vmax.f32 %v915_v59, %v931_v3  ;;  %2091 = vmatprep.subr.bf16.mxu0 %v2090_v6  ;;  %v1187_v5 = vld [vmem:[%s2575_s26 + $0x8] sm:$0xff] }
 0x13d   : > { %v2084_v11 = vpack.c.bf16 %v938_v0, %v935_v60  ;;  %2093 = vmatpush3.bf16.msra.mxu0 %v2090_v6  ;;  %v929_v15 = vmul.f32 0.2, %v828_v4 }
 0x13e   : > { %v833_v13 = vpop.f32.mrb[6].mxu0  ;;  %v2082_v14 = vpack.c.bf16 %v939_v9, %v936_v7  ;;  %v2094_v18 = vpack.c.bf16 %v946_v8, %v943_v12  ;;  %v930_v19 = vmul.f32 0.2, %v830_v10 }
 0x13f   : > { %v834_v16 = vadd.f32 %v833_v13, %v590_v44  ;;  %v835_v17 = vpop.f32.mrb[7].mxu0  ;;  %v941_v24 = vmax.f32 %v828_v4, %v929_v15 }
 0x140   : > { %v836_v20 = vadd.f32 %v835_v17, %v590_v44  ;;  %2083 = vmatprep.subr.bf16.mxu1 %v2082_v14  ;;  %2095 = vmatprep.subr.bf16.mxu0 %v2094_v18  ;;  %v942_v27 = vmax.f32 %v830_v10, %v930_v19  ;;  %v1188_v10 = vld [vmem:[%s2575_s26 + $0x10] sm:$0xff]  ;;  %v1189_v17 = vld [vmem:[%s2575_s26 + $0x18] sm:$0xff]  ;;  %s2181_s26 = sshll.u32 %s2260_s12, 4  ;;  %s2182_s26 = int_to_ptr.vmem [resolvable:$false] %s2181_s26 }
 0x141   : > { %v932_v21 = vmul.f32 0.2, %v834_v16  ;;  %2085 = vmatpush1.bf16.msra.mxu1 %v2084_v11  ;;  %2097 = vmatpush3.bf16.msra.mxu0 %v2094_v18  ;;  %s2183_s27 = scalar_lea.vmem %s2182_s26, 96  ;;  %p2184_p1 = scmp.lt.s32.totalorder %s2603_s18, %s2182_s26 }
 0x142   : > { %v933_v22 = vmul.f32 0.2, %v836_v20  ;;  %p2185_p2 = scmp.lt.s32.totalorder %s2183_s27, %s2177_s24 }
 0x143   : > { %v944_v25 = vmax.f32 %v834_v16, %v932_v21 }
 0x144   : > { %v945_v28 = vmax.f32 %v836_v20, %v933_v22  ;;  %1967 = vmatmul.mubr.msk.f32.vlgmr.msra.gmra.mrb[8].mxu0 %vm975_vm2, %v948_v23  ;;  %p2186_p3 = por %p2185_p2, %p2184_p1 }
 0x145   : > { %v2088_v29 = vpack.c.bf16 %v944_v25, %v941_v24  ;;  %1969 = vmatprep.mubr.msk.f32.mxu0 %vm975_vm2, %v949_v26 }
 0x146   : > { %v2086_v30 = vpack.c.bf16 %v945_v28, %v942_v27  ;;  %p2187_p5 = pnand %p2186_p3, %p2180_p0 }
 0x148   : > { %2087 = vmatprep.subr.bf16.mxu1 %v2086_v30  ;;  %1970 = vmatmul.mubr.msk.f32.gmra.mrb[10].mxu0 %vm975_vm2, %v950_v31 }
 0x149   : > { %2089 = vmatpush1.bf16.msra.mxu1 %v2088_v29  ;;  %1290 = vmatprep.mubr.f32.mxu0 %v2258_v2 }
 0x14c   : > { %1818 = vmatmul.mubr.msk.f32.vlgmr.msra.gmra.mrb[4].mxu1 %vm975_vm2, %v2551_v1  ;;  %v963_v1 = vpop.permute.xlu1 %962 }
 0x14d   : > { %1058 = vmatprep.mubr.f32.mxu1 %v2258_v2 }
 0x150   : > { %1819 = vmatmul.mubr.msk.f32.gmra.mrb[6].mxu1 %vm975_vm2, %v948_v23  ;;  %v973_v39 = vpop.permute.xlu1 %972 }
 0x151   : > { %1064 = vmatprep.mubr.f32.mxu1 %v2258_v2 }
 0x154   : > { %1820 = vmatmul.mubr.msk.f32.gmra.mrb[8].mxu1 %vm975_vm2, %v949_v26 }
 0x155   : > { %1070 = vmatprep.mubr.f32.mxu1 %v2258_v2 }
 0x158   : > { %1821 = vmatmul.mubr.msk.f32.gmra.mrb[10].mxu1 %vm975_vm2, %v950_v31  ;;  %v1197_v31 = vpop.permute.xlu0 %1196 }
 0x159   : > { %1980 = vmatprep.mubr.msk.f32.mxu1 %vm975_vm2, %v2578_v32 }
 0x217   : > { %v1968_v34 = vpop.f32.mrb[8].mxu0 }
 0x218   : > { %v1149_v35 = vadd.f32 %v1968_v34, %v963_v1  ;;  %v1143_v36 = vpop.f32.mrb[9].mxu0 }
 0x219   : > { %v1144_v37 = vadd.f32 %v1143_v36, %v958_v33 }
 0x21a   : > { %v1167_v38 = vmul.f32 0.2, %v1149_v35 }
 0x21b   : > { %v1164_v40 = vmul.f32 0.2, %v1144_v37  ;;  %v1971_v41 = vpop.f32.mrb[10].mxu0 }
 0x21c   : > { %v1179_v43 = vmax.f32 %v1149_v35, %v1167_v38  ;;  %v1159_v44 = vadd.f32 %v1971_v41, %v973_v39  ;;  %v1153_v45 = vpop.f32.mrb[11].mxu0 }
 0x21d   : > { %v1176_v46 = vmax.f32 %v1144_v37, %v1164_v40  ;;  %v1154_v47 = vadd.f32 %v1153_v45, %v968_v42 }
 0x21e   : > { %v1173_v48 = vmul.f32 0.2, %v1159_v44 }
 0x21f   : > { %v1054_v49 = vpop.f32.mrb[4].mxu1  ;;  %v1170_v50 = vmul.f32 0.2, %v1154_v47  ;;  %v2106_v53 = vpack.c.bf16 %v1179_v43, %v1176_v46 }
 0x220   : > { %v1055_v51 = vadd.f32 %v1054_v49, %v958_v33  ;;  %v1056_v52 = vpop.f32.mrb[5].mxu1  ;;  %v1185_v54 = vmax.f32 %v1159_v44, %v1173_v48 }
 0x221   : > { %v1057_v55 = vadd.f32 %v1056_v52, %v958_v33  ;;  %v1182_v56 = vmax.f32 %v1154_v47, %v1170_v50  ;;  %2107 = vmatprep.subr.bf16.mxu1 %v2106_v53  ;;  %v1207_v33 = vpop.permute.xlu0 %1206 }
 0x222   : > { %2109 = vmatpush3.bf16.msra.mxu1 %v2106_v53  ;;  %v1162_v58 = vmul.f32 0.2, %v1055_v51 }
 0x223   : > { %v1060_v57 = vpop.f32.mrb[6].mxu1  ;;  %v2110_v61 = vpack.c.bf16 %v1185_v54, %v1182_v56  ;;  %v1163_v62 = vmul.f32 0.2, %v1057_v55 }
 0x224   : > { %v1061_v59 = vadd.f32 %v1060_v57, %v963_v1  ;;  %v1062_v60 = vpop.f32.mrb[7].mxu1  ;;  %v1174_v6 = vmax.f32 %v1055_v51, %v1162_v58 }
 0x225   : > { %v1063_v63 = vadd.f32 %v1062_v60, %v963_v1  ;;  %2111 = vmatprep.subr.bf16.mxu1 %v2110_v61  ;;  %v1175_v11 = vmax.f32 %v1057_v55, %v1163_v62  ;;  %v1202_v1 = vpop.permute.xlu1 %1201  ;;  %v1432_v41 = vpop.permute.xlu0 %1431 }
 0x226   : > { %v1165_v0 = vmul.f32 0.2, %v1061_v59  ;;  %2113 = vmatpush3.bf16.msra.mxu1 %v2110_v61 }
 0x227   : > { %v1166_v3 = vmul.f32 0.2, %v1063_v63  ;;  %v1066_v4 = vpop.f32.mrb[8].mxu1 }
 0x228   : > { %v1177_v7 = vmax.f32 %v1061_v59, %v1165_v0  ;;  %v1067_v8 = vadd.f32 %v1066_v4, %v968_v42  ;;  %v1068_v9 = vpop.f32.mrb[9].mxu1 }
 0x229   : > { %v1178_v12 = vmax.f32 %v1063_v63, %v1166_v3  ;;  %v1069_v13 = vadd.f32 %v1068_v9, %v968_v42  ;;  %1981 = vmatmul.mubr.msk.f32.vlgmr.msra.gmra.mrb[12].mxu1 %vm975_vm2, %v1187_v5  ;;  %v1212_v34 = vpop.permute.xlu1 %1211  ;;  %v1442_v54 = vpop.permute.xlu0 %1441 }
 0x22a   : > { %v2100_v14 = vpack.c.bf16 %v1177_v7, %v1174_v6  ;;  %1983 = vmatprep.mubr.msk.f32.mxu1 %vm975_vm2, %v1188_v10  ;;  %v1168_v18 = vmul.f32 0.2, %v1067_v8 }
 0x22b   : > { %v1072_v15 = vpop.f32.mrb[10].mxu1  ;;  %v2098_v16 = vpack.c.bf16 %v1178_v12, %v1175_v11  ;;  %v1169_v21 = vmul.f32 0.2, %v1069_v13 }
 0x22c   : > { %v1073_v19 = vadd.f32 %v1072_v15, %v973_v39  ;;  %v1074_v20 = vpop.f32.mrb[11].mxu1  ;;  %v1180_v25 = vmax.f32 %v1067_v8, %v1168_v18 }
 0x22d   : > { %v1075_v22 = vadd.f32 %v1074_v20, %v973_v39  ;;  %2099 = vmatprep.subr.bf16.mxu0 %v2098_v16  ;;  %1984 = vmatmul.mubr.msk.f32.gmra.mrb[14].mxu1 %vm975_vm2, %v1189_v17  ;;  %v1181_v27 = vmax.f32 %v1069_v13, %v1169_v21  ;;  %v1437_v45 = vpop.permute.xlu1 %1436 }
 0x22e   : > { %v1171_v23 = vmul.f32 0.2, %v1073_v19  ;;  %2101 = vmatpush1.bf16.msra.mxu0 %v2100_v14 }
 0x22f   : > { %v1172_v24 = vmul.f32 0.2, %v1075_v22 }
 0x230   : > { %v1183_v26 = vmax.f32 %v1073_v19, %v1171_v23 }
 0x231   : > { %v1184_v28 = vmax.f32 %v1075_v22, %v1172_v24  ;;  %v1447_v56 = vpop.permute.xlu1 %1446 }
 0x232   : > { %v2104_v29 = vpack.c.bf16 %v1183_v26, %v1180_v25 }
 0x233   : > { %v2102_v30 = vpack.c.bf16 %v1184_v28, %v1181_v27 }
 0x235   : > { %2103 = vmatprep.subr.bf16.mxu0 %v2102_v30 }
 0x236   : > { %2105 = vmatpush1.bf16.msra.mxu0 %v2104_v29 }
 0x239   : > { %1826 = vmatmul.mubr.msk.f32.vlgmr.msra.gmra.mrb[12].mxu0 %vm975_vm2, %v2578_v32 }
 0x23a   : > { %1296 = vmatprep.mubr.f32.mxu0 %v2258_v2 }
 0x23d   : > { %1827 = vmatmul.mubr.msk.f32.gmra.mrb[14].mxu0 %vm975_vm2, %v1187_v5 }
 0x23e   : > { %1302 = vmatprep.mubr.f32.mxu0 %v2258_v2 }
 0x241   : > { %1828 = vmatmul.mubr.msk.f32.gmra.mrb[16].mxu0 %vm975_vm2, %v1188_v10 }
 0x242   : > { %1308 = vmatprep.mubr.f32.mxu0 %v2258_v2 }
 0x245   : > { %1829 = vmatmul.mubr.msk.f32.gmra.mrb[18].mxu0 %vm975_vm2, %v1189_v17 }
 0x2fc   : > { %v1982_v35 = vpop.f32.mrb[12].mxu1 }
 0x2fd   : > { %v1387_v36 = vadd.f32 %v1982_v35, %v1202_v1  ;;  %v1381_v37 = vpop.f32.mrb[13].mxu1 }
 0x2fe   : > { %v1382_v32 = vadd.f32 %v1381_v37, %v1197_v31 }
 0x2ff   : > { %v1405_v38 = vmul.f32 0.2, %v1387_v36 }
 0x300   : > { %v1402_v39 = vmul.f32 0.2, %v1382_v32  ;;  %v1985_v40 = vpop.f32.mrb[14].mxu1 }
 0x301   : > { %v1417_v42 = vmax.f32 %v1387_v36, %v1405_v38  ;;  %v1397_v43 = vadd.f32 %v1985_v40, %v1212_v34  ;;  %v1391_v44 = vpop.f32.mrb[15].mxu1 }
 0x302   : > { %v1414_v46 = vmax.f32 %v1382_v32, %v1402_v39  ;;  %v1392_v2 = vadd.f32 %v1391_v44, %v1207_v33 }
 0x303   : > { %v1454_v47 = vmul.f32 %v1437_v45, %v1417_v42  ;;  %v1411_v48 = vmul.f32 0.2, %v1397_v43 }
 0x304   : > { %v1451_v49 = vmul.f32 %v1432_v41, %v1414_v46  ;;  %v1408_v50 = vmul.f32 0.2, %v1392_v2 }
 0x305   : > { %v1423_v52 = vmax.f32 %v1397_v43, %v1411_v48 }
 0x306   : > { %v1479_v51 = vadd.f32 %v1454_v47, %v1451_v49  ;;  %v1420_v53 = vmax.f32 %v1392_v2, %v1408_v50 }
 0x307   : > { %v1460_v57 = vmul.f32 %v1447_v56, %v1423_v52 }
 0x308   : > { %v1457_v55 = vmul.f32 %v1442_v54, %v1420_v53  ;;  %v2259_v53 = vmov 1966171168  }
 0x30a   : > { %v1480_v58 = vadd.f32 %v1479_v51, %v1457_v55 }
 0x30c   : > { %v1292_v59 = vpop.f32.mrb[12].mxu0  ;;  %v1481_v60 = vadd.f32 %v1480_v58, %v1460_v57 }
 0x30d   : > { %v1293_v61 = vadd.f32 %v1292_v59, %v1197_v31  ;;  %v1294_v62 = vpop.f32.mrb[13].mxu0 }
 0x30e   : > { %v1295_v63 = vadd.f32 %v1294_v62, %v1197_v31  ;;  %v1482_v21 = vrot.slane %v1481_v60, 4 }
 0x30f   : > { %v1400_v0 = vmul.f32 0.2, %v1293_v61 }
 0x310   : > { %v1401_v3 = vmul.f32 0.2, %v1295_v63  ;;  %v1298_v4 = vpop.f32.mrb[14].mxu0  ;;  %v1483_v37 = vadd.f32 %v1482_v21, %v1481_v60  ;;  %v1491_v60 = vpop.permute.xlu0 %1490 }
 0x311   : > { %v1299_v5 = vadd.f32 %v1298_v4, %v1202_v1  ;;  %v1300_v6 = vpop.f32.mrb[15].mxu0  ;;  %v1412_v8 = vmax.f32 %v1293_v61, %v1400_v0 }
 0x312   : > { %v1301_v7 = vadd.f32 %v1300_v6, %v1202_v1  ;;  %v1413_v10 = vmax.f32 %v1295_v63, %v1401_v3  ;;  %v1484_v43 = vrot.slane %v1483_v37, 2 }
 0x313   : > { %v1403_v9 = vmul.f32 0.2, %v1299_v5  ;;  %v1449_v18 = vmul.f32 %v1432_v41, %v1412_v8 }
 0x314   : > { %v1404_v11 = vmul.f32 0.2, %v1301_v7  ;;  %v1304_v12 = vpop.f32.mrb[16].mxu0  ;;  %v1450_v22 = vmul.f32 %v1432_v41, %v1413_v10  ;;  %v1485_v48 = vadd.f32 %v1484_v43, %v1483_v37 }
 0x315   : > { %v1415_v13 = vmax.f32 %v1299_v5, %v1403_v9  ;;  %v1305_v14 = vadd.f32 %v1304_v12, %v1207_v33  ;;  %v1306_v15 = vpop.f32.mrb[17].mxu0 }
 0x316   : > { %v1416_v16 = vmax.f32 %v1301_v7, %v1404_v11  ;;  %v1307_v17 = vadd.f32 %v1306_v15, %v1207_v33  ;;  %v1486_v55 = vrot.slane %v1485_v48, 1 }
 0x317   : > { %v1452_v19 = vmul.f32 %v1437_v45, %v1415_v13  ;;  %v1406_v20 = vmul.f32 0.2, %v1305_v14 }
 0x318   : > { %v1453_v23 = vmul.f32 %v1437_v45, %v1416_v16  ;;  %v1407_v24 = vmul.f32 0.2, %v1307_v17  ;;  %v1310_v25 = vpop.f32.mrb[18].mxu0  ;;  %v1493_v45 = vlaneseq  ;;  %v1487_v63 = vadd.f32 %v1486_v55, %v1485_v48 }
 0x319   : > { %v1461_v26 = vadd.f32 %v1452_v19, %v1449_v18  ;;  %v1418_v27 = vmax.f32 %v1305_v14, %v1406_v20  ;;  %v1311_v28 = vadd.f32 %v1310_v25, %v1212_v34  ;;  %v1312_v29 = vpop.f32.mrb[19].mxu0 }
 0x31a   : > { %v1470_v30 = vadd.f32 %v1453_v23, %v1450_v22  ;;  %v1419_v31 = vmax.f32 %v1307_v17, %v1407_v24  ;;  %v1313_v1 = vadd.f32 %v1312_v29, %v1212_v34  ;;  %v1494_v34 = vshrl.u32 %v1493_v45, 7 }
 0x31b   : > { %v1455_v35 = vmul.f32 %v1442_v54, %v1418_v27  ;;  %v1409_v36 = vmul.f32 0.2, %v1311_v28  ;;  %vm1529_vm3 = vcmp.lt.s32.totalorder %v1493_v45, 384 }
 0x31c   : > { %v1456_v32 = vmul.f32 %v1442_v54, %v1419_v31  ;;  %v1410_v33 = vmul.f32 0.2, %v1313_v1  ;;  %v1505_v54 = vunpack.c.l.s4 %v2259_v53  ;;  %v1495_v58 = vsub.s32 0, %v1494_v34 }
 0x31d   : > { %v1462_v38 = vadd.f32 %v1461_v26, %v1455_v35  ;;  %v1421_v39 = vmax.f32 %v1311_v28, %v1409_v36 }
 0x31e   : > { %v1471_v40 = vadd.f32 %v1470_v30, %v1456_v32  ;;  %v1422_v42 = vmax.f32 %v1313_v1, %v1410_v33  ;;  %v1506_v62 = vunpack.c.0.s8 %v1505_v54  ;;  %v1496_v3 = vrot.slane %v1491_v60, %v1495_v58 }
 0x31f   : > { %v1458_v41 = vmul.f32 %v1447_v56, %v1421_v39 }
 0x320   : > { %v1459_v44 = vmul.f32 %v1447_v56, %v1422_v42  ;;  %v1509_v7 = vsub.s32 %v1506_v62, %v1494_v34  ;;  %v1499_v9 = vadd.f32 %v1496_v3, %v1487_v63 }
 0x321   : > { %v1463_v46 = vadd.f32 %v1462_v38, %v1458_v41 }
 0x322   : > { %v1472_v2 = vadd.f32 %v1471_v40, %v1459_v44  ;;  %v1517_v12 = vrot.slane %v1499_v9, %v1509_v7 }
 0x323   : > { %v1464_v47 = vrot.slane %v1463_v46, 4 }
 0x324   : > { %v1473_v49 = vrot.slane %v1472_v2, 4 }
 0x325   : > { %v1465_v50 = vadd.f32 %v1464_v47, %v1463_v46 }
 0x326   : > { %v1474_v51 = vadd.f32 %v1473_v49, %v1472_v2 }
 0x327   : > { %v1466_v52 = vrot.slane %v1465_v50, 2 }
 0x328   : > { %v1475_v57 = vrot.slane %v1474_v51, 2 }
 0x329   : > { %v1467_v59 = vadd.f32 %v1466_v52, %v1465_v50 }
 0x32a   : > { %v1476_v61 = vadd.f32 %v1475_v57, %v1474_v51 }
 0x32b   : > { %v1468_v56 = vrot.slane %v1467_v59, 1 }
 0x32c   : > { %v1477_v0 = vrot.slane %v1476_v61, 1 }
 0x32d   : > { %v1469_v4 = vadd.f32 %v1468_v56, %v1467_v59 }
 0x32e   : > { %v1478_v5 = vadd.f32 %v1477_v0, %v1476_v61 }
 0x32f   : > { %v1497_v6 = vadd.f32 %v1496_v3, %v1469_v4 }
 0x330   : > { %v1498_v8 = vadd.f32 %v1496_v3, %v1478_v5 }
 0x332   : > { %v1503_v10 = vcombine.low %v1497_v6, %v1498_v8 }
 0x334   : > { %v1510_v11 = vrot.slane %v1503_v10, %v1509_v7 }
 0x336   : > { %v1518_v13 = vcombine.low %v1510_v11, %v1517_v12 }
 0x338   : > { %v1525_v14 = vrot.slane %v1518_v13, %v1509_v7 }
 0x33a   : > { %1531 = vst.msk [vmem:[%s466_s15] sm:$0x7] %vm1529_vm3, %v1525_v14 }
 0x33b   : > { %2190 = shalt.err (!%p2187_p5)
}
 0x33c   : > { %s2191_s25 = scalar_lea.hbm %s2601_s20, 48  ;;  %s2195_s23 = scalar_lea.hbm %s2657_s9, 96 }
 0x33d   : > { %p2192_p6 = scmp.ne.s32.totalorder %s2601_s20, %s2191_s25  ;;  %p2196_p10 = scmp.lt.u32.totalorder %s2601_s20, %s2657_s9 }
 0x33e   : > { %p2197_p11 = scmp.lt.u32.totalorder %s2195_s23, %s2191_s25  ;;  %p2199_p13 = scmp.lt.u32.totalorder %s2191_s25, %s2601_s20 }
 0x33f   : > { %p2193_p7 = pnand %p2192_p6, %p2351_p4 }
 0x340   : > { %p2198_p12 = por %p2197_p11, %p2196_p10 }
 0x341   : > { %p2194_p9 = pneg %p2193_p7 }
 0x342   : > { %p2200_p0 = por %p2199_p13, %p2198_p12 }
 0x344   : > { %p2201_p1 = pnand %p2200_p0, %p2194_p9 }
 0x346   : > { %2204 = shalt.err (!%p2201_p1)
}
 0x347   : > { %2117 = dma.vmem_to_hbm [thread:$0]  (%p2351_p4), %s2603_s18, 48, %s2601_s20, %s1533_s28  }
 0x348 PF: > { %p2123_p2 = scmp.ge.s32.totalorder %s2255_s14, 2  ;;  %s1561_s24 = sand.u32 1, %s2235_s30  }
 0x349   : > { %s1562_s26 = scalar_lea.sflag [#allocation3], %s1561_s24 }
 0x34a   : > { %p2120_p3 = pnand %p2123_p2, %p2358_p8 }
 0x34c   : > { %2230 = dma.done.wait (!%p2120_p3), %s1562_s26, 48  }
 0x34d   : > { %2232 = vsyncadd (!%p2120_p3), %s1562_s26, 4294967248  ;;  %s22_s14 = sadd.s32 1, %s2255_s14   ;;  %s2662_s30 = smov %s2239_s10 }
 0x34e   : > { %p19_p5 = scmp.ge.s32.totalorder %s22_s14, 4   ;;  %s2663_s10 = smov %s2243_s11 }
 0x34f   : > { %s2664_s11 = smov %s2364_s22  ;;  %s2665_s12 = smov %s2251_s13 }
 0x350   : > { %s2666_s13 = smov %s2668_s17  ;;  %21 = sbr.rel (!%p19_p5) target bundleno = 4 (0x4), region = 115 }
 0x357   :  { %1567 = vsyncpa [#allocation3], 1 }
 0x358   :  { %1569 = vsyncpa [#allocation3 + $0x1], 1 }

// kernel: tpu_custom_call.1
= control target key start
LH: loop header
LB: loop body
LE: loop exit
PB: predicated region body
PF: predicated region fallthrough
CT: control target
= control target key end

     0   :  { %14 = vsyncpa [#allocation3], 0  ;;  %s2624_s0 = inlined_call_operand.vmem [shape: f32[2,384,3], index: 0, kind: input, shape index: {}]   ;;  %s2625_s1 = inlined_call_operand.vmem [shape: f32[2,32,3], index: 1, kind: input, shape index: {}]   ;;  %s2626_s2 = inlined_call_operand.vmem [shape: f32[2,32,1], index: 2, kind: input, shape index: {}]   ;;  %s2627_s3 = inlined_call_operand.vmem [shape: f32[2,32,32], index: 3, kind: input, shape index: {}]   ;;  %s2628_s4 = inlined_call_operand.vmem [shape: f32[2,32,1], index: 4, kind: input, shape index: {}]   ;;  %s2629_s5 = inlined_call_operand.vmem [shape: f32[2,32,32], index: 5, kind: input, shape index: {}]   ;;  %s2630_s6 = inlined_call_operand.vmem [shape: f32[2,32,1], index: 6, kind: input, shape index: {}]   ;;  %s2631_s7 = inlined_call_operand.vmem [shape: f32[2,32,1], index: 7, kind: input, shape index: {}]   ;;  %s2632_s8 = inlined_call_operand.vmem [shape: f32[2,1,1], index: 8, kind: input, shape index: {}]   ;;  %s2633_s9 = inlined_call_operand.hbm [shape: f32[2,1,384], index: 9, kind: output, shape index: {}]  }
   0x1   :  { %16 = vsyncpa [#allocation3 + $0x1], 0  ;;  %s2287_s30 = smov 0   ;;  %s2289_s10 = smov 0  }
   0x2   :  { %s2291_s11 = smov 0   ;;  %s2293_s12 = smov 0  }
   0x3   :  { %s2295_s13 = smov 0   ;;  %s2297_s14 = smov 0  }
   0x4 LB: > { %s1718_s15 = sadd.s32 4294967295, %s2231_s14   ;;  %s1719_s16 = sadd.s32 4294967294, %s2231_s14   ;;  %s2231_s14 = sphi %s2297_s14, %s22_s14   ;;  %s2227_s13 = sphi %s2295_s13, %s2642_s13   ;;  %s2223_s12 = sphi %s2293_s12, %s2641_s12   ;;  %s2219_s11 = sphi %s2291_s11, %s2640_s11   ;;  %s2215_s10 = sphi %s2289_s10, %s2639_s10   ;;  %s2211_s30 = sphi %s2287_s30, %s2638_s30  }
   0x5   : > { %s34_s17 = sadd.s32 1, %s2227_s13  ;;  %s279_s18 = sadd.s32 1, %s2219_s11 }
   0x6   : > { %p36_p0 = scmp.ge.s32.totalorder %s34_s17, 2  ;;  %p289_p1 = scmp.ne.s32.totalorder %s2219_s11, %s2215_s10 }
   0x7   : > { %p290_p2 = scmp.eq.s32.totalorder %s1718_s15, 1  ;;  %p295_p3 = scmp.ne.s32.totalorder %s2215_s10, %s2211_s30 }
   0x8   : > { %s2644_s17 = smov (%p36_p0, %s34_s17), 0  ;;  %p296_p5 = scmp.eq.s32.totalorder %s1719_s16, 1 }
   0x9   : > { %p2327_p4 = por %p290_p2, %p289_p1  ;;  %s274_s20 = ssub.s32 %s2227_s13, %s2644_s17 }
   0xa   : > { %p1722_p6 = scmp.ge.s32.totalorder %s2231_s14, 1  ;;  %p277_p7 = scmp.eq.s32.totalorder %s274_s20, 0 }
   0xb   : > { %p2334_p8 = por %p296_p5, %p295_p3  ;;  %p389_p9 = scmp.lt.s32.totalorder %s2231_s14, 3 }
   0xc   : > { %s2340_s22 = scalar_select %p277_p7, %s2219_s11, %s279_s18  }
   0xd   : > { %p390_p10 = pnand %p1722_p6, %p389_p9 }
   0xe   : > { %p468_p11 = scmp.lt.s32.totalorder (!%p390_p10), %s2223_s12, 1  ;;  %v2233_v0 = vmov (!%p390_p10), 0   ;;  %vm592_vm0 = vcmask (!%p390_p10), 23552   ;;  %vm975_vm2 = vcmask (!%p390_p10), 261120  }
   0xf   : > { %393 = sbr.rel (%p390_p10) target bundleno = 840 (0x348), region = 56  ;;  %2151 = vset.pattern.permute.xlu0 (!%p390_p10), %v2233_v0  ;;  %2152 = vset.pattern.permute.xlu1 (!%p390_p10), %v2233_v0  ;;  %vm2363_vm1 = vmpackc.low (!%p390_p10), %vm592_vm0, %vm592_vm0 }
  0x16   : > { %s2344_s23 = scalar_select %p468_p11, %s2223_s12, 1 }
  0x18   : > { %s2091_s24 = smul.u32 384, %s2344_s23  ;;  %s2348_s25 = sshll.u32 %s2344_s23, 5 }
  0x19   : > { %s2354_s28 = scalar_lea.vmem %s2625_s1, %s2348_s25  ;;  %s496_s29 = scalar_lea.vmem %s2628_s4, %s2348_s25 }
  0x1a   : > { %s2359_s16 = scalar_lea.vmem %s2624_s0, %s2091_s24  ;;  %v2368_v2 = vld [vmem:[%s2354_s28] sm:$0xff]  ;;  %s486_s24 = scalar_lea.vmem %s2626_s2, %s2348_s25  ;;  %v952_v48 = vld [vmem:[%s496_s29 + $0x8] sm:$0xff]  ;;  %v953_v51 = vld [vmem:[%s496_s29 + $0x10] sm:$0xff] }
  0x1b   : > { %v540_v3 = vld [vmem:[%s2359_s16 + $0x80] sm:$0xff]  ;;  %v541_v4 = vld [vmem:[%s2359_s16 + $0x88] sm:$0xff]  ;;  %1852 = vmatprep.mubr.msk.f32.mxu0 %vm592_vm0, %v2368_v2  ;;  %1928 = vmatprep.mubr.msk.f32.mxu1 %vm592_vm0, %v2368_v2  ;;  %v542_v12 = vld [vmem:[%s2359_s16 + $0x90] sm:$0xff]  ;;  %s506_s20 = scalar_lea.vmem %s2630_s6, %s2348_s25  ;;  %s511_s27 = scalar_lea.vmem %s2631_s7, %s2348_s25 }
  0x1c   : > { %v556_v5 = vld [vmem:[%s2359_s16 + $0x100] sm:$0xff]  ;;  %v1962_v6 = vpack.c.bf16 %v541_v4, %v540_v3  ;;  %v557_v7 = vld [vmem:[%s2359_s16 + $0x108] sm:$0xff]  ;;  %v543_v13 = vld [vmem:[%s2359_s16 + $0x98] sm:$0xff]  ;;  %s514_s18 = scalar_lea.vmem %s2632_s8, %s2344_s23  ;;  %s2551_s26 = scalar_lea.vmem %s2629_s5, %s2348_s25 }
  0x1d   : > { %v524_v8 = vld [vmem:[%s2359_s16] sm:$0xff]  ;;  %v525_v9 = vld [vmem:[%s2359_s16 + $0x8] sm:$0xff]  ;;  %v2010_v10 = vpack.c.bf16 %v557_v7, %v556_v5  ;;  %v558_v14 = vld [vmem:[%s2359_s16 + $0x110] sm:$0xff]  ;;  %v1968_v15 = vpack.c.bf16 %v543_v13, %v542_v12 }
  0x1e   : > { %v1965_v11 = vpack.c.bf16 %v525_v9, %v524_v8  ;;  %1964 = vmatprep.subr.msk.bf16.mxu0 %vm2363_vm1, %v1962_v6  ;;  %v559_v16 = vld [vmem:[%s2359_s16 + $0x118] sm:$0xff]  ;;  %v526_v18 = vld [vmem:[%s2359_s16 + $0x10] sm:$0xff]  ;;  %v544_v20 = vld [vmem:[%s2359_s16 + $0xa0] sm:$0xff] }
  0x1f   : > { %2012 = vmatprep.subr.msk.bf16.mxu1 %vm2363_vm1, %v2010_v10  ;;  %v2016_v17 = vpack.c.bf16 %v559_v16, %v558_v14  ;;  %v527_v19 = vld [vmem:[%s2359_s16 + $0x18] sm:$0xff]  ;;  %v545_v21 = vld [vmem:[%s2359_s16 + $0xa8] sm:$0xff]  ;;  %v560_v22 = vld [vmem:[%s2359_s16 + $0x120] sm:$0xff] }
  0x20   : > { %1967 = vmatpush3.bf16.xpose.msk.msra.mxu0 %vm2363_vm1, %v1965_v11  ;;  %2015 = vmatpush3.bf16.xpose.msk.msra.mxu1 %vm2363_vm1, %v2010_v10  ;;  %v561_v23 = vld [vmem:[%s2359_s16 + $0x128] sm:$0xff]  ;;  %v1971_v24 = vpack.c.bf16 %v527_v19, %v526_v18  ;;  %v1974_v25 = vpack.c.bf16 %v545_v21, %v544_v20  ;;  %v528_v27 = vld [vmem:[%s2359_s16 + $0x20] sm:$0xff]  ;;  %v546_v29 = vld [vmem:[%s2359_s16 + $0xb0] sm:$0xff] }
  0x21   : > { %1970 = vmatprep.subr.msk.bf16.mxu0 %vm2363_vm1, %v1968_v15  ;;  %2018 = vmatprep.subr.msk.bf16.mxu1 %vm2363_vm1, %v2016_v17  ;;  %v2022_v26 = vpack.c.bf16 %v561_v23, %v560_v22  ;;  %v529_v28 = vld [vmem:[%s2359_s16 + $0x28] sm:$0xff]  ;;  %v547_v30 = vld [vmem:[%s2359_s16 + $0xb8] sm:$0xff]  ;;  %v562_v31 = vld [vmem:[%s2359_s16 + $0x130] sm:$0xff] }
  0x22   : > { %v563_v32 = vld [vmem:[%s2359_s16 + $0x138] sm:$0xff]  ;;  %v1977_v33 = vpack.c.bf16 %v529_v28, %v528_v27  ;;  %v520_v34 = vld [vmem:[%s486_s24] sm:$0xff]  ;;  %v1980_v35 = vpack.c.bf16 %v547_v30, %v546_v29  ;;  %v522_v36 = vld [vmem:[%s486_s24 + $0x10] sm:$0xff] }
  0x23   : > { %574 = vperm.xlu0 %2151, %v520_v34   ;;  %v2028_v37 = vpack.c.bf16 %v563_v32, %v562_v31  ;;  %584 = vperm.xlu1 %2152, %v522_v36   ;;  %v521_v38 = vld [vmem:[%s486_s24 + $0x8] sm:$0xff]  ;;  %v523_v39 = vld [vmem:[%s486_s24 + $0x18] sm:$0xff]  ;;  %v530_v40 = vld [vmem:[%s2359_s16 + $0x30] sm:$0xff] }
  0x24   : > { %v531_v41 = vld [vmem:[%s2359_s16 + $0x38] sm:$0xff]  ;;  %v548_v42 = vld [vmem:[%s2359_s16 + $0xc0] sm:$0xff]  ;;  %v549_v43 = vld [vmem:[%s2359_s16 + $0xc8] sm:$0xff] }
  0x25   : > { %v564_v44 = vld [vmem:[%s2359_s16 + $0x140] sm:$0xff]  ;;  %v565_v45 = vld [vmem:[%s2359_s16 + $0x148] sm:$0xff]  ;;  %v1983_v47 = vpack.c.bf16 %v531_v41, %v530_v40  ;;  %v1986_v49 = vpack.c.bf16 %v549_v43, %v548_v42  ;;  %v954_v52 = vld [vmem:[%s496_s29 + $0x18] sm:$0xff] }
  0x26   : > { %v951_v46 = vld [vmem:[%s496_s29] sm:$0xff]  ;;  %v2034_v50 = vpack.c.bf16 %v565_v45, %v564_v44  ;;  %v533_v54 = vld [vmem:[%s2359_s16 + $0x48] sm:$0xff]  ;;  %v550_v55 = vld [vmem:[%s2359_s16 + $0xd0] sm:$0xff]  ;;  %s2092_s29 = smul.u32 48, %s2223_s12  ;;  %s2236_s12 = smov [#allocation2]  }
  0x27   : > { %579 = vperm.xlu0 %2151, %v521_v38   ;;  %589 = vperm.xlu1 %2152, %v523_v39   ;;  %v532_v53 = vld [vmem:[%s2359_s16 + $0x40] sm:$0xff]  ;;  %v551_v56 = vld [vmem:[%s2359_s16 + $0xd8] sm:$0xff]  ;;  %v566_v57 = vld [vmem:[%s2359_s16 + $0x150] sm:$0xff] }
  0x28   : > { %1973 = vmatpush3.bf16.xpose.msk.msra.mxu0 %vm2363_vm1, %v1971_v24  ;;  %2021 = vmatpush3.bf16.xpose.msk.msra.mxu1 %vm2363_vm1, %v2016_v17  ;;  %v567_v58 = vld [vmem:[%s2359_s16 + $0x158] sm:$0xff]  ;;  %v1190_v59 = vld [vmem:[%s506_s20] sm:$0xff]  ;;  %v1989_v60 = vpack.c.bf16 %v533_v54, %v532_v53  ;;  %v1191_v61 = vld [vmem:[%s506_s20 + $0x8] sm:$0xff]  ;;  %v1992_v62 = vpack.c.bf16 %v551_v56, %v550_v55 }
  0x29   : > { %1976 = vmatprep.subr.msk.bf16.mxu0 %vm2363_vm1, %v1974_v25  ;;  %2024 = vmatprep.subr.msk.bf16.mxu1 %vm2363_vm1, %v2022_v26  ;;  %v2040_v63 = vpack.c.bf16 %v567_v58, %v566_v57  ;;  %v1192_v0 = vld [vmem:[%s506_s20 + $0x10] sm:$0xff]  ;;  %v1193_v3 = vld [vmem:[%s506_s20 + $0x18] sm:$0xff]  ;;  %v552_v6 = vld [vmem:[%s2359_s16 + $0xe0] sm:$0xff]  ;;  %s2524_s20 = scalar_lea.vmem %s2627_s3, %s2348_s25  ;;  %s464_s25 = sand.u32 1, %s2215_s10  }
  0x2a   : > { %v534_v4 = vld [vmem:[%s2359_s16 + $0x50] sm:$0xff]  ;;  %v535_v5 = vld [vmem:[%s2359_s16 + $0x58] sm:$0xff]  ;;  %v553_v7 = vld [vmem:[%s2359_s16 + $0xe8] sm:$0xff] }
  0x2b   : > { %957 = vperm.xlu0 %2151, %v951_v46   ;;  %962 = vperm.xlu1 %2152, %v952_v48   ;;  %v568_v8 = vld [vmem:[%s2359_s16 + $0x160] sm:$0xff]  ;;  %v569_v9 = vld [vmem:[%s2359_s16 + $0x168] sm:$0xff]  ;;  %v1995_v11 = vpack.c.bf16 %v535_v5, %v534_v4  ;;  %v1998_v13 = vpack.c.bf16 %v553_v7, %v552_v6  ;;  %v1426_v15 = vld [vmem:[%s511_s27 + $0x10] sm:$0xff] }
  0x2c   : > { %v1424_v10 = vld [vmem:[%s511_s27] sm:$0xff]  ;;  %v1425_v12 = vld [vmem:[%s511_s27 + $0x8] sm:$0xff]  ;;  %v2046_v14 = vpack.c.bf16 %v569_v9, %v568_v8  ;;  %v1427_v16 = vld [vmem:[%s511_s27 + $0x18] sm:$0xff]  ;;  %s2090_s27 = smul.u32 3, %s464_s25 }
  0x2d   : > { %v536_v17 = vld [vmem:[%s2359_s16 + $0x60] sm:$0xff]  ;;  %v537_v18 = vld [vmem:[%s2359_s16 + $0x68] sm:$0xff]  ;;  %v554_v19 = vld [vmem:[%s2359_s16 + $0xf0] sm:$0xff] }
  0x2e   : > { %v555_v20 = vld [vmem:[%s2359_s16 + $0xf8] sm:$0xff]  ;;  %v570_v21 = vld [vmem:[%s2359_s16 + $0x170] sm:$0xff]  ;;  %v1428_v23 = vld [vmem:[%s514_s18] sm:$0x1]  ;;  %v2001_v24 = vpack.c.bf16 %v537_v18, %v536_v17  ;;  %s466_s15 = scalar_lea.vmem [#allocation2], %s2090_s27 }
  0x2f   : > { %967 = vperm.xlu0 %2151, %v953_v51   ;;  %972 = vperm.xlu1 %2152, %v954_v52   ;;  %v571_v22 = vld [vmem:[%s2359_s16 + $0x178] sm:$0xff]  ;;  %v2004_v25 = vpack.c.bf16 %v555_v20, %v554_v19  ;;  %v538_v27 = vld [vmem:[%s2359_s16 + $0x70] sm:$0xff]  ;;  %v517_v30 = vld [vmem:[%s2354_s28 + $0x8] sm:$0xff]  ;;  %s1549_s18 = sshll.u32 %s466_s15, 4  ;;  %s2579_s18 = int_to_ptr.vmem [resolvable:$true] %s1549_s18 }
  0x30   : > { %1979 = vmatpush3.bf16.xpose.msk.msra.mxu0 %vm2363_vm1, %v1977_v33  ;;  %2027 = vmatpush3.bf16.xpose.msk.msra.mxu1 %vm2363_vm1, %v2022_v26  ;;  %v2052_v26 = vpack.c.bf16 %v571_v22, %v570_v21  ;;  %v539_v28 = vld [vmem:[%s2359_s16 + $0x78] sm:$0xff]  ;;  %v518_v31 = vld [vmem:[%s2354_s28 + $0x10] sm:$0xff]  ;;  %v2527_v1 = vld [vmem:[%s2524_s20] sm:$0xff]  ;;  %s2153_s24 = scalar_lea.vmem %s2579_s18, 48 }
  0x31   : > { %1982 = vmatprep.subr.msk.bf16.mxu0 %vm2363_vm1, %v1980_v35  ;;  %2030 = vmatprep.subr.msk.bf16.mxu1 %vm2363_vm1, %v2028_v37  ;;  %v2007_v29 = vpack.c.bf16 %v539_v28, %v538_v27  ;;  %v519_v32 = vld [vmem:[%s2354_s28 + $0x18] sm:$0xff]  ;;  %s1533_s28 = scalar_lea.sflag [#allocation3], %s464_s25  ;;  %p2154_p12 = scmp.ne.s32.totalorder %s2579_s18, %s2153_s24 }
  0x33   : > { %1196 = vperm.xlu0 %2151, %v1190_v59   ;;  %1201 = vperm.xlu1 %2152, %v1191_v61   ;;  %p2155_p13 = pnand %p2154_p12, %p2327_p4 }
  0x35   : > { %p2156_p0 = pneg %p2155_p13 }
  0x37   : > { %1206 = vperm.xlu0 %2151, %v1192_v0   ;;  %1211 = vperm.xlu1 %2152, %v1193_v3  }
  0x38   : > { %1985 = vmatpush3.bf16.xpose.msk.msra.mxu0 %vm2363_vm1, %v1983_v47  ;;  %2033 = vmatpush3.bf16.xpose.msk.msra.mxu1 %vm2363_vm1, %v2028_v37 }
  0x39   : > { %1988 = vmatprep.subr.msk.bf16.mxu0 %vm2363_vm1, %v1986_v49  ;;  %2036 = vmatprep.subr.msk.bf16.mxu1 %vm2363_vm1, %v2034_v50 }
  0x3b   : > { %1431 = vperm.xlu0 %2151, %v1424_v10   ;;  %1436 = vperm.xlu1 %2152, %v1425_v12  }
  0x3f   : > { %1441 = vperm.xlu0 %2151, %v1426_v15   ;;  %1446 = vperm.xlu1 %2152, %v1427_v16  }
  0x40   : > { %1991 = vmatpush3.bf16.xpose.msk.msra.mxu0 %vm2363_vm1, %v1989_v60  ;;  %2039 = vmatpush3.bf16.xpose.msk.msra.mxu1 %vm2363_vm1, %v2034_v50 }
  0x41   : > { %1994 = vmatprep.subr.msk.bf16.mxu0 %vm2363_vm1, %v1992_v62  ;;  %2042 = vmatprep.subr.msk.bf16.mxu1 %vm2363_vm1, %v2040_v63 }
  0x43   : > { %1490 = vperm.xlu0 %2151, %v1428_v23   ;;  %v948_v23 = vld [vmem:[%s2524_s20 + $0x8] sm:$0xff] }
  0x48   : > { %1997 = vmatpush3.bf16.xpose.msk.msra.mxu0 %vm2363_vm1, %v1995_v11  ;;  %2045 = vmatpush3.bf16.xpose.msk.msra.mxu1 %vm2363_vm1, %v2040_v63 }
  0x49   : > { %2000 = vmatprep.subr.msk.bf16.mxu0 %vm2363_vm1, %v1998_v13  ;;  %2048 = vmatprep.subr.msk.bf16.mxu1 %vm2363_vm1, %v2046_v14 }
  0x50   : > { %2003 = vmatpush3.bf16.xpose.msk.msra.mxu0 %vm2363_vm1, %v2001_v24  ;;  %2051 = vmatpush3.bf16.xpose.msk.msra.mxu1 %vm2363_vm1, %v2046_v14 }
  0x51   : > { %2006 = vmatprep.subr.msk.bf16.mxu0 %vm2363_vm1, %v2004_v25  ;;  %2054 = vmatprep.subr.msk.bf16.mxu1 %vm2363_vm1, %v2052_v26 }
  0x58   : > { %2009 = vmatpush3.bf16.xpose.msk.msra.mxu0 %vm2363_vm1, %v2007_v29  ;;  %2057 = vmatpush3.bf16.xpose.msk.msra.mxu1 %vm2363_vm1, %v2052_v26  ;;  %v949_v26 = vld [vmem:[%s2524_s20 + $0x10] sm:$0xff] }
  0x5f   : > { %1853 = vmatmul.mubr.msk.f32.vlgmr.msra.gmra.mrb[0].mxu0 %vm592_vm0, %v2368_v2  ;;  %1929 = vmatmul.mubr.msk.f32.vlgmr.msra.gmra.mrb[0].mxu1 %vm592_vm0, %v517_v30  ;;  %v2234_v2 = vmov 0.0  }
  0x60   : > { %1854 = vmatprep.mubr.msk.f32.mxu0 %vm592_vm0, %v517_v30  ;;  %1931 = vmatprep.mubr.msk.f32.mxu1 %vm592_vm0, %v518_v31 }
  0x63   : > { %1855 = vmatmul.mubr.msk.f32.gmra.mrb[2].mxu0 %vm592_vm0, %v517_v30  ;;  %1932 = vmatmul.mubr.msk.f32.gmra.mrb[2].mxu1 %vm592_vm0, %v519_v32 }
  0x64   : > { %1856 = vmatprep.mubr.msk.f32.mxu0 %vm592_vm0, %v518_v31  ;;  %1052 = vmatprep.mubr.f32.mxu1 %v2234_v2 }
  0x67   : > { %1857 = vmatmul.mubr.msk.f32.gmra.mrb[4].mxu0 %vm592_vm0, %v518_v31  ;;  %v950_v31 = vld [vmem:[%s2524_s20 + $0x18] sm:$0xff]  ;;  %s2577_s20 = scalar_lea.hbm %s2633_s9, %s2092_s29 }
  0x68   : > { %1858 = vmatprep.mubr.msk.f32.mxu0 %vm592_vm0, %v519_v32 }
  0x6b   : > { %1859 = vmatmul.mubr.msk.f32.gmra.mrb[6].mxu0 %vm592_vm0, %v519_v32  ;;  %v2554_v32 = vld [vmem:[%s2551_s26] sm:$0xff] }
  0x6c   : > { %1942 = vmatprep.mubr.msk.f32.mxu0 %vm975_vm2, %v2527_v1 }
  0xa2   : > { %v575_v33 = vpop.permute.xlu0 %574  ;;  %v585_v34 = vpop.permute.xlu1 %584 }
  0xa6   : > { %v580_v35 = vpop.permute.xlu0 %579  ;;  %v590_v44 = vpop.permute.xlu1 %589 }
 0x132   : > { %v815_v36 = vpop.f32.mrb[0].mxu0  ;;  %v1930_v38 = vpop.f32.mrb[0].mxu1 }
 0x133   : > { %v816_v37 = vadd.f32 %v815_v36, %v575_v33  ;;  %v817_v39 = vpop.f32.mrb[1].mxu0  ;;  %v910_v40 = vadd.f32 %v1930_v38, %v580_v35  ;;  %v904_v42 = vpop.f32.mrb[1].mxu1 }
 0x134   : > { %v818_v41 = vadd.f32 %v817_v39, %v575_v33  ;;  %v905_v43 = vadd.f32 %v904_v42, %v575_v33  ;;  %v958_v33 = vpop.permute.xlu0 %957 }
 0x135   : > { %v923_v45 = vmul.f32 0.2, %v816_v37  ;;  %v928_v46 = vmul.f32 0.2, %v910_v40 }
 0x136   : > { %v821_v47 = vpop.f32.mrb[2].mxu0  ;;  %v925_v48 = vmul.f32 0.2, %v905_v43  ;;  %v1933_v50 = vpop.f32.mrb[2].mxu1  ;;  %v924_v53 = vmul.f32 0.2, %v818_v41 }
 0x137   : > { %v822_v49 = vadd.f32 %v821_v47, %v580_v35  ;;  %v823_v51 = vpop.f32.mrb[3].mxu0  ;;  %v940_v52 = vmax.f32 %v910_v40, %v928_v46  ;;  %v920_v54 = vadd.f32 %v1933_v50, %v590_v44  ;;  %v914_v56 = vpop.f32.mrb[3].mxu1  ;;  %v935_v60 = vmax.f32 %v816_v37, %v923_v45 }
 0x138   : > { %v824_v55 = vadd.f32 %v823_v51, %v580_v35  ;;  %v937_v57 = vmax.f32 %v905_v43, %v925_v48  ;;  %v915_v59 = vadd.f32 %v914_v56, %v585_v34  ;;  %v936_v7 = vmax.f32 %v818_v41, %v924_v53  ;;  %v968_v42 = vpop.permute.xlu0 %967 }
 0x139   : > { %v926_v58 = vmul.f32 0.2, %v822_v49  ;;  %v934_v61 = vmul.f32 0.2, %v920_v54 }
 0x13a   : > { %v927_v62 = vmul.f32 0.2, %v824_v55  ;;  %v827_v63 = vpop.f32.mrb[4].mxu0  ;;  %v931_v3 = vmul.f32 0.2, %v915_v59  ;;  %v2066_v6 = vpack.c.bf16 %v940_v52, %v937_v57 }
 0x13b   : > { %v938_v0 = vmax.f32 %v822_v49, %v926_v58  ;;  %v828_v4 = vadd.f32 %v827_v63, %v585_v34  ;;  %v829_v5 = vpop.f32.mrb[5].mxu0  ;;  %v946_v8 = vmax.f32 %v920_v54, %v934_v61 }
 0x13c   : > { %v939_v9 = vmax.f32 %v824_v55, %v927_v62  ;;  %v830_v10 = vadd.f32 %v829_v5, %v585_v34  ;;  %v943_v12 = vmax.f32 %v915_v59, %v931_v3  ;;  %2067 = vmatprep.subr.bf16.mxu0 %v2066_v6  ;;  %v1187_v5 = vld [vmem:[%s2551_s26 + $0x8] sm:$0xff] }
 0x13d   : > { %v2060_v11 = vpack.c.bf16 %v938_v0, %v935_v60  ;;  %2069 = vmatpush3.bf16.msra.mxu0 %v2066_v6  ;;  %v929_v15 = vmul.f32 0.2, %v828_v4 }
 0x13e   : > { %v833_v13 = vpop.f32.mrb[6].mxu0  ;;  %v2058_v14 = vpack.c.bf16 %v939_v9, %v936_v7  ;;  %v2070_v18 = vpack.c.bf16 %v946_v8, %v943_v12  ;;  %v930_v19 = vmul.f32 0.2, %v830_v10 }
 0x13f   : > { %v834_v16 = vadd.f32 %v833_v13, %v590_v44  ;;  %v835_v17 = vpop.f32.mrb[7].mxu0  ;;  %v941_v24 = vmax.f32 %v828_v4, %v929_v15 }
 0x140   : > { %v836_v20 = vadd.f32 %v835_v17, %v590_v44  ;;  %2059 = vmatprep.subr.bf16.mxu1 %v2058_v14  ;;  %2071 = vmatprep.subr.bf16.mxu0 %v2070_v18  ;;  %v942_v27 = vmax.f32 %v830_v10, %v930_v19  ;;  %v1188_v10 = vld [vmem:[%s2551_s26 + $0x10] sm:$0xff]  ;;  %v1189_v17 = vld [vmem:[%s2551_s26 + $0x18] sm:$0xff]  ;;  %s2157_s26 = sshll.u32 %s2236_s12, 4  ;;  %s2158_s26 = int_to_ptr.vmem [resolvable:$false] %s2157_s26 }
 0x141   : > { %v932_v21 = vmul.f32 0.2, %v834_v16  ;;  %2061 = vmatpush1.bf16.msra.mxu1 %v2060_v11  ;;  %2073 = vmatpush3.bf16.msra.mxu0 %v2070_v18  ;;  %s2159_s27 = scalar_lea.vmem %s2158_s26, 96  ;;  %p2160_p1 = scmp.lt.s32.totalorder %s2579_s18, %s2158_s26 }
 0x142   : > { %v933_v22 = vmul.f32 0.2, %v836_v20  ;;  %p2161_p2 = scmp.lt.s32.totalorder %s2159_s27, %s2153_s24 }
 0x143   : > { %v944_v25 = vmax.f32 %v834_v16, %v932_v21 }
 0x144   : > { %v945_v28 = vmax.f32 %v836_v20, %v933_v22  ;;  %1943 = vmatmul.mubr.msk.f32.vlgmr.msra.gmra.mrb[8].mxu0 %vm975_vm2, %v948_v23  ;;  %p2162_p3 = por %p2161_p2, %p2160_p1 }
 0x145   : > { %v2064_v29 = vpack.c.bf16 %v944_v25, %v941_v24  ;;  %1945 = vmatprep.mubr.msk.f32.mxu0 %vm975_vm2, %v949_v26 }
 0x146   : > { %v2062_v30 = vpack.c.bf16 %v945_v28, %v942_v27  ;;  %p2163_p5 = pnand %p2162_p3, %p2156_p0 }
 0x148   : > { %2063 = vmatprep.subr.bf16.mxu1 %v2062_v30  ;;  %1946 = vmatmul.mubr.msk.f32.gmra.mrb[10].mxu0 %vm975_vm2, %v950_v31 }
 0x149   : > { %2065 = vmatpush1.bf16.msra.mxu1 %v2064_v29  ;;  %1290 = vmatprep.mubr.f32.mxu0 %v2234_v2 }
 0x14c   : > { %1794 = vmatmul.mubr.msk.f32.vlgmr.msra.gmra.mrb[4].mxu1 %vm975_vm2, %v2527_v1  ;;  %v963_v1 = vpop.permute.xlu1 %962 }
 0x14d   : > { %1058 = vmatprep.mubr.f32.mxu1 %v2234_v2 }
 0x150   : > { %1795 = vmatmul.mubr.msk.f32.gmra.mrb[6].mxu1 %vm975_vm2, %v948_v23  ;;  %v973_v39 = vpop.permute.xlu1 %972 }
 0x151   : > { %1064 = vmatprep.mubr.f32.mxu1 %v2234_v2 }
 0x154   : > { %1796 = vmatmul.mubr.msk.f32.gmra.mrb[8].mxu1 %vm975_vm2, %v949_v26 }
 0x155   : > { %1070 = vmatprep.mubr.f32.mxu1 %v2234_v2 }
 0x158   : > { %1797 = vmatmul.mubr.msk.f32.gmra.mrb[10].mxu1 %vm975_vm2, %v950_v31  ;;  %v1197_v31 = vpop.permute.xlu0 %1196 }
 0x159   : > { %1956 = vmatprep.mubr.msk.f32.mxu1 %vm975_vm2, %v2554_v32 }
 0x217   : > { %v1944_v34 = vpop.f32.mrb[8].mxu0 }
 0x218   : > { %v1149_v35 = vadd.f32 %v1944_v34, %v963_v1  ;;  %v1143_v36 = vpop.f32.mrb[9].mxu0 }
 0x219   : > { %v1144_v37 = vadd.f32 %v1143_v36, %v958_v33 }
 0x21a   : > { %v1167_v38 = vmul.f32 0.2, %v1149_v35 }
 0x21b   : > { %v1164_v40 = vmul.f32 0.2, %v1144_v37  ;;  %v1947_v41 = vpop.f32.mrb[10].mxu0 }
 0x21c   : > { %v1179_v43 = vmax.f32 %v1149_v35, %v1167_v38  ;;  %v1159_v44 = vadd.f32 %v1947_v41, %v973_v39  ;;  %v1153_v45 = vpop.f32.mrb[11].mxu0 }
 0x21d   : > { %v1176_v46 = vmax.f32 %v1144_v37, %v1164_v40  ;;  %v1154_v47 = vadd.f32 %v1153_v45, %v968_v42 }
 0x21e   : > { %v1173_v48 = vmul.f32 0.2, %v1159_v44 }
 0x21f   : > { %v1054_v49 = vpop.f32.mrb[4].mxu1  ;;  %v1170_v50 = vmul.f32 0.2, %v1154_v47  ;;  %v2082_v53 = vpack.c.bf16 %v1179_v43, %v1176_v46 }
 0x220   : > { %v1055_v51 = vadd.f32 %v1054_v49, %v958_v33  ;;  %v1056_v52 = vpop.f32.mrb[5].mxu1  ;;  %v1185_v54 = vmax.f32 %v1159_v44, %v1173_v48 }
 0x221   : > { %v1057_v55 = vadd.f32 %v1056_v52, %v958_v33  ;;  %v1182_v56 = vmax.f32 %v1154_v47, %v1170_v50  ;;  %2083 = vmatprep.subr.bf16.mxu1 %v2082_v53  ;;  %v1207_v33 = vpop.permute.xlu0 %1206 }
 0x222   : > { %2085 = vmatpush3.bf16.msra.mxu1 %v2082_v53  ;;  %v1162_v58 = vmul.f32 0.2, %v1055_v51 }
 0x223   : > { %v1060_v57 = vpop.f32.mrb[6].mxu1  ;;  %v2086_v61 = vpack.c.bf16 %v1185_v54, %v1182_v56  ;;  %v1163_v62 = vmul.f32 0.2, %v1057_v55 }
 0x224   : > { %v1061_v59 = vadd.f32 %v1060_v57, %v963_v1  ;;  %v1062_v60 = vpop.f32.mrb[7].mxu1  ;;  %v1174_v6 = vmax.f32 %v1055_v51, %v1162_v58 }
 0x225   : > { %v1063_v63 = vadd.f32 %v1062_v60, %v963_v1  ;;  %2087 = vmatprep.subr.bf16.mxu1 %v2086_v61  ;;  %v1175_v11 = vmax.f32 %v1057_v55, %v1163_v62  ;;  %v1202_v1 = vpop.permute.xlu1 %1201  ;;  %v1432_v41 = vpop.permute.xlu0 %1431 }
 0x226   : > { %v1165_v0 = vmul.f32 0.2, %v1061_v59  ;;  %2089 = vmatpush3.bf16.msra.mxu1 %v2086_v61 }
 0x227   : > { %v1166_v3 = vmul.f32 0.2, %v1063_v63  ;;  %v1066_v4 = vpop.f32.mrb[8].mxu1 }
 0x228   : > { %v1177_v7 = vmax.f32 %v1061_v59, %v1165_v0  ;;  %v1067_v8 = vadd.f32 %v1066_v4, %v968_v42  ;;  %v1068_v9 = vpop.f32.mrb[9].mxu1 }
 0x229   : > { %v1178_v12 = vmax.f32 %v1063_v63, %v1166_v3  ;;  %v1069_v13 = vadd.f32 %v1068_v9, %v968_v42  ;;  %1957 = vmatmul.mubr.msk.f32.vlgmr.msra.gmra.mrb[12].mxu1 %vm975_vm2, %v1187_v5  ;;  %v1212_v34 = vpop.permute.xlu1 %1211  ;;  %v1442_v54 = vpop.permute.xlu0 %1441 }
 0x22a   : > { %v2076_v14 = vpack.c.bf16 %v1177_v7, %v1174_v6  ;;  %1959 = vmatprep.mubr.msk.f32.mxu1 %vm975_vm2, %v1188_v10  ;;  %v1168_v18 = vmul.f32 0.2, %v1067_v8 }
 0x22b   : > { %v1072_v15 = vpop.f32.mrb[10].mxu1  ;;  %v2074_v16 = vpack.c.bf16 %v1178_v12, %v1175_v11  ;;  %v1169_v21 = vmul.f32 0.2, %v1069_v13 }
 0x22c   : > { %v1073_v19 = vadd.f32 %v1072_v15, %v973_v39  ;;  %v1074_v20 = vpop.f32.mrb[11].mxu1  ;;  %v1180_v25 = vmax.f32 %v1067_v8, %v1168_v18 }
 0x22d   : > { %v1075_v22 = vadd.f32 %v1074_v20, %v973_v39  ;;  %2075 = vmatprep.subr.bf16.mxu0 %v2074_v16  ;;  %1960 = vmatmul.mubr.msk.f32.gmra.mrb[14].mxu1 %vm975_vm2, %v1189_v17  ;;  %v1181_v27 = vmax.f32 %v1069_v13, %v1169_v21  ;;  %v1437_v45 = vpop.permute.xlu1 %1436 }
 0x22e   : > { %v1171_v23 = vmul.f32 0.2, %v1073_v19  ;;  %2077 = vmatpush1.bf16.msra.mxu0 %v2076_v14 }
 0x22f   : > { %v1172_v24 = vmul.f32 0.2, %v1075_v22 }
 0x230   : > { %v1183_v26 = vmax.f32 %v1073_v19, %v1171_v23 }
 0x231   : > { %v1184_v28 = vmax.f32 %v1075_v22, %v1172_v24  ;;  %v1447_v56 = vpop.permute.xlu1 %1446 }
 0x232   : > { %v2080_v29 = vpack.c.bf16 %v1183_v26, %v1180_v25 }
 0x233   : > { %v2078_v30 = vpack.c.bf16 %v1184_v28, %v1181_v27 }
 0x235   : > { %2079 = vmatprep.subr.bf16.mxu0 %v2078_v30 }
 0x236   : > { %2081 = vmatpush1.bf16.msra.mxu0 %v2080_v29 }
 0x239   : > { %1802 = vmatmul.mubr.msk.f32.vlgmr.msra.gmra.mrb[12].mxu0 %vm975_vm2, %v2554_v32 }
 0x23a   : > { %1296 = vmatprep.mubr.f32.mxu0 %v2234_v2 }
 0x23d   : > { %1803 = vmatmul.mubr.msk.f32.gmra.mrb[14].mxu0 %vm975_vm2, %v1187_v5 }
 0x23e   : > { %1302 = vmatprep.mubr.f32.mxu0 %v2234_v2 }
 0x241   : > { %1804 = vmatmul.mubr.msk.f32.gmra.mrb[16].mxu0 %vm975_vm2, %v1188_v10 }
 0x242   : > { %1308 = vmatprep.mubr.f32.mxu0 %v2234_v2 }
 0x245   : > { %1805 = vmatmul.mubr.msk.f32.gmra.mrb[18].mxu0 %vm975_vm2, %v1189_v17 }
 0x2fc   : > { %v1958_v35 = vpop.f32.mrb[12].mxu1 }
 0x2fd   : > { %v1387_v36 = vadd.f32 %v1958_v35, %v1202_v1  ;;  %v1381_v37 = vpop.f32.mrb[13].mxu1 }
 0x2fe   : > { %v1382_v32 = vadd.f32 %v1381_v37, %v1197_v31 }
 0x2ff   : > { %v1405_v38 = vmul.f32 0.2, %v1387_v36 }
 0x300   : > { %v1402_v39 = vmul.f32 0.2, %v1382_v32  ;;  %v1961_v40 = vpop.f32.mrb[14].mxu1 }
 0x301   : > { %v1417_v42 = vmax.f32 %v1387_v36, %v1405_v38  ;;  %v1397_v43 = vadd.f32 %v1961_v40, %v1212_v34  ;;  %v1391_v44 = vpop.f32.mrb[15].mxu1 }
 0x302   : > { %v1414_v46 = vmax.f32 %v1382_v32, %v1402_v39  ;;  %v1392_v2 = vadd.f32 %v1391_v44, %v1207_v33 }
 0x303   : > { %v1454_v47 = vmul.f32 %v1437_v45, %v1417_v42  ;;  %v1411_v48 = vmul.f32 0.2, %v1397_v43 }
 0x304   : > { %v1451_v49 = vmul.f32 %v1432_v41, %v1414_v46  ;;  %v1408_v50 = vmul.f32 0.2, %v1392_v2 }
 0x305   : > { %v1423_v52 = vmax.f32 %v1397_v43, %v1411_v48 }
 0x306   : > { %v1479_v51 = vadd.f32 %v1454_v47, %v1451_v49  ;;  %v1420_v53 = vmax.f32 %v1392_v2, %v1408_v50 }
 0x307   : > { %v1460_v57 = vmul.f32 %v1447_v56, %v1423_v52 }
 0x308   : > { %v1457_v55 = vmul.f32 %v1442_v54, %v1420_v53  ;;  %v2235_v53 = vmov 1966171168  }
 0x30a   : > { %v1480_v58 = vadd.f32 %v1479_v51, %v1457_v55 }
 0x30c   : > { %v1292_v59 = vpop.f32.mrb[12].mxu0  ;;  %v1481_v60 = vadd.f32 %v1480_v58, %v1460_v57 }
 0x30d   : > { %v1293_v61 = vadd.f32 %v1292_v59, %v1197_v31  ;;  %v1294_v62 = vpop.f32.mrb[13].mxu0 }
 0x30e   : > { %v1295_v63 = vadd.f32 %v1294_v62, %v1197_v31  ;;  %v1482_v21 = vrot.slane %v1481_v60, 4 }
 0x30f   : > { %v1400_v0 = vmul.f32 0.2, %v1293_v61 }
 0x310   : > { %v1401_v3 = vmul.f32 0.2, %v1295_v63  ;;  %v1298_v4 = vpop.f32.mrb[14].mxu0  ;;  %v1483_v37 = vadd.f32 %v1482_v21, %v1481_v60  ;;  %v1491_v60 = vpop.permute.xlu0 %1490 }
 0x311   : > { %v1299_v5 = vadd.f32 %v1298_v4, %v1202_v1  ;;  %v1300_v6 = vpop.f32.mrb[15].mxu0  ;;  %v1412_v8 = vmax.f32 %v1293_v61, %v1400_v0 }
 0x312   : > { %v1301_v7 = vadd.f32 %v1300_v6, %v1202_v1  ;;  %v1413_v10 = vmax.f32 %v1295_v63, %v1401_v3  ;;  %v1484_v43 = vrot.slane %v1483_v37, 2 }
 0x313   : > { %v1403_v9 = vmul.f32 0.2, %v1299_v5  ;;  %v1449_v18 = vmul.f32 %v1432_v41, %v1412_v8 }
 0x314   : > { %v1404_v11 = vmul.f32 0.2, %v1301_v7  ;;  %v1304_v12 = vpop.f32.mrb[16].mxu0  ;;  %v1450_v22 = vmul.f32 %v1432_v41, %v1413_v10  ;;  %v1485_v48 = vadd.f32 %v1484_v43, %v1483_v37 }
 0x315   : > { %v1415_v13 = vmax.f32 %v1299_v5, %v1403_v9  ;;  %v1305_v14 = vadd.f32 %v1304_v12, %v1207_v33  ;;  %v1306_v15 = vpop.f32.mrb[17].mxu0 }
 0x316   : > { %v1416_v16 = vmax.f32 %v1301_v7, %v1404_v11  ;;  %v1307_v17 = vadd.f32 %v1306_v15, %v1207_v33  ;;  %v1486_v55 = vrot.slane %v1485_v48, 1 }
 0x317   : > { %v1452_v19 = vmul.f32 %v1437_v45, %v1415_v13  ;;  %v1406_v20 = vmul.f32 0.2, %v1305_v14 }
 0x318   : > { %v1453_v23 = vmul.f32 %v1437_v45, %v1416_v16  ;;  %v1407_v24 = vmul.f32 0.2, %v1307_v17  ;;  %v1310_v25 = vpop.f32.mrb[18].mxu0  ;;  %v1493_v45 = vlaneseq  ;;  %v1487_v63 = vadd.f32 %v1486_v55, %v1485_v48 }
 0x319   : > { %v1461_v26 = vadd.f32 %v1452_v19, %v1449_v18  ;;  %v1418_v27 = vmax.f32 %v1305_v14, %v1406_v20  ;;  %v1311_v28 = vadd.f32 %v1310_v25, %v1212_v34  ;;  %v1312_v29 = vpop.f32.mrb[19].mxu0 }
 0x31a   : > { %v1470_v30 = vadd.f32 %v1453_v23, %v1450_v22  ;;  %v1419_v31 = vmax.f32 %v1307_v17, %v1407_v24  ;;  %v1313_v1 = vadd.f32 %v1312_v29, %v1212_v34  ;;  %v1494_v34 = vshrl.u32 %v1493_v45, 7 }
 0x31b   : > { %v1455_v35 = vmul.f32 %v1442_v54, %v1418_v27  ;;  %v1409_v36 = vmul.f32 0.2, %v1311_v28  ;;  %vm1529_vm3 = vcmp.lt.s32.totalorder %v1493_v45, 384 }
 0x31c   : > { %v1456_v32 = vmul.f32 %v1442_v54, %v1419_v31  ;;  %v1410_v33 = vmul.f32 0.2, %v1313_v1  ;;  %v1505_v54 = vunpack.c.l.s4 %v2235_v53  ;;  %v1495_v58 = vsub.s32 0, %v1494_v34 }
 0x31d   : > { %v1462_v38 = vadd.f32 %v1461_v26, %v1455_v35  ;;  %v1421_v39 = vmax.f32 %v1311_v28, %v1409_v36 }
 0x31e   : > { %v1471_v40 = vadd.f32 %v1470_v30, %v1456_v32  ;;  %v1422_v42 = vmax.f32 %v1313_v1, %v1410_v33  ;;  %v1506_v62 = vunpack.c.0.s8 %v1505_v54  ;;  %v1496_v3 = vrot.slane %v1491_v60, %v1495_v58 }
 0x31f   : > { %v1458_v41 = vmul.f32 %v1447_v56, %v1421_v39 }
 0x320   : > { %v1459_v44 = vmul.f32 %v1447_v56, %v1422_v42  ;;  %v1509_v7 = vsub.s32 %v1506_v62, %v1494_v34  ;;  %v1499_v9 = vadd.f32 %v1496_v3, %v1487_v63 }
 0x321   : > { %v1463_v46 = vadd.f32 %v1462_v38, %v1458_v41 }
 0x322   : > { %v1472_v2 = vadd.f32 %v1471_v40, %v1459_v44  ;;  %v1517_v12 = vrot.slane %v1499_v9, %v1509_v7 }
 0x323   : > { %v1464_v47 = vrot.slane %v1463_v46, 4 }
 0x324   : > { %v1473_v49 = vrot.slane %v1472_v2, 4 }
 0x325   : > { %v1465_v50 = vadd.f32 %v1464_v47, %v1463_v46 }
 0x326   : > { %v1474_v51 = vadd.f32 %v1473_v49, %v1472_v2 }
 0x327   : > { %v1466_v52 = vrot.slane %v1465_v50, 2 }
 0x328   : > { %v1475_v57 = vrot.slane %v1474_v51, 2 }
 0x329   : > { %v1467_v59 = vadd.f32 %v1466_v52, %v1465_v50 }
 0x32a   : > { %v1476_v61 = vadd.f32 %v1475_v57, %v1474_v51 }
 0x32b   : > { %v1468_v56 = vrot.slane %v1467_v59, 1 }
 0x32c   : > { %v1477_v0 = vrot.slane %v1476_v61, 1 }
 0x32d   : > { %v1469_v4 = vadd.f32 %v1468_v56, %v1467_v59 }
 0x32e   : > { %v1478_v5 = vadd.f32 %v1477_v0, %v1476_v61 }
 0x32f   : > { %v1497_v6 = vadd.f32 %v1496_v3, %v1469_v4 }
 0x330   : > { %v1498_v8 = vadd.f32 %v1496_v3, %v1478_v5 }
 0x332   : > { %v1503_v10 = vcombine.low %v1497_v6, %v1498_v8 }
 0x334   : > { %v1510_v11 = vrot.slane %v1503_v10, %v1509_v7 }
 0x336   : > { %v1518_v13 = vcombine.low %v1510_v11, %v1517_v12 }
 0x338   : > { %v1525_v14 = vrot.slane %v1518_v13, %v1509_v7 }
 0x33a   : > { %1531 = vst.msk [vmem:[%s466_s15] sm:$0x7] %vm1529_vm3, %v1525_v14 }
 0x33b   : > { %2166 = shalt.err (!%p2163_p5)
}
 0x33c   : > { %s2167_s25 = scalar_lea.hbm %s2577_s20, 48  ;;  %s2171_s23 = scalar_lea.hbm %s2633_s9, 96 }
 0x33d   : > { %p2168_p6 = scmp.ne.s32.totalorder %s2577_s20, %s2167_s25  ;;  %p2172_p10 = scmp.lt.u32.totalorder %s2577_s20, %s2633_s9 }
 0x33e   : > { %p2173_p11 = scmp.lt.u32.totalorder %s2171_s23, %s2167_s25  ;;  %p2175_p13 = scmp.lt.u32.totalorder %s2167_s25, %s2577_s20 }
 0x33f   : > { %p2169_p7 = pnand %p2168_p6, %p2327_p4 }
 0x340   : > { %p2174_p12 = por %p2173_p11, %p2172_p10 }
 0x341   : > { %p2170_p9 = pneg %p2169_p7 }
 0x342   : > { %p2176_p0 = por %p2175_p13, %p2174_p12 }
 0x344   : > { %p2177_p1 = pnand %p2176_p0, %p2170_p9 }
 0x346   : > { %2180 = shalt.err (!%p2177_p1)
}
 0x347   : > { %2093 = dma.vmem_to_hbm [thread:$0]  (%p2327_p4), %s2579_s18, 48, %s2577_s20, %s1533_s28  }
 0x348 PF: > { %p2099_p2 = scmp.ge.s32.totalorder %s2231_s14, 2  ;;  %s1561_s24 = sand.u32 1, %s2211_s30  }
 0x349   : > { %s1562_s26 = scalar_lea.sflag [#allocation3], %s1561_s24 }
 0x34a   : > { %p2096_p3 = pnand %p2099_p2, %p2334_p8 }
 0x34c   : > { %2206 = dma.done.wait (!%p2096_p3), %s1562_s26, 48  }
 0x34d   : > { %2208 = vsyncadd (!%p2096_p3), %s1562_s26, 4294967248  ;;  %s22_s14 = sadd.s32 1, %s2231_s14   ;;  %s2638_s30 = smov %s2215_s10 }
 0x34e   : > { %p19_p5 = scmp.ge.s32.totalorder %s22_s14, 4   ;;  %s2639_s10 = smov %s2219_s11 }
 0x34f   : > { %s2640_s11 = smov %s2340_s22  ;;  %s2641_s12 = smov %s2227_s13 }
 0x350   : > { %s2642_s13 = smov %s2644_s17  ;;  %21 = sbr.rel (!%p19_p5) target bundleno = 4 (0x4), region = 115 }
 0x357   :  { %1567 = vsyncpa [#allocation3], 1 }
 0x358   :  { %1569 = vsyncpa [#allocation3 + $0x1], 1 }

// kernel: tpu_custom_call.1
= control target key start
LH: loop header
LB: loop body
LE: loop exit
PB: predicated region body
PF: predicated region fallthrough
CT: control target
= control target key end

     0   :  { %14 = vsyncpa [#allocation3], 0  ;;  %s2125_s0 = inlined_call_operand.vmem [shape: f32[2,3,384], index: 0, kind: input, shape index: {}]   ;;  %s2126_s1 = inlined_call_operand.vmem [shape: f32[2,32,3], index: 1, kind: input, shape index: {}]   ;;  %s2127_s2 = inlined_call_operand.vmem [shape: f32[2,32,1], index: 2, kind: input, shape index: {}]   ;;  %s2128_s3 = inlined_call_operand.vmem [shape: f32[2,32,32], index: 3, kind: input, shape index: {}]   ;;  %s2129_s4 = inlined_call_operand.vmem [shape: f32[2,32,1], index: 4, kind: input, shape index: {}]   ;;  %s2130_s5 = inlined_call_operand.vmem [shape: f32[2,32,32], index: 5, kind: input, shape index: {}]   ;;  %s2131_s6 = inlined_call_operand.vmem [shape: f32[2,32,1], index: 6, kind: input, shape index: {}]   ;;  %s2132_s7 = inlined_call_operand.vmem [shape: f32[2,32,1], index: 7, kind: input, shape index: {}]   ;;  %s2133_s8 = inlined_call_operand.vmem [shape: f32[2,1,1], index: 8, kind: input, shape index: {}]   ;;  %s2134_s9 = inlined_call_operand.hbm [shape: f32[2,1,384], index: 9, kind: output, shape index: {}]  }
   0x1   :  { %16 = vsyncpa [#allocation3 + $0x1], 0  ;;  %s1877_s30 = smov 0   ;;  %s1879_s10 = smov 0  }
   0x2   :  { %s1881_s11 = smov 0   ;;  %s1883_s12 = smov 0  }
   0x3   :  { %s1885_s13 = smov 0   ;;  %s1887_s14 = smov 0  }
   0x4 LB: > { %s1548_s15 = sadd.s32 4294967295, %s1819_s14   ;;  %s1549_s16 = sadd.s32 4294967294, %s1819_s14   ;;  %s1819_s14 = sphi %s1887_s14, %s22_s14   ;;  %s1815_s13 = sphi %s1885_s13, %s2141_s13   ;;  %s1811_s12 = sphi %s1883_s12, %s2140_s12   ;;  %s1807_s11 = sphi %s1881_s11, %s2139_s11   ;;  %s1803_s10 = sphi %s1879_s10, %s2138_s10   ;;  %s1799_s30 = sphi %s1877_s30, %s2137_s30  }
   0x5   : > { %s34_s17 = sadd.s32 1, %s1815_s13  ;;  %s279_s18 = sadd.s32 1, %s1807_s11 }
   0x6   : > { %p36_p0 = scmp.ge.s32.totalorder %s34_s17, 2  ;;  %p289_p1 = scmp.ne.s32.totalorder %s1807_s11, %s1803_s10 }
   0x7   : > { %p290_p2 = scmp.eq.s32.totalorder %s1548_s15, 1  ;;  %p295_p3 = scmp.ne.s32.totalorder %s1803_s10, %s1799_s30 }
   0x8   : > { %s2143_s17 = smov (%p36_p0, %s34_s17), 0  ;;  %p296_p5 = scmp.eq.s32.totalorder %s1549_s16, 1 }
   0x9   : > { %p1917_p4 = por %p290_p2, %p289_p1  ;;  %s274_s20 = ssub.s32 %s1815_s13, %s2143_s17 }
   0xa   : > { %p1552_p6 = scmp.ge.s32.totalorder %s1819_s14, 1  ;;  %p277_p7 = scmp.eq.s32.totalorder %s274_s20, 0 }
   0xb   : > { %p1924_p8 = por %p296_p5, %p295_p3  ;;  %p389_p9 = scmp.lt.s32.totalorder %s1819_s14, 3 }
   0xc   : > { %s1930_s22 = scalar_select %p277_p7, %s1807_s11, %s279_s18  }
   0xd   : > { %p390_p10 = pnand %p1552_p6, %p389_p9 }
   0xe   : > { %p468_p11 = scmp.lt.s32.totalorder (!%p390_p10), %s1811_s12, 1  ;;  %v1821_v0 = vmov (!%p390_p10), 2   ;;  %v1822_v1 = vmov (!%p390_p10), 1   ;;  %v1823_v5 = vmov (!%p390_p10), 0   ;;  %vm805_vm0 = vcmask (!%p390_p10), 261120   ;;  %s1672_s29 = smul.u32 (!%p390_p10), 48, %s1811_s12 }
   0xf   : > { %393 = sbr.rel (%p390_p10) target bundleno = 716 (0x2cc), region = 56  ;;  %1734 = vset.pattern.permute.xlu0 (!%p390_p10), %v1821_v0  ;;  %1733 = vset.pattern.permute.xlu1 (!%p390_p10), %v1822_v1  ;;  %v1824_v21 = vmov (!%p390_p10), 0.0   ;;  %v548_v28 = vlaneseq (!%p390_p10) }
  0x10   : > { %882 = vmatprep.mubr.f32.mxu0 (!%p390_p10), %v1824_v21 }
  0x11   : > { %v1991_v31 = vshrl.u32 (!%p390_p10), %v548_v28, 7  ;;  %vm1359_vm1 = vcmp.lt.s32.totalorder (!%p390_p10), %v548_v28, 384 }
  0x13   : > { %v605_v32 = vsub.s32 (!%p390_p10), 1, %v1991_v31  ;;  %v1998_v33 = vsub.s32 (!%p390_p10), 0, %v1991_v31  ;;  %v554_v34 = vsub.s32 (!%p390_p10), 4, %v1991_v31  ;;  %v609_v37 = vsub.s32 (!%p390_p10), 5, %v1991_v31 }
  0x14   : > { %v672_v40 = vsub.s32 (!%p390_p10), 2, %v1991_v31  ;;  %v676_v41 = vsub.s32 (!%p390_p10), 6, %v1991_v31 }
  0x16   : > { %s1934_s23 = scalar_select %p468_p11, %s1811_s12, 1 }
  0x17   : > { %s1826_s12 = smov [#allocation2]  }
  0x18   : > { %s1937_s24 = sshll.u32 %s1934_s23, 5  ;;  %s514_s26 = scalar_lea.vmem %s2133_s8, %s1934_s23 }
  0x19   : > { %s481_s27 = scalar_lea.vmem %s2126_s1, %s1937_s24  ;;  %s486_s15 = scalar_lea.vmem %s2127_s2, %s1937_s24  ;;  %v1258_v18 = vld [vmem:[%s514_s26] sm:$0x1] }
  0x1a   : > { %v516_v2 = vld [vmem:[%s481_s27] sm:$0xff]  ;;  %v518_v3 = vld [vmem:[%s481_s27 + $0x10] sm:$0xff]  ;;  %v517_v4 = vld [vmem:[%s481_s27 + $0x8] sm:$0xff]  ;;  %s1951_s20 = scalar_lea.vmem %s2129_s4, %s1937_s24  ;;  %s511_s16 = scalar_lea.vmem %s2132_s7, %s1937_s24 }
  0x1b   : > { %655 = vperm.xlu0 %1734, %v516_v2   ;;  %588 = vperm.xlu1 %1733, %v516_v2   ;;  %v519_v6 = vld [vmem:[%s481_s27 + $0x18] sm:$0xff]  ;;  %v521_v7 = vld [vmem:[%s486_s15 + $0x8] sm:$0xff]  ;;  %v781_v8 = vld [vmem:[%s1951_s20] sm:$0xff]  ;;  %s1959_s27 = scalar_lea.vmem %s2131_s6, %s1937_s24 }
  0x1c   : > { %v783_v9 = vld [vmem:[%s1951_s20 + $0x10] sm:$0xff]  ;;  %v1020_v10 = vld [vmem:[%s1959_s27] sm:$0xff]  ;;  %v523_v15 = vld [vmem:[%s486_s15 + $0x18] sm:$0xff] }
  0x1d   : > { %v520_v11 = vld [vmem:[%s486_s15] sm:$0xff]  ;;  %v1022_v12 = vld [vmem:[%s1959_s27 + $0x10] sm:$0xff]  ;;  %v782_v17 = vld [vmem:[%s1951_s20 + $0x8] sm:$0xff] }
  0x1e   : > { %v522_v13 = vld [vmem:[%s486_s15 + $0x10] sm:$0xff]  ;;  %v1254_v14 = vld [vmem:[%s511_s16] sm:$0xff]  ;;  %v784_v19 = vld [vmem:[%s1951_s20 + $0x18] sm:$0xff]  ;;  %s1978_s15 = scalar_lea.vmem %s2128_s3, %s1937_s24  ;;  %s1671_s20 = smul.u32 12, %s1934_s23 }
  0x1f   : > { %663 = vperm.xlu0 %1734, %v518_v3   ;;  %592 = vperm.xlu1 %1733, %v517_v4   ;;  %v1256_v16 = vld [vmem:[%s511_s16 + $0x10] sm:$0xff]  ;;  %v1021_v20 = vld [vmem:[%s1959_s27 + $0x8] sm:$0xff]  ;;  %v1982_v22 = vld [vmem:[%s1978_s15] sm:$0xff] }
  0x20   : > { %1618 = vmatprep.mubr.msk.f32.mxu1 %vm805_vm0, %v1982_v22  ;;  %v1023_v23 = vld [vmem:[%s1959_s27 + $0x18] sm:$0xff]  ;;  %v1255_v24 = vld [vmem:[%s511_s16 + $0x8] sm:$0xff]  ;;  %s475_s26 = scalar_lea.vmem %s2125_s0, %s1671_s20 }
  0x21   : > { %v1257_v25 = vld [vmem:[%s511_s16 + $0x18] sm:$0xff]  ;;  %v524_v38 = vld [vmem:[%s475_s26] sm:$0x77]  ;;  %v525_v39 = vld [vmem:[%s475_s26 + $0x8] sm:$0x7]  ;;  %s2049_s16 = scalar_lea.vmem %s2130_s5, %s1937_s24  ;;  %s464_s24 = sand.u32 1, %s1803_s10  }
  0x22   : > { %v606_v42 = vrot.slane %v524_v38, %v605_v32  ;;  %v555_v43 = vrot.slane %v524_v38, %v554_v34  ;;  %v559_v44 = vrot.slane %v525_v39, %v1998_v33  ;;  %v610_v45 = vrot.slane %v524_v38, %v609_v37  ;;  %s1670_s28 = smul.u32 3, %s464_s24  ;;  %s2078_s26 = scalar_lea.hbm %s2134_s9, %s1672_s29 }
  0x23   : > { %1738 = vset.pattern.permute.xlu0 %v1823_v5  ;;  %1735 = vset.pattern.permute.xlu1 %v1821_v0  ;;  %v614_v46 = vrot.slane %v525_v39, %v605_v32  ;;  %v551_v47 = vrot.slane %v524_v38, %v1998_v33  ;;  %v673_v50 = vrot.slane %v524_v38, %v672_v40  ;;  %s1363_s23 = scalar_lea.sflag [#allocation3], %s464_s24 }
  0x24   : > { %528 = vperm.xlu0 %1738, %v516_v2   ;;  %659 = vperm.xlu1 %1735, %v517_v4   ;;  %v677_v51 = vrot.slane %v524_v38, %v676_v41  ;;  %v621_v52 = vrot.slane %v606_v42, %v605_v32  ;;  %v681_v53 = vrot.slane %v525_v39, %v672_v40 }
  0x25   : > { %v570_v54 = vrot.slane %v555_v43, %v1998_v33  ;;  %v574_v55 = vrot.slane %v559_v44, %v1998_v33  ;;  %v625_v56 = vrot.slane %v610_v45, %v605_v32  ;;  %v629_v57 = vrot.slane %v614_v46, %v605_v32 }
  0x26   : > { %v566_v58 = vrot.slane %v551_v47, %v1998_v33  ;;  %v2009_v62 = vrot.slane %v673_v50, %v672_v40  ;;  %v2011_v63 = vrot.slane %v677_v51, %v672_v40 }
  0x28   : > { %533 = vperm.xlu0 %1738, %v517_v4   ;;  %1736 = vset.pattern.permute.xlu1 %v1823_v5 }
  0x29   : > { %538 = vperm.xlu1 %1736, %v518_v3  }
  0x2c   : > { %543 = vperm.xlu0 %1738, %v519_v6  }
  0x2d   : > { %1737 = vset.pattern.permute.xlu1 %v1822_v1 }
  0x2e   : > { %596 = vperm.xlu1 %1737, %v518_v3   ;;  %v2013_v3 = vrot.slane %v681_v53, %v672_v40 }
  0x30   : > { %728 = vperm.xlu0 %1738, %v521_v7  }
  0x32   : > { %600 = vperm.xlu1 %1737, %v519_v6  }
  0x34   : > { %787 = vperm.xlu0 %1738, %v781_v8  }
  0x36   : > { %1739 = vset.pattern.permute.xlu1 %v1821_v0 }
  0x37   : > { %667 = vperm.xlu1 %1739, %v519_v6  }
  0x38   : > { %797 = vperm.xlu0 %1738, %v783_v9  }
  0x3b   : > { %1740 = vset.pattern.permute.xlu1 %v1823_v5 }
  0x3c   : > { %1026 = vperm.xlu0 %1738, %v1020_v10   ;;  %723 = vperm.xlu1 %1740, %v520_v11  }
  0x40   : > { %1036 = vperm.xlu0 %1738, %v1022_v12   ;;  %733 = vperm.xlu1 %1740, %v522_v13  }
  0x44   : > { %1261 = vperm.xlu0 %1738, %v1254_v14   ;;  %738 = vperm.xlu1 %1740, %v523_v15  }
  0x48   : > { %1271 = vperm.xlu0 %1738, %v1256_v16   ;;  %792 = vperm.xlu1 %1740, %v782_v17  }
  0x4c   : > { %1320 = vperm.xlu0 %1738, %v1258_v18   ;;  %802 = vperm.xlu1 %1740, %v784_v19  }
  0x50   : > { %1031 = vperm.xlu1 %1740, %v1021_v20  }
  0x54   : > { %1041 = vperm.xlu1 %1740, %v1023_v23  }
  0x58   : > { %1266 = vperm.xlu1 %1740, %v1255_v24  }
  0x5c   : > { %1276 = vperm.xlu1 %1740, %v1257_v25  }
  0x9a   : > { %v589_v26 = vpop.permute.xlu1 %588  ;;  %v656_v27 = vpop.permute.xlu0 %655 }
  0x9b   : > { %v630_v2 = vmul.f32 %v621_v52, %v589_v26  ;;  %v631_v6 = vmul.f32 %v625_v56, %v589_v26  ;;  %v632_v7 = vmul.f32 %v629_v57, %v589_v26  ;;  %v697_v10 = vmul.f32 %v2009_v62, %v656_v27 }
  0x9c   : > { %v698_v11 = vmul.f32 %v2011_v63, %v656_v27  ;;  %v699_v15 = vmul.f32 %v2013_v3, %v656_v27 }
  0x9e   : > { %v593_v29 = vpop.permute.xlu1 %592  ;;  %v1988_v30 = vpop.permute.xlu0 %663 }
  0x9f   : > { %v634_v4 = vmul.f32 %v625_v56, %v593_v29  ;;  %v635_v5 = vmul.f32 %v629_v57, %v593_v29  ;;  %v633_v8 = vmul.f32 %v621_v52, %v593_v29  ;;  %v703_v19 = vmul.f32 %v2009_v62, %v1988_v30 }
  0xa0   : > { %v704_v25 = vmul.f32 %v2011_v63, %v1988_v30 }
  0xa3   : > { %v529_v35 = vpop.permute.xlu0 %528  ;;  %v660_v36 = vpop.permute.xlu1 %659 }
  0xa4   : > { %v575_v9 = vmul.f32 %v566_v58, %v529_v35  ;;  %v576_v16 = vmul.f32 %v570_v54, %v529_v35  ;;  %v577_v17 = vmul.f32 %v574_v55, %v529_v35  ;;  %v701_v20 = vmul.f32 %v2011_v63, %v660_v36 }
  0xa5   : > { %v702_v23 = vmul.f32 %v2013_v3, %v660_v36  ;;  %v700_v29 = vmul.f32 %v2009_v62, %v660_v36 }
  0xa6   : > { %v642_v26 = vadd.f32 %v630_v2, %v575_v9  ;;  %v643_v39 = vadd.f32 %v631_v6, %v576_v16  ;;  %v644_v40 = vadd.f32 %v632_v7, %v577_v17 }
  0xa7   : > { %v534_v48 = vpop.permute.xlu0 %533 }
  0xa8   : > { %v539_v49 = vpop.permute.xlu1 %538  ;;  %v579_v59 = vmul.f32 %v570_v54, %v534_v48  ;;  %v580_v60 = vmul.f32 %v574_v55, %v534_v48  ;;  %v578_v0 = vmul.f32 %v566_v58, %v534_v48  ;;  %v705_v48 = vmul.f32 %v2013_v3, %v1988_v30 }
  0xa9   : > { %v581_v32 = vmul.f32 %v566_v58, %v539_v49  ;;  %v582_v41 = vmul.f32 %v570_v54, %v539_v49  ;;  %v583_v44 = vmul.f32 %v574_v55, %v539_v49  ;;  %v709_v2 = vadd.f32 %v697_v10, %v642_v26 }
  0xaa   : > { %v646_v12 = vadd.f32 %v634_v4, %v579_v59  ;;  %v647_v13 = vadd.f32 %v635_v5, %v580_v60  ;;  %v645_v18 = vadd.f32 %v633_v8, %v578_v0  ;;  %v710_v4 = vadd.f32 %v698_v11, %v643_v39 }
  0xab   : > { %v544_v1 = vpop.permute.xlu0 %543  ;;  %v711_v5 = vadd.f32 %v699_v15, %v644_v40 }
  0xac   : > { %v713_v35 = vadd.f32 %v701_v20, %v646_v12  ;;  %v714_v38 = vadd.f32 %v702_v23, %v647_v13  ;;  %v712_v42 = vadd.f32 %v700_v29, %v645_v18  ;;  %v584_v50 = vmul.f32 %v566_v58, %v544_v1 }
  0xad   : > { %v597_v61 = vpop.permute.xlu1 %596  ;;  %v585_v36 = vmul.f32 %v570_v54, %v544_v1  ;;  %v586_v0 = vmul.f32 %v574_v55, %v544_v1 }
  0xae   : > { %v636_v24 = vmul.f32 %v621_v52, %v597_v61  ;;  %v637_v27 = vmul.f32 %v625_v56, %v597_v61  ;;  %v638_v37 = vmul.f32 %v629_v57, %v597_v61 }
  0xaf   : > { %v729_v34 = vpop.permute.xlu0 %728 }
  0xb0   : > { %v648_v45 = vadd.f32 %v636_v24, %v581_v32  ;;  %v745_v46 = vadd.f32 %v729_v34, %v713_v35  ;;  %v746_v47 = vadd.f32 %v729_v34, %v714_v38  ;;  %v744_v51 = vadd.f32 %v729_v34, %v712_v42 }
  0xb1   : > { %v601_v14 = vpop.permute.xlu1 %600  ;;  %v649_v53 = vadd.f32 %v637_v27, %v582_v41  ;;  %v650_v59 = vadd.f32 %v638_v37, %v583_v44 }
  0xb2   : > { %v639_v60 = vmul.f32 %v621_v52, %v601_v14  ;;  %v640_v61 = vmul.f32 %v625_v56, %v601_v14  ;;  %v641_v6 = vmul.f32 %v629_v57, %v601_v14  ;;  %v715_v49 = vadd.f32 %v703_v19, %v648_v45 }
  0xb3   : > { %v757_v8 = vmul.f32 0.2, %v745_v46  ;;  %v758_v9 = vmul.f32 0.2, %v746_v47  ;;  %v756_v30 = vmul.f32 0.2, %v744_v51  ;;  %v716_v17 = vadd.f32 %v704_v25, %v649_v53 }
  0xb4   : > { %v651_v58 = vadd.f32 %v639_v60, %v584_v50  ;;  %v652_v54 = vadd.f32 %v640_v61, %v585_v36  ;;  %v717_v18 = vadd.f32 %v705_v48, %v650_v59  ;;  %v653_v10 = vadd.f32 %v641_v6, %v586_v0  ;;  %v778_v0 = vld [vmem:[%s1978_s15 + $0x8] sm:$0xff] }
  0xb5   : > { %v769_v15 = vmax.f32 %v745_v46, %v757_v8  ;;  %v770_v23 = vmax.f32 %v746_v47, %v758_v9  ;;  %v768_v24 = vmax.f32 %v744_v51, %v756_v30 }
  0xb6   : > { %v668_v43 = vpop.permute.xlu1 %667 }
  0xb7   : > { %v706_v52 = vmul.f32 %v2009_v62, %v668_v43  ;;  %v707_v57 = vmul.f32 %v2011_v63, %v668_v43  ;;  %v708_v11 = vmul.f32 %v2013_v3, %v668_v43 }
  0xb9   : > { %v718_v34 = vadd.f32 %v706_v52, %v651_v58  ;;  %v719_v37 = vadd.f32 %v707_v57, %v652_v54  ;;  %v720_v35 = vadd.f32 %v708_v11, %v653_v10 }
  0xbb   : > { %v724_v7 = vpop.permute.xlu1 %723 }
  0xbc   : > { %v741_v12 = vadd.f32 %v724_v7, %v709_v2  ;;  %v742_v13 = vadd.f32 %v724_v7, %v710_v4  ;;  %v743_v16 = vadd.f32 %v724_v7, %v711_v5  ;;  %v779_v2 = vld [vmem:[%s1978_s15 + $0x10] sm:$0xff]  ;;  %v780_v4 = vld [vmem:[%s1978_s15 + $0x18] sm:$0xff]  ;;  %v788_v5 = vpop.permute.xlu0 %787  ;;  %s466_s15 = scalar_lea.vmem [#allocation2], %s1670_s28 }
  0xbd   : > { %s1379_s20 = sshll.u32 %s466_s15, 4  ;;  %s2080_s20 = int_to_ptr.vmem [resolvable:$true] %s1379_s20 }
  0xbe   : > { %v754_v56 = vmul.f32 0.2, %v742_v13  ;;  %v755_v55 = vmul.f32 0.2, %v743_v16  ;;  %v753_v1 = vmul.f32 0.2, %v741_v12 }
  0xbf   : > { %v734_v14 = vpop.permute.xlu1 %733  ;;  %s1741_s27 = scalar_lea.vmem %s2080_s20, 48 }
  0xc0   : > { %v747_v19 = vadd.f32 %v734_v14, %v715_v49  ;;  %v766_v20 = vmax.f32 %v742_v13, %v754_v56  ;;  %v748_v26 = vadd.f32 %v734_v14, %v716_v17  ;;  %v749_v29 = vadd.f32 %v734_v14, %v717_v18  ;;  %v798_v58 = vpop.permute.xlu0 %797  ;;  %p1742_p12 = scmp.ne.s32.totalorder %s2080_s20, %s1741_s27 }
  0xc1   : > { %v767_v25 = vmax.f32 %v743_v16, %v755_v55  ;;  %v765_v32 = vmax.f32 %v741_v12, %v753_v1 }
  0xc2   : > { %v1638_v62 = vpack.c.bf16 %v769_v15, %v766_v20  ;;  %v759_v63 = vmul.f32 0.2, %v747_v19  ;;  %v760_v3 = vmul.f32 0.2, %v748_v26  ;;  %v761_v41 = vmul.f32 0.2, %v749_v29  ;;  %p1743_p13 = pnand %p1742_p12, %p1917_p4 }
  0xc3   : > { %v739_v27 = vpop.permute.xlu1 %738  ;;  %v1646_v38 = vpack.c.bf16 %v770_v23, %v767_v25  ;;  %v1640_v39 = vpack.c.bf16 %v768_v24, %v765_v32 }
  0xc4   : > { %v750_v40 = vadd.f32 %v739_v27, %v718_v34  ;;  %1639 = vmatprep.subr.bf16.mxu0 %v1638_v62  ;;  %v751_v42 = vadd.f32 %v739_v27, %v719_v37  ;;  %v752_v43 = vadd.f32 %v739_v27, %v720_v35  ;;  %v771_v47 = vmax.f32 %v747_v19, %v759_v63  ;;  %p1744_p0 = pneg %p1743_p13 }
  0xc5   : > { %1647 = vmatprep.subr.bf16.mxu1 %v1646_v38  ;;  %1641 = vmatpush1.bf16.msra.mxu0 %v1640_v39  ;;  %v772_v50 = vmax.f32 %v748_v26, %v760_v3  ;;  %v773_v36 = vmax.f32 %v749_v29, %v761_v41 }
  0xc6   : > { %v762_v44 = vmul.f32 0.2, %v750_v40  ;;  %1649 = vmatpush3.bf16.msra.mxu1 %v1646_v38  ;;  %v763_v45 = vmul.f32 0.2, %v751_v42  ;;  %v764_v46 = vmul.f32 0.2, %v752_v43 }
  0xc7   : > { %v793_v6 = vpop.permute.xlu1 %792 }
  0xc8   : > { %v774_v48 = vmax.f32 %v750_v40, %v762_v44  ;;  %v775_v51 = vmax.f32 %v751_v42, %v763_v45  ;;  %v776_v53 = vmax.f32 %v752_v43, %v764_v46 }
  0xca   : > { %v1644_v59 = vpack.c.bf16 %v774_v48, %v771_v47  ;;  %v1642_v60 = vpack.c.bf16 %v775_v51, %v772_v50  ;;  %v1650_v61 = vpack.c.bf16 %v776_v53, %v773_v36  ;;  %v1017_v51 = vld [vmem:[%s2049_s16 + $0x8] sm:$0xff] }
  0xcb   : > { %v803_v54 = vpop.permute.xlu1 %802 }
  0xcc   : > { %1643 = vmatprep.subr.bf16.mxu0 %v1642_v60  ;;  %1651 = vmatprep.subr.bf16.mxu1 %v1650_v61 }
  0xcd   : > { %1645 = vmatpush1.bf16.msra.mxu0 %v1644_v59  ;;  %1653 = vmatpush3.bf16.msra.mxu1 %v1650_v61  ;;  %v1018_v59 = vld [vmem:[%s2049_s16 + $0x10] sm:$0xff] }
  0xd0   : > { %1568 = vmatmul.mubr.msk.f32.vlgmr.msra.gmra.mrb[0].mxu0 %vm805_vm0, %v1982_v22  ;;  %1619 = vmatmul.mubr.msk.f32.vlgmr.msra.gmra.mrb[0].mxu1 %vm805_vm0, %v778_v0  ;;  %v2052_v22 = vld [vmem:[%s2049_s16] sm:$0xff] }
  0xd1   : > { %888 = vmatprep.mubr.f32.mxu0 %v1824_v21  ;;  %1621 = vmatprep.mubr.msk.f32.mxu1 %vm805_vm0, %v779_v2 }
  0xd4   : > { %1569 = vmatmul.mubr.msk.f32.gmra.mrb[2].mxu0 %vm805_vm0, %v778_v0  ;;  %1622 = vmatmul.mubr.msk.f32.gmra.mrb[2].mxu1 %vm805_vm0, %v780_v4 }
  0xd5   : > { %894 = vmatprep.mubr.f32.mxu0 %v1824_v21  ;;  %1120 = vmatprep.mubr.f32.mxu1 %v1824_v21 }
  0xd8   : > { %1570 = vmatmul.mubr.msk.f32.gmra.mrb[4].mxu0 %vm805_vm0, %v779_v2 }
  0xd9   : > { %900 = vmatprep.mubr.f32.mxu0 %v1824_v21 }
  0xdc   : > { %1571 = vmatmul.mubr.msk.f32.gmra.mrb[6].mxu0 %vm805_vm0, %v780_v4 }
  0xdd   : > { %1632 = vmatprep.mubr.msk.f32.mxu0 %vm805_vm0, %v2052_v22 }
 0x1a3   : > { %v884_v7 = vpop.f32.mrb[0].mxu0  ;;  %v1620_v49 = vpop.f32.mrb[0].mxu1 }
 0x1a4   : > { %v885_v8 = vadd.f32 %v884_v7, %v788_v5  ;;  %v979_v9 = vadd.f32 %v1620_v49, %v793_v6  ;;  %v886_v12 = vpop.f32.mrb[1].mxu0  ;;  %v973_v13 = vpop.f32.mrb[1].mxu1 }
 0x1a5   : > { %v887_v16 = vadd.f32 %v886_v12, %v788_v5  ;;  %v974_v30 = vadd.f32 %v973_v13, %v788_v5  ;;  %v1019_v5 = vld [vmem:[%s2049_s16 + $0x18] sm:$0xff]  ;;  %v1027_v7 = vpop.permute.xlu0 %1026  ;;  %v1032_v49 = vpop.permute.xlu1 %1031  ;;  %s1745_s16 = sshll.u32 %s1826_s12, 4  ;;  %s1746_s16 = int_to_ptr.vmem [resolvable:$false] %s1745_s16 }
 0x1a6   : > { %v997_v17 = vmul.f32 0.2, %v979_v9  ;;  %v992_v55 = vmul.f32 0.2, %v885_v8  ;;  %s1747_s28 = scalar_lea.vmem %s1746_s16, 96  ;;  %p1748_p1 = scmp.lt.s32.totalorder %s2080_s20, %s1746_s16 }
 0x1a7   : > { %v994_v18 = vmul.f32 0.2, %v974_v30  ;;  %v890_v52 = vpop.f32.mrb[2].mxu0  ;;  %v1623_v56 = vpop.f32.mrb[2].mxu1  ;;  %v993_v15 = vmul.f32 0.2, %v887_v16  ;;  %p1749_p2 = scmp.lt.s32.totalorder %s1747_s28, %s1741_s27 }
 0x1a8   : > { %v1009_v1 = vmax.f32 %v979_v9, %v997_v17  ;;  %v891_v10 = vadd.f32 %v890_v52, %v793_v6  ;;  %v989_v57 = vadd.f32 %v1623_v56, %v803_v54  ;;  %v892_v11 = vpop.f32.mrb[3].mxu0  ;;  %v983_v14 = vpop.f32.mrb[3].mxu1  ;;  %v1004_v62 = vmax.f32 %v885_v8, %v992_v55 }
 0x1a9   : > { %v1006_v19 = vmax.f32 %v974_v30, %v994_v18  ;;  %v893_v20 = vadd.f32 %v892_v11, %v793_v6  ;;  %v984_v23 = vadd.f32 %v983_v14, %v798_v58  ;;  %v1005_v39 = vmax.f32 %v887_v16, %v993_v15  ;;  %v1037_v8 = vpop.permute.xlu0 %1036  ;;  %v1042_v9 = vpop.permute.xlu1 %1041  ;;  %p1750_p3 = por %p1749_p2, %p1748_p1 }
 0x1aa   : > { %v995_v24 = vmul.f32 0.2, %v891_v10  ;;  %v1003_v26 = vmul.f32 0.2, %v989_v57 }
 0x1ab   : > { %v996_v29 = vmul.f32 0.2, %v893_v20  ;;  %v1000_v25 = vmul.f32 0.2, %v984_v23  ;;  %v896_v32 = vpop.f32.mrb[4].mxu0  ;;  %v1662_v34 = vpack.c.bf16 %v1009_v1, %v1006_v19  ;;  %p1751_p5 = pnand %p1750_p3, %p1744_p0 }
 0x1ac   : > { %v1007_v27 = vmax.f32 %v891_v10, %v995_v24  ;;  %v1015_v37 = vmax.f32 %v989_v57, %v1003_v26  ;;  %v897_v35 = vadd.f32 %v896_v32, %v798_v58  ;;  %v898_v38 = vpop.f32.mrb[5].mxu0 }
 0x1ad   : > { %v1008_v63 = vmax.f32 %v893_v20, %v996_v29  ;;  %v1012_v40 = vmax.f32 %v984_v23, %v1000_v25  ;;  %v899_v3 = vadd.f32 %v898_v38, %v798_v58  ;;  %1663 = vmatprep.subr.bf16.mxu0 %v1662_v34  ;;  %v1262_v17 = vpop.permute.xlu0 %1261  ;;  %v1267_v55 = vpop.permute.xlu1 %1266 }
 0x1ae   : > { %v1656_v41 = vpack.c.bf16 %v1007_v27, %v1004_v62  ;;  %1665 = vmatpush3.bf16.msra.mxu0 %v1662_v34  ;;  %v998_v45 = vmul.f32 0.2, %v897_v35 }
 0x1af   : > { %v902_v42 = vpop.f32.mrb[6].mxu0  ;;  %v1654_v43 = vpack.c.bf16 %v1008_v63, %v1005_v39  ;;  %v1666_v44 = vpack.c.bf16 %v1015_v37, %v1012_v40  ;;  %v999_v48 = vmul.f32 0.2, %v899_v3 }
 0x1b0   : > { %v903_v46 = vadd.f32 %v902_v42, %v803_v54  ;;  %v904_v47 = vpop.f32.mrb[7].mxu0  ;;  %v1010_v60 = vmax.f32 %v897_v35, %v998_v45 }
 0x1b1   : > { %v905_v50 = vadd.f32 %v904_v47, %v803_v54  ;;  %1655 = vmatprep.subr.bf16.mxu1 %v1654_v43  ;;  %1667 = vmatprep.subr.bf16.mxu0 %v1666_v44  ;;  %v1011_v0 = vmax.f32 %v899_v3, %v999_v48  ;;  %v1272_v25 = vpop.permute.xlu0 %1271  ;;  %v1277_v37 = vpop.permute.xlu1 %1276 }
 0x1b2   : > { %v1001_v36 = vmul.f32 0.2, %v903_v46  ;;  %1657 = vmatpush1.bf16.msra.mxu1 %v1656_v41  ;;  %1669 = vmatpush3.bf16.msra.mxu0 %v1666_v44 }
 0x1b3   : > { %v1002_v53 = vmul.f32 0.2, %v905_v50 }
 0x1b4   : > { %v1013_v61 = vmax.f32 %v903_v46, %v1001_v36 }
 0x1b5   : > { %v1014_v2 = vmax.f32 %v905_v50, %v1002_v53  ;;  %1633 = vmatmul.mubr.msk.f32.vlgmr.msra.gmra.mrb[8].mxu0 %vm805_vm0, %v1017_v51 }
 0x1b6   : > { %v1660_v4 = vpack.c.bf16 %v1013_v61, %v1010_v60  ;;  %1635 = vmatprep.mubr.msk.f32.mxu0 %vm805_vm0, %v1018_v59 }
 0x1b7   : > { %v1658_v6 = vpack.c.bf16 %v1014_v2, %v1011_v0 }
 0x1b9   : > { %1659 = vmatprep.subr.bf16.mxu1 %v1658_v6  ;;  %1636 = vmatmul.mubr.msk.f32.gmra.mrb[10].mxu0 %vm805_vm0, %v1019_v5 }
 0x1ba   : > { %1661 = vmatpush1.bf16.msra.mxu1 %v1660_v4 }
 0x1bd   : > { %1576 = vmatmul.mubr.msk.f32.vlgmr.msra.gmra.mrb[4].mxu1 %vm805_vm0, %v2052_v22 }
 0x1be   : > { %1126 = vmatprep.mubr.f32.mxu1 %v1824_v21 }
 0x1c1   : > { %1577 = vmatmul.mubr.msk.f32.gmra.mrb[6].mxu1 %vm805_vm0, %v1017_v51 }
 0x1c2   : > { %1132 = vmatprep.mubr.f32.mxu1 %v1824_v21 }
 0x1c5   : > { %1578 = vmatmul.mubr.msk.f32.gmra.mrb[8].mxu1 %vm805_vm0, %v1018_v59 }
 0x1c6   : > { %1138 = vmatprep.mubr.f32.mxu1 %v1824_v21 }
 0x1c9   : > { %1579 = vmatmul.mubr.msk.f32.gmra.mrb[10].mxu1 %vm805_vm0, %v1019_v5 }
 0x288   : > { %v1634_v12 = vpop.f32.mrb[8].mxu0 }
 0x289   : > { %v1217_v13 = vadd.f32 %v1634_v12, %v1032_v49  ;;  %v1211_v16 = vpop.f32.mrb[9].mxu0 }
 0x28a   : > { %v1212_v22 = vadd.f32 %v1211_v16, %v1027_v7 }
 0x28b   : > { %v1235_v30 = vmul.f32 0.2, %v1217_v13 }
 0x28c   : > { %v1232_v58 = vmul.f32 0.2, %v1212_v22  ;;  %v1637_v54 = vpop.f32.mrb[10].mxu0 }
 0x28d   : > { %v1247_v18 = vmax.f32 %v1217_v13, %v1235_v30  ;;  %v1227_v52 = vadd.f32 %v1637_v54, %v1042_v9  ;;  %v1221_v56 = vpop.f32.mrb[11].mxu0 }
 0x28e   : > { %v1244_v1 = vmax.f32 %v1212_v22, %v1232_v58  ;;  %v1222_v21 = vadd.f32 %v1221_v56, %v1037_v8 }
 0x28f   : > { %v1284_v10 = vmul.f32 %v1267_v55, %v1247_v18  ;;  %v1241_v57 = vmul.f32 0.2, %v1227_v52 }
 0x290   : > { %v1281_v11 = vmul.f32 %v1262_v17, %v1244_v1  ;;  %v1238_v14 = vmul.f32 0.2, %v1222_v21  ;;  %v1122_v15 = vpop.f32.mrb[4].mxu1 }
 0x291   : > { %v1123_v19 = vadd.f32 %v1122_v15, %v1027_v7  ;;  %v1124_v20 = vpop.f32.mrb[5].mxu1  ;;  %v1253_v24 = vmax.f32 %v1227_v52, %v1241_v57 }
 0x292   : > { %v1309_v23 = vadd.f32 %v1284_v10, %v1281_v11  ;;  %v1250_v26 = vmax.f32 %v1222_v21, %v1238_v14  ;;  %v1125_v29 = vadd.f32 %v1124_v20, %v1027_v7 }
 0x293   : > { %v1230_v32 = vmul.f32 0.2, %v1123_v19  ;;  %v1290_v39 = vmul.f32 %v1277_v37, %v1253_v24 }
 0x294   : > { %v1287_v34 = vmul.f32 %v1272_v25, %v1250_v26  ;;  %v1231_v62 = vmul.f32 0.2, %v1125_v29  ;;  %v1128_v27 = vpop.f32.mrb[6].mxu1  ;;  %v1825_v26 = vmov 1966171168  }
 0x295   : > { %v1129_v35 = vadd.f32 %v1128_v27, %v1032_v49  ;;  %v1130_v38 = vpop.f32.mrb[7].mxu1  ;;  %v1242_v3 = vmax.f32 %v1123_v19, %v1230_v32  ;;  %v1321_v32 = vpop.permute.xlu0 %1320 }
 0x296   : > { %v1310_v63 = vadd.f32 %v1309_v23, %v1287_v34  ;;  %v1131_v40 = vadd.f32 %v1130_v38, %v1032_v49  ;;  %v1243_v43 = vmax.f32 %v1125_v29, %v1231_v62  ;;  %v1335_v29 = vunpack.c.l.s4 %v1825_v26 }
 0x297   : > { %v1233_v41 = vmul.f32 0.2, %v1129_v35  ;;  %v1279_v51 = vmul.f32 %v1262_v17, %v1242_v3  ;;  %v1326_v38 = vrot.slane %v1321_v32, %v1998_v33 }
 0x298   : > { %v1311_v42 = vadd.f32 %v1310_v63, %v1290_v39  ;;  %v1234_v44 = vmul.f32 0.2, %v1131_v40  ;;  %v1134_v45 = vpop.f32.mrb[8].mxu1  ;;  %v1280_v61 = vmul.f32 %v1262_v17, %v1243_v43 }
 0x299   : > { %v1245_v46 = vmax.f32 %v1129_v35, %v1233_v41  ;;  %v1135_v47 = vadd.f32 %v1134_v45, %v1037_v8  ;;  %v1136_v48 = vpop.f32.mrb[9].mxu1  ;;  %v1336_v35 = vunpack.c.0.s8 %v1335_v29 }
 0x29a   : > { %v1246_v50 = vmax.f32 %v1131_v40, %v1234_v44  ;;  %v1137_v36 = vadd.f32 %v1136_v48, %v1037_v8  ;;  %v1312_v60 = vrot.slane %v1311_v42, 4 }
 0x29b   : > { %v1282_v53 = vmul.f32 %v1267_v55, %v1245_v46  ;;  %v1236_v59 = vmul.f32 0.2, %v1135_v47 }
 0x29c   : > { %v1283_v0 = vmul.f32 %v1267_v55, %v1246_v50  ;;  %v1237_v2 = vmul.f32 0.2, %v1137_v36  ;;  %v1140_v4 = vpop.f32.mrb[10].mxu1  ;;  %v1313_v58 = vadd.f32 %v1312_v60, %v1311_v42  ;;  %v1339_v42 = vsub.s32 %v1336_v35, %v1991_v31 }
 0x29d   : > { %v1291_v5 = vadd.f32 %v1282_v53, %v1279_v51  ;;  %v1248_v6 = vmax.f32 %v1135_v47, %v1236_v59  ;;  %v1141_v7 = vadd.f32 %v1140_v4, %v1042_v9  ;;  %v1142_v49 = vpop.f32.mrb[11].mxu1 }
 0x29e   : > { %v1300_v12 = vadd.f32 %v1283_v0, %v1280_v61  ;;  %v1249_v13 = vmax.f32 %v1137_v36, %v1237_v2  ;;  %v1143_v16 = vadd.f32 %v1142_v49, %v1042_v9  ;;  %v1314_v55 = vrot.slane %v1313_v58, 2 }
 0x29f   : > { %v1285_v22 = vmul.f32 %v1272_v25, %v1248_v6  ;;  %v1239_v30 = vmul.f32 0.2, %v1141_v7 }
 0x2a0   : > { %v1286_v54 = vmul.f32 %v1272_v25, %v1249_v13  ;;  %v1240_v8 = vmul.f32 0.2, %v1143_v16  ;;  %v1315_v14 = vadd.f32 %v1314_v55, %v1313_v58 }
 0x2a1   : > { %v1292_v18 = vadd.f32 %v1291_v5, %v1285_v22  ;;  %v1251_v52 = vmax.f32 %v1141_v7, %v1239_v30 }
 0x2a2   : > { %v1301_v56 = vadd.f32 %v1300_v12, %v1286_v54  ;;  %v1252_v1 = vmax.f32 %v1143_v16, %v1240_v8  ;;  %v1316_v23 = vrot.slane %v1315_v14, 1 }
 0x2a3   : > { %v1288_v17 = vmul.f32 %v1277_v37, %v1251_v52 }
 0x2a4   : > { %v1289_v21 = vmul.f32 %v1277_v37, %v1252_v1  ;;  %v1317_v27 = vadd.f32 %v1316_v23, %v1315_v14 }
 0x2a5   : > { %v1293_v10 = vadd.f32 %v1292_v18, %v1288_v17 }
 0x2a6   : > { %v1302_v57 = vadd.f32 %v1301_v56, %v1289_v21  ;;  %v1329_v41 = vadd.f32 %v1326_v38, %v1317_v27 }
 0x2a7   : > { %v1294_v11 = vrot.slane %v1293_v10, 4 }
 0x2a8   : > { %v1303_v15 = vrot.slane %v1302_v57, 4  ;;  %v1347_v45 = vrot.slane %v1329_v41, %v1339_v42 }
 0x2a9   : > { %v1295_v19 = vadd.f32 %v1294_v11, %v1293_v10 }
 0x2aa   : > { %v1304_v9 = vadd.f32 %v1303_v15, %v1302_v57 }
 0x2ab   : > { %v1296_v20 = vrot.slane %v1295_v19, 2 }
 0x2ac   : > { %v1305_v24 = vrot.slane %v1304_v9, 2 }
 0x2ad   : > { %v1297_v25 = vadd.f32 %v1296_v20, %v1295_v19 }
 0x2ae   : > { %v1306_v34 = vadd.f32 %v1305_v24, %v1304_v9 }
 0x2af   : > { %v1298_v62 = vrot.slane %v1297_v25, 1 }
 0x2b0   : > { %v1307_v37 = vrot.slane %v1306_v34, 1 }
 0x2b1   : > { %v1299_v39 = vadd.f32 %v1298_v62, %v1297_v25 }
 0x2b2   : > { %v1308_v63 = vadd.f32 %v1307_v37, %v1306_v34 }
 0x2b3   : > { %v1327_v40 = vadd.f32 %v1326_v38, %v1299_v39 }
 0x2b4   : > { %v1328_v3 = vadd.f32 %v1326_v38, %v1308_v63 }
 0x2b6   : > { %v1333_v43 = vcombine.low %v1327_v40, %v1328_v3 }
 0x2b8   : > { %v1340_v44 = vrot.slane %v1333_v43, %v1339_v42 }
 0x2ba   : > { %v1348_v46 = vcombine.low %v1340_v44, %v1347_v45 }
 0x2bc   : > { %v1355_v47 = vrot.slane %v1348_v46, %v1339_v42 }
 0x2be   : > { %1361 = vst.msk [vmem:[%s466_s15] sm:$0x7] %vm1359_vm1, %v1355_v47 }
 0x2bf   : > { %1754 = shalt.err (!%p1751_p5)
}
 0x2c0   : > { %s1755_s24 = scalar_lea.hbm %s2078_s26, 48  ;;  %s1759_s18 = scalar_lea.hbm %s2134_s9, 96 }
 0x2c1   : > { %p1756_p6 = scmp.ne.s32.totalorder %s2078_s26, %s1755_s24  ;;  %p1760_p10 = scmp.lt.u32.totalorder %s2078_s26, %s2134_s9 }
 0x2c2   : > { %p1761_p11 = scmp.lt.u32.totalorder %s1759_s18, %s1755_s24  ;;  %p1763_p13 = scmp.lt.u32.totalorder %s1755_s24, %s2078_s26 }
 0x2c3   : > { %p1757_p7 = pnand %p1756_p6, %p1917_p4 }
 0x2c4   : > { %p1762_p12 = por %p1761_p11, %p1760_p10 }
 0x2c5   : > { %p1758_p9 = pneg %p1757_p7 }
 0x2c6   : > { %p1764_p0 = por %p1763_p13, %p1762_p12 }
 0x2c8   : > { %p1765_p1 = pnand %p1764_p0, %p1758_p9 }
 0x2ca   : > { %1768 = shalt.err (!%p1765_p1)
}
 0x2cb   : > { %1673 = dma.vmem_to_hbm [thread:$0]  (%p1917_p4), %s2080_s20, 48, %s2078_s26, %s1363_s23  }
 0x2cc PF: > { %p1679_p2 = scmp.ge.s32.totalorder %s1819_s14, 2  ;;  %s1391_s27 = sand.u32 1, %s1799_s30  }
 0x2cd   : > { %s1392_s16 = scalar_lea.sflag [#allocation3], %s1391_s27 }
 0x2ce   : > { %p1676_p3 = pnand %p1679_p2, %p1924_p8 }
 0x2d0   : > { %1794 = dma.done.wait (!%p1676_p3), %s1392_s16, 48  }
 0x2d1   : > { %1796 = vsyncadd (!%p1676_p3), %s1392_s16, 4294967248  ;;  %s22_s14 = sadd.s32 1, %s1819_s14   ;;  %s2137_s30 = smov %s1803_s10 }
 0x2d2   : > { %p19_p5 = scmp.ge.s32.totalorder %s22_s14, 4   ;;  %s2138_s10 = smov %s1807_s11 }
 0x2d3   : > { %s2139_s11 = smov %s1930_s22  ;;  %s2140_s12 = smov %s1815_s13 }
 0x2d4   : > { %s2141_s13 = smov %s2143_s17  ;;  %21 = sbr.rel (!%p19_p5) target bundleno = 4 (0x4), region = 115 }
 0x2db   :  { %1397 = vsyncpa [#allocation3], 1 }
 0x2dc   :  { %1399 = vsyncpa [#allocation3 + $0x1], 1 }

</bundles_post_ra>
